<compile_context>
chip_gen: v7x
topology: tpu7x:2x2x1
jax: 0.10.0
libtpu: 0.0.40
codegen_flags: <defaults>
</compile_context>

<pallas_src>
import jax
import jax.numpy as jnp
from jax import lax
from jax.experimental import pallas as pl
from jax.experimental.pallas import tpu as pltpu


# ----------------------------- kernel ----------------------------------------

def _patch_expand_kernel(x_ref, w_ref, b_ref, g_ref, bb_ref, o_ref):
    # x_ref : (T, W, dim)       T image rows of the token grid per grid step
    # w_ref : (dim, 2*dim)      expand weight (whole array resident in VMEM)
    # b_ref : (1, 2*dim)        expand bias (f32)
    # g_ref : (1, c)            LayerNorm gamma   (c = dim // 2), f32
    # bb_ref: (1, c)            LayerNorm beta, f32
    # o_ref : (T, 2, W, 2*c)    output, index (h, p1, w, p2*c + cc)
    T, W, D = x_ref.shape
    C = w_ref.shape[1]          # 2*dim == 4*c
    c = C // 4
    two_c = 2 * c               # == dim

    x2 = x_ref[...].reshape(T * W, D)
    gamma = g_ref[...].astype(jnp.float32)          # (1, c) broadcasts over (T, W, c)
    beta = bb_ref[...].astype(jnp.float32)
    inv_c = jnp.float32(1.0 / c)
    eps = jnp.float32(1e-5)                         # torch.nn.LayerNorm default

    # Per p1-half: matmul with N = dim (halves the live f32 intermediate), then
    # LayerNorm each c-wide p2 chunk and emit ONE lane-dense (T, 1, W, 2c) store.
    for p1 in range(2):
        col0 = p1 * two_c
        w_half = w_ref[:, col0:col0 + two_c]                        # (dim, 2c)
        b_half = b_ref[:, col0:col0 + two_c].astype(jnp.float32)    # (1, 2c)

        yh = jnp.dot(x2, w_half, preferred_element_type=jnp.float32)
        yh = (yh + b_half).reshape(T, W, two_c)                     # (T, W, 2c) f32

        halves = []
        for p2 in range(2):
            h = yh[:, :, p2 * c:(p2 + 1) * c]                       # (T, W, c)
            mean = jnp.sum(h, axis=-1, keepdims=True) * inv_c
            d = h - mean
            var = jnp.sum(d * d, axis=-1, keepdims=True) * inv_c
            halves.append(d * lax.rsqrt(var + eps) * gamma + beta)
        row = jnp.concatenate(halves, axis=-1)                      # (T, W, 2c)
        o_ref[:, p1:p1 + 1, :, :] = row.reshape(T, 1, W, two_c).astype(o_ref.dtype)


# ----------------------------- sizing helpers ----------------------------------

_MiB = 1024 * 1024


def _vmem_capacity():
    """Physical VMEM capacity in bytes and whether the query succeeded."""
    try:
        info = pltpu.get_tpu_info()
        cap = int(getattr(info, "vmem_capacity_bytes", 0) or 0)
        if cap > 0:
            return cap, True
    except Exception:
        pass
    return 64 * _MiB, False      # conservative fallback (safe on every generation)


def _pick_row_tile(total_rows, w, token_target, want_multi_step):
    """Largest divisor of total_rows with tile*w <= token_target tokens per step.
    On 2-TC chips prefer >=2 grid steps, but never drop below half the max tile."""
    max_tile = max(1, token_target // w)
    divs = [d for d in range(1, total_rows + 1)
            if total_rows % d == 0 and d <= max_tile]
    tile = max(divs)             # d=1 always qualifies
    if want_multi_step and tile == total_rows and total_rows > 1:
        smaller = [d for d in divs if d < total_rows]
        if smaller and 2 * max(smaller) >= tile:
            tile = max(smaller)
    return tile


# ----------------------------- wrapper ----------------------------------------

def patch_expand_forward(x, params, *, use_bf16_matmul=True, token_target=None):
    """PatchExpand.forward: x (B, L, dim) -> (B, 4L, dim//2)."""
    B, L, dim = x.shape
    H = int(round(float(L) ** 0.5))
    W = H
    assert H * W == L, "PatchExpand requires a square token grid (module uses sqrt(L))"
    assert dim % 2 == 0, "dim must be even (norm over dim // 2)"
    c = dim // 2
    out_dtype = x.dtype

    # bf16 feed for the MXU (halves HBM traffic, native bf16 MXU path); LN stays f32.
    if use_bf16_matmul:
        x_in = x.astype(jnp.bfloat16)
        w_in = params["w"].astype(jnp.bfloat16)
    else:
        x_in = x
        w_in = params["w"]
    b2 = params["b"].reshape(1, 2 * dim).astype(jnp.float32)
    g2 = params["gamma"].reshape(1, c).astype(jnp.float32)
    bb2 = params["beta"].reshape(1, c).astype(jnp.float32)

    xv = x_in.reshape(B * H, W, dim)          # free reshape: image rows of tokens
    BH = B * H

    # ---- generation-aware VMEM budget and row tile --------------------------
    cap, cap_known = _vmem_capacity()
    vmem_limit = max(16 * _MiB, min(cap // 2, 64 * _MiB))   # ~32 MiB v7x, 64 MiB v5e/v6e
    # v7x (64 MiB VMEM) is the only target generation with 2 TensorCores / chip.
    want_multi_step = cap_known and cap <= 64 * _MiB

    if token_target is None:
        in_b = jnp.dtype(x_in.dtype).itemsize
        out_b = jnp.dtype(out_dtype).itemsize
        w_total = (dim * 2 * dim * jnp.dtype(w_in.dtype).itemsize
                   + (2 * dim + 2 * c) * 4 + 4096)
        # per-token bytes: input (2 pipeline bufs) + output (2 bufs) + f32 scratch
        per_token = dim * in_b * 2 + 2 * dim * out_b * 2 + 2 * dim * 4
        budget = (vmem_limit * 3) // 4 - w_total
        max_tokens = max(W, budget // per_token)
        token_target = int(min(4096, max_tokens))
    token_target = max(int(token_target), W)

    tile = _pick_row_tile(BH, W, token_target, want_multi_step)

    # ---- pallas_call ----------------------------------------------------------
    def _make_call(const_whole_vmem):
        if const_whole_vmem:
            # Grid-invariant operands: whole array resident in VMEM, single copy
            # (no 2x pipeline buffering).
            const_specs = [pl.BlockSpec(memory_space=pltpu.MemorySpace.VMEM)] * 4
        else:
            # Fallback: constant-index blocked specs (always supported).
            const_specs = [
                pl.BlockSpec((dim, 2 * dim), lambda i: (0, 0)),
                pl.BlockSpec((1, 2 * dim), lambda i: (0, 0)),
                pl.BlockSpec((1, c), lambda i: (0, 0)),
                pl.BlockSpec((1, c), lambda i: (0, 0)),
            ]
        return pl.pallas_call(
            _patch_expand_kernel,
            out_shape=jax.ShapeDtypeStruct((BH, 2, W, 2 * c), out_dtype),
            grid_spec=pltpu.PrefetchScalarGridSpec(
                num_scalar_prefetch=0,
                grid=(BH // tile,),
                in_specs=[pl.BlockSpec((tile, W, dim), lambda i: (i, 0, 0))]
                         + const_specs,
                out_specs=pl.BlockSpec((tile, 2, W, 2 * c), lambda i: (i, 0, 0, 0)),
            ),
            compiler_params=pltpu.CompilerParams(
                dimension_semantics=("parallel",),
                vmem_limit_bytes=int(vmem_limit),
            ),
        )

    args = (xv, w_in, b2, g2, bb2)
    try:
        out = _make_call(True)(*args)
    except Exception:
        out = _make_call(False)(*args)

    # (B*H, p1, W, p2*c + cc) row-major == (B, (2h+p1)*2W + 2w + p2, c): free reshape.
    return out.reshape(B, 4 * L, c)


# ----------------------------- reference --------------------------------------

def patch_expand_reference(x, w, b, gamma, beta):
    B, L, dim = x.shape
    H = int(round(float(L) ** 0.5))
    c = dim // 2
    y = jnp.dot(x.astype(jnp.float32), w.astype(jnp.float32),
                precision=jax.lax.Precision.HIGHEST) + b.astype(jnp.float32)
    y = y.reshape(B, H, H, 2, 2, c)
    y = jnp.transpose(y, (0, 1, 3, 2, 4, 5)).reshape(B, 4 * L, c)
    mean = jnp.mean(y, axis=-1, keepdims=True)
    var = jnp.mean((y - mean) ** 2, axis=-1, keepdims=True)
    y = (y - mean) * lax.rsqrt(var + jnp.float32(1e-5))
    return y * gamma.astype(jnp.float32) + beta.astype(jnp.float32)


# ----------------------------- main --------------------------------------------

if __name__ == "__main__":
    B, H, W, dim = 2, 8, 8, 32          # small shapes consistent with the module
    L = H * W
    c = dim // 2

    key = jax.random.PRNGKey(0)
    kx, kw, kb = jax.random.split(key, 3)

    x = jax.random.normal(kx, (B, L, dim), dtype=jnp.float32)
    params = {
        "w": 0.05 * jax.random.normal(kw, (dim, 2 * dim), dtype=jnp.float32),
        "b": 0.05 * jax.random.normal(kb, (2 * dim,), dtype=jnp.float32),
        "gamma": 1.0 + 0.1 * jnp.arange(c, dtype=jnp.float32) / c,
        "beta": 0.01 * jnp.arange(c, dtype=jnp.float32),
    }

    # 1) f32 MXU path vs exact f32 reference.
    out_f32 = jax.block_until_ready(
        patch_expand_forward(x, params, use_bf16_matmul=False))
    ref_f32 = patch_expand_reference(x, params["w"], params["b"],
                                     params["gamma"], params["beta"])
    assert out_f32.shape == (B, 4 * L, c), out_f32.shape
    assert jnp.allclose(out_f32, ref_f32, atol=2e-3, rtol=2e-3), "f32 path mismatch"

    # 2) Default bf16-fed MXU path vs a reference fed with identically-rounded inputs.
    out_bf16 = jax.block_until_ready(patch_expand_forward(x, params))
    x_r = x.astype(jnp.bfloat16).astype(jnp.float32)
    w_r = params["w"].astype(jnp.bfloat16).astype(jnp.float32)
    ref_bf16 = patch_expand_reference(x_r, w_r, params["b"],
                                      params["gamma"], params["beta"])
    assert out_bf16.shape == (B, 4 * L, c), out_bf16.shape
    assert jnp.allclose(out_bf16, ref_bf16, atol=2e-3, rtol=2e-3), "bf16 path mismatch"

    # 3) Force a multi-step grid (small token budget) to exercise the pipeline path.
    out_multi = jax.block_until_ready(
        patch_expand_forward(x, params, use_bf16_matmul=False, token_target=16))
    assert jnp.allclose(out_multi, ref_f32, atol=2e-3, rtol=2e-3), "multi-step mismatch"

    print("KERNEL_OK")
</pallas_src>

<mosaic_0001>
module attributes {stable_mosaic.version = 11 : i64} {
  func.func @_patch_expand_kernel(%arg0: i32, %arg1: memref<16x8x32xf32, #tpu.memory_space<vmem>>, %arg2: memref<32x64xf32, #tpu.memory_space<vmem>>, %arg3: memref<1x64xf32, #tpu.memory_space<vmem>>, %arg4: memref<1x16xf32, #tpu.memory_space<vmem>>, %arg5: memref<1x16xf32, #tpu.memory_space<vmem>>, %arg6: memref<16x2x8x32xf32, #tpu.memory_space<vmem>>) attributes {dimension_semantics = [#tpu.dimension_semantics<parallel>], iteration_bounds = array<i64: 1>, scalar_prefetch = 0 : i64, scratch_operands = 0 : i64, tpu.core_type = #tpu.core_type<tc>, window_params = [{transform_indices = @transform_0, window_bounds = array<i64: 16, 8, 32>}, {pipeline_mode = #tpu.pipeline_mode<synchronous>, transform_indices = @transform_1, window_bounds = array<i64: 32, 64>}, {pipeline_mode = #tpu.pipeline_mode<synchronous>, transform_indices = @transform_2, window_bounds = array<i64: 1, 64>}, {pipeline_mode = #tpu.pipeline_mode<synchronous>, transform_indices = @transform_3, window_bounds = array<i64: 1, 16>}, {pipeline_mode = #tpu.pipeline_mode<synchronous>, transform_indices = @transform_4, window_bounds = array<i64: 1, 16>}, {transform_indices = @transform_5, window_bounds = array<i64: 16, 2, 8, 32>}]} {
    %c0 = arith.constant 0 : index
    %c0_0 = arith.constant 0 : index
    %c0_1 = arith.constant 0 : index
    %0 = vector.load %arg1[%c0, %c0_0, %c0_1] : memref<16x8x32xf32, #tpu.memory_space<vmem>>, vector<16x8x32xf32>
    %1 = vector.shape_cast %0 : vector<16x8x32xf32> to vector<128x32xf32>
    %c0_2 = arith.constant 0 : index
    %c0_3 = arith.constant 0 : index
    %2 = vector.load %arg4[%c0_2, %c0_3] : memref<1x16xf32, #tpu.memory_space<vmem>>, vector<1x16xf32>
    %c0_4 = arith.constant 0 : index
    %c0_5 = arith.constant 0 : index
    %3 = vector.load %arg5[%c0_4, %c0_5] : memref<1x16xf32, #tpu.memory_space<vmem>>, vector<1x16xf32>
    %c0_6 = arith.constant 0 : index
    %c0_7 = arith.constant 0 : index
    %4 = vector.load %arg2[%c0_6, %c0_7] : memref<32x64xf32, #tpu.memory_space<vmem>>, vector<32x32xf32>
    %c0_8 = arith.constant 0 : index
    %c0_9 = arith.constant 0 : index
    %5 = vector.load %arg3[%c0_8, %c0_9] : memref<1x64xf32, #tpu.memory_space<vmem>>, vector<1x32xf32>
    %cst = arith.constant dense<0.000000e+00> : vector<128x32xf32>
    %6 = tpu.matmul %1, %4, %cst {dimension_numbers = #tpu.dot_dimension_numbers<[1], [0], [0], [1], [0, 0, 1, 1], [], []>} : vector<128x32xf32>, vector<32x32xf32>, vector<128x32xf32> -> vector<128x32xf32>
    %7 = vector.broadcast %5 : vector<1x32xf32> to vector<128x32xf32>
    %8 = arith.addf %6, %7 : vector<128x32xf32>
    %9 = vector.shape_cast %8 : vector<128x32xf32> to vector<16x8x32xf32>
    %10 = vector.extract_strided_slice %9 {offsets = [0, 0, 0], sizes = [16, 8, 16], strides = [1, 1, 1]} : vector<16x8x32xf32> to vector<16x8x16xf32>
    %cst_10 = arith.constant dense<0.000000e+00> : vector<16x8xf32>
    %11 = vector.multi_reduction <add>, %10, %cst_10 [2] : vector<16x8x16xf32> to vector<16x8xf32>
    %12 = vector.shape_cast %11 : vector<16x8xf32> to vector<16x8x1xf32>
    %cst_11 = arith.constant 6.250000e-02 : f32
    %13 = vector.broadcast %cst_11 : f32 to vector<16x8x1xf32>
    %14 = arith.mulf %12, %13 : vector<16x8x1xf32>
    %15 = vector.broadcast %14 : vector<16x8x1xf32> to vector<16x8x16xf32>
    %16 = arith.subf %10, %15 : vector<16x8x16xf32>
    %17 = arith.mulf %16, %16 : vector<16x8x16xf32>
    %cst_12 = arith.constant dense<0.000000e+00> : vector<16x8xf32>
    %18 = vector.multi_reduction <add>, %17, %cst_12 [2] : vector<16x8x16xf32> to vector<16x8xf32>
    %19 = vector.shape_cast %18 : vector<16x8xf32> to vector<16x8x1xf32>
    %cst_13 = arith.constant 6.250000e-02 : f32
    %20 = vector.broadcast %cst_13 : f32 to vector<16x8x1xf32>
    %21 = arith.mulf %19, %20 : vector<16x8x1xf32>
    %cst_14 = arith.constant 9.99999974E-6 : f32
    %22 = vector.broadcast %cst_14 : f32 to vector<16x8x1xf32>
    %23 = arith.addf %21, %22 : vector<16x8x1xf32>
    %24 = math.rsqrt %23 : vector<16x8x1xf32>
    %25 = vector.broadcast %24 : vector<16x8x1xf32> to vector<16x8x16xf32>
    %26 = arith.mulf %16, %25 : vector<16x8x16xf32>
    %27 = vector.shape_cast %2 : vector<1x16xf32> to vector<1x1x16xf32>
    %28 = vector.broadcast %27 : vector<1x1x16xf32> to vector<16x8x16xf32>
    %29 = arith.mulf %26, %28 : vector<16x8x16xf32>
    %30 = vector.shape_cast %3 : vector<1x16xf32> to vector<1x1x16xf32>
    %31 = vector.broadcast %30 : vector<1x1x16xf32> to vector<16x8x16xf32>
    %32 = arith.addf %29, %31 : vector<16x8x16xf32>
    %33 = vector.extract_strided_slice %9 {offsets = [0, 0, 16], sizes = [16, 8, 16], strides = [1, 1, 1]} : vector<16x8x32xf32> to vector<16x8x16xf32>
    %cst_15 = arith.constant dense<0.000000e+00> : vector<16x8xf32>
    %34 = vector.multi_reduction <add>, %33, %cst_15 [2] : vector<16x8x16xf32> to vector<16x8xf32>
    %35 = vector.shape_cast %34 : vector<16x8xf32> to vector<16x8x1xf32>
    %cst_16 = arith.constant 6.250000e-02 : f32
    %36 = vector.broadcast %cst_16 : f32 to vector<16x8x1xf32>
    %37 = arith.mulf %35, %36 : vector<16x8x1xf32>
    %38 = vector.broadcast %37 : vector<16x8x1xf32> to vector<16x8x16xf32>
    %39 = arith.subf %33, %38 : vector<16x8x16xf32>
    %40 = arith.mulf %39, %39 : vector<16x8x16xf32>
    %cst_17 = arith.constant dense<0.000000e+00> : vector<16x8xf32>
    %41 = vector.multi_reduction <add>, %40, %cst_17 [2] : vector<16x8x16xf32> to vector<16x8xf32>
    %42 = vector.shape_cast %41 : vector<16x8xf32> to vector<16x8x1xf32>
    %cst_18 = arith.constant 6.250000e-02 : f32
    %43 = vector.broadcast %cst_18 : f32 to vector<16x8x1xf32>
    %44 = arith.mulf %42, %43 : vector<16x8x1xf32>
    %cst_19 = arith.constant 9.99999974E-6 : f32
    %45 = vector.broadcast %cst_19 : f32 to vector<16x8x1xf32>
    %46 = arith.addf %44, %45 : vector<16x8x1xf32>
    %47 = math.rsqrt %46 : vector<16x8x1xf32>
    %48 = vector.broadcast %47 : vector<16x8x1xf32> to vector<16x8x16xf32>
    %49 = arith.mulf %39, %48 : vector<16x8x16xf32>
    %50 = vector.shape_cast %2 : vector<1x16xf32> to vector<1x1x16xf32>
    %51 = vector.broadcast %50 : vector<1x1x16xf32> to vector<16x8x16xf32>
    %52 = arith.mulf %49, %51 : vector<16x8x16xf32>
    %53 = vector.shape_cast %3 : vector<1x16xf32> to vector<1x1x16xf32>
    %54 = vector.broadcast %53 : vector<1x1x16xf32> to vector<16x8x16xf32>
    %55 = arith.addf %52, %54 : vector<16x8x16xf32>
    %56 = tpu.concatenate %32, %55 in 2 : vector<16x8x16xf32>, vector<16x8x16xf32> -> vector<16x8x32xf32>
    %57 = vector.shape_cast %56 : vector<16x8x32xf32> to vector<16x1x8x32xf32>
    %c0_20 = arith.constant 0 : index
    %c0_21 = arith.constant 0 : index
    %c0_22 = arith.constant 0 : index
    %c0_23 = arith.constant 0 : index
    %58 = vector.load %arg6[%c0_20, %c0_21, %c0_22, %c0_23] : memref<16x2x8x32xf32, #tpu.memory_space<vmem>>, vector<16x1x8x32xf32>
    tpu.vector_store %arg6[%c0_20, %c0_21, %c0_22, %c0_23], %57 {strides = array<i32>} : memref<16x2x8x32xf32, #tpu.memory_space<vmem>>, vector<16x1x8x32xf32>,
    %c0_24 = arith.constant 0 : index
    %c32 = arith.constant 32 : index
    %59 = vector.load %arg2[%c0_24, %c32] : memref<32x64xf32, #tpu.memory_space<vmem>>, vector<32x32xf32>
    %c0_25 = arith.constant 0 : index
    %c32_26 = arith.constant 32 : index
    %60 = vector.load %arg3[%c0_25, %c32_26] : memref<1x64xf32, #tpu.memory_space<vmem>>, vector<1x32xf32>
    %cst_27 = arith.constant dense<0.000000e+00> : vector<128x32xf32>
    %61 = tpu.matmul %1, %59, %cst_27 {dimension_numbers = #tpu.dot_dimension_numbers<[1], [0], [0], [1], [0, 0, 1, 1], [], []>} : vector<128x32xf32>, vector<32x32xf32>, vector<128x32xf32> -> vector<128x32xf32>
    %62 = vector.broadcast %60 : vector<1x32xf32> to vector<128x32xf32>
    %63 = arith.addf %61, %62 : vector<128x32xf32>
    %64 = vector.shape_cast %63 : vector<128x32xf32> to vector<16x8x32xf32>
    %65 = vector.extract_strided_slice %64 {offsets = [0, 0, 0], sizes = [16, 8, 16], strides = [1, 1, 1]} : vector<16x8x32xf32> to vector<16x8x16xf32>
    %cst_28 = arith.constant dense<0.000000e+00> : vector<16x8xf32>
    %66 = vector.multi_reduction <add>, %65, %cst_28 [2] : vector<16x8x16xf32> to vector<16x8xf32>
    %67 = vector.shape_cast %66 : vector<16x8xf32> to vector<16x8x1xf32>
    %cst_29 = arith.constant 6.250000e-02 : f32
    %68 = vector.broadcast %cst_29 : f32 to vector<16x8x1xf32>
    %69 = arith.mulf %67, %68 : vector<16x8x1xf32>
    %70 = vector.broadcast %69 : vector<16x8x1xf32> to vector<16x8x16xf32>
    %71 = arith.subf %65, %70 : vector<16x8x16xf32>
    %72 = arith.mulf %71, %71 : vector<16x8x16xf32>
    %cst_30 = arith.constant dense<0.000000e+00> : vector<16x8xf32>
    %73 = vector.multi_reduction <add>, %72, %cst_30 [2] : vector<16x8x16xf32> to vector<16x8xf32>
    %74 = vector.shape_cast %73 : vector<16x8xf32> to vector<16x8x1xf32>
    %cst_31 = arith.constant 6.250000e-02 : f32
    %75 = vector.broadcast %cst_31 : f32 to vector<16x8x1xf32>
    %76 = arith.mulf %74, %75 : vector<16x8x1xf32>
    %cst_32 = arith.constant 9.99999974E-6 : f32
    %77 = vector.broadcast %cst_32 : f32 to vector<16x8x1xf32>
    %78 = arith.addf %76, %77 : vector<16x8x1xf32>
    %79 = math.rsqrt %78 : vector<16x8x1xf32>
    %80 = vector.broadcast %79 : vector<16x8x1xf32> to vector<16x8x16xf32>
    %81 = arith.mulf %71, %80 : vector<16x8x16xf32>
    %82 = vector.shape_cast %2 : vector<1x16xf32> to vector<1x1x16xf32>
    %83 = vector.broadcast %82 : vector<1x1x16xf32> to vector<16x8x16xf32>
    %84 = arith.mulf %81, %83 : vector<16x8x16xf32>
    %85 = vector.shape_cast %3 : vector<1x16xf32> to vector<1x1x16xf32>
    %86 = vector.broadcast %85 : vector<1x1x16xf32> to vector<16x8x16xf32>
    %87 = arith.addf %84, %86 : vector<16x8x16xf32>
    %88 = vector.extract_strided_slice %64 {offsets = [0, 0, 16], sizes = [16, 8, 16], strides = [1, 1, 1]} : vector<16x8x32xf32> to vector<16x8x16xf32>
    %cst_33 = arith.constant dense<0.000000e+00> : vector<16x8xf32>
    %89 = vector.multi_reduction <add>, %88, %cst_33 [2] : vector<16x8x16xf32> to vector<16x8xf32>
    %90 = vector.shape_cast %89 : vector<16x8xf32> to vector<16x8x1xf32>
    %cst_34 = arith.constant 6.250000e-02 : f32
    %91 = vector.broadcast %cst_34 : f32 to vector<16x8x1xf32>
    %92 = arith.mulf %90, %91 : vector<16x8x1xf32>
    %93 = vector.broadcast %92 : vector<16x8x1xf32> to vector<16x8x16xf32>
    %94 = arith.subf %88, %93 : vector<16x8x16xf32>
    %95 = arith.mulf %94, %94 : vector<16x8x16xf32>
    %cst_35 = arith.constant dense<0.000000e+00> : vector<16x8xf32>
    %96 = vector.multi_reduction <add>, %95, %cst_35 [2] : vector<16x8x16xf32> to vector<16x8xf32>
    %97 = vector.shape_cast %96 : vector<16x8xf32> to vector<16x8x1xf32>
    %cst_36 = arith.constant 6.250000e-02 : f32
    %98 = vector.broadcast %cst_36 : f32 to vector<16x8x1xf32>
    %99 = arith.mulf %97, %98 : vector<16x8x1xf32>
    %cst_37 = arith.constant 9.99999974E-6 : f32
    %100 = vector.broadcast %cst_37 : f32 to vector<16x8x1xf32>
    %101 = arith.addf %99, %100 : vector<16x8x1xf32>
    %102 = math.rsqrt %101 : vector<16x8x1xf32>
    %103 = vector.broadcast %102 : vector<16x8x1xf32> to vector<16x8x16xf32>
    %104 = arith.mulf %94, %103 : vector<16x8x16xf32>
    %105 = vector.shape_cast %2 : vector<1x16xf32> to vector<1x1x16xf32>
    %106 = vector.broadcast %105 : vector<1x1x16xf32> to vector<16x8x16xf32>
    %107 = arith.mulf %104, %106 : vector<16x8x16xf32>
    %108 = vector.shape_cast %3 : vector<1x16xf32> to vector<1x1x16xf32>
    %109 = vector.broadcast %108 : vector<1x1x16xf32> to vector<16x8x16xf32>
    %110 = arith.addf %107, %109 : vector<16x8x16xf32>
    %111 = tpu.concatenate %87, %110 in 2 : vector<16x8x16xf32>, vector<16x8x16xf32> -> vector<16x8x32xf32>
    %112 = vector.shape_cast %111 : vector<16x8x32xf32> to vector<16x1x8x32xf32>
    %c0_38 = arith.constant 0 : index
    %c1 = arith.constant 1 : index
    %c0_39 = arith.constant 0 : index
    %c0_40 = arith.constant 0 : index
    %113 = vector.load %arg6[%c0_38, %c1, %c0_39, %c0_40] : memref<16x2x8x32xf32, #tpu.memory_space<vmem>>, vector<16x1x8x32xf32>
    tpu.vector_store %arg6[%c0_38, %c1, %c0_39, %c0_40], %112 {strides = array<i32>} : memref<16x2x8x32xf32, #tpu.memory_space<vmem>>, vector<16x1x8x32xf32>,
    return
  }
  func.func @transform_0(%arg0: i32) -> (i32, i32, i32) {
    %c0_i32 = arith.constant 0 : i32
    %c0_i32_0 = arith.constant 0 : i32
    %c0_i32_1 = arith.constant 0 : i32
    return %arg0, %c0_i32, %c0_i32_0 : i32, i32, i32
  }
  func.func @transform_1(%arg0: i32) -> (i32, i32) {
    %c0_i32 = arith.constant 0 : i32
    %c0_i32_0 = arith.constant 0 : i32
    %c0_i32_1 = arith.constant 0 : i32
    return %c0_i32, %c0_i32_0 : i32, i32
  }
  func.func @transform_2(%arg0: i32) -> (i32, i32) {
    %c0_i32 = arith.constant 0 : i32
    %c0_i32_0 = arith.constant 0 : i32
    %c0_i32_1 = arith.constant 0 : i32
    return %c0_i32, %c0_i32_0 : i32, i32
  }
  func.func @transform_3(%arg0: i32) -> (i32, i32) {
    %c0_i32 = arith.constant 0 : i32
    %c0_i32_0 = arith.constant 0 : i32
    %c0_i32_1 = arith.constant 0 : i32
    return %c0_i32, %c0_i32_0 : i32, i32
  }
  func.func @transform_4(%arg0: i32) -> (i32, i32) {
    %c0_i32 = arith.constant 0 : i32
    %c0_i32_0 = arith.constant 0 : i32
    %c0_i32_1 = arith.constant 0 : i32
    return %c0_i32, %c0_i32_0 : i32, i32
  }
  func.func @transform_5(%arg0: i32) -> (i32, i32, i32, i32) {
    %c0_i32 = arith.constant 0 : i32
    %c0_i32_0 = arith.constant 0 : i32
    %c0_i32_1 = arith.constant 0 : i32
    %c0_i32_2 = arith.constant 0 : i32
    return %arg0, %c0_i32, %c0_i32_0, %c0_i32_1 : i32, i32, i32, i32
  }
}

module attributes {stable_mosaic.version = 11 : i64} {
  func.func @_patch_expand_kernel(%arg0: i32, %arg1: memref<16x8x32xf32, #tpu.memory_space<vmem>>, %arg2: memref<32x64xf32, #tpu.memory_space<vmem>>, %arg3: memref<1x64xf32, #tpu.memory_space<vmem>>, %arg4: memref<1x16xf32, #tpu.memory_space<vmem>>, %arg5: memref<1x16xf32, #tpu.memory_space<vmem>>, %arg6: memref<16x2x8x32xf32, #tpu.memory_space<vmem>>) attributes {dimension_semantics = [#tpu.dimension_semantics<parallel>], iteration_bounds = array<i64: 1>, scalar_prefetch = 0 : i64, scratch_operands = 0 : i64, tpu.core_type = #tpu.core_type<tc>, window_params = [{transform_indices = @transform_0, window_bounds = array<i64: 16, 8, 32>}, {pipeline_mode = #tpu.pipeline_mode<synchronous>, transform_indices = @transform_1, window_bounds = array<i64: 32, 64>}, {pipeline_mode = #tpu.pipeline_mode<synchronous>, transform_indices = @transform_2, window_bounds = array<i64: 1, 64>}, {pipeline_mode = #tpu.pipeline_mode<synchronous>, transform_indices = @transform_3, window_bounds = array<i64: 1, 16>}, {pipeline_mode = #tpu.pipeline_mode<synchronous>, transform_indices = @transform_4, window_bounds = array<i64: 1, 16>}, {transform_indices = @transform_5, window_bounds = array<i64: 16, 2, 8, 32>}]} {
    %c0 = arith.constant 0 : index
    %c0_0 = arith.constant 0 : index
    %c0_1 = arith.constant 0 : index
    %0 = vector.load %arg1[%c0, %c0_0, %c0_1] : memref<16x8x32xf32, #tpu.memory_space<vmem>>, vector<16x8x32xf32>
    %1 = vector.shape_cast %0 : vector<16x8x32xf32> to vector<128x32xf32>
    %c0_2 = arith.constant 0 : index
    %c0_3 = arith.constant 0 : index
    %2 = vector.load %arg4[%c0_2, %c0_3] : memref<1x16xf32, #tpu.memory_space<vmem>>, vector<1x16xf32>
    %c0_4 = arith.constant 0 : index
    %c0_5 = arith.constant 0 : index
    %3 = vector.load %arg5[%c0_4, %c0_5] : memref<1x16xf32, #tpu.memory_space<vmem>>, vector<1x16xf32>
    %c0_6 = arith.constant 0 : index
    %c0_7 = arith.constant 0 : index
    %4 = vector.load %arg2[%c0_6, %c0_7] : memref<32x64xf32, #tpu.memory_space<vmem>>, vector<32x32xf32>
    %c0_8 = arith.constant 0 : index
    %c0_9 = arith.constant 0 : index
    %5 = vector.load %arg3[%c0_8, %c0_9] : memref<1x64xf32, #tpu.memory_space<vmem>>, vector<1x32xf32>
    %cst = arith.constant dense<0.000000e+00> : vector<128x32xf32>
    %6 = tpu.matmul %1, %4, %cst {dimension_numbers = #tpu.dot_dimension_numbers<[1], [0], [0], [1], [0, 0, 1, 1], [], []>} : vector<128x32xf32>, vector<32x32xf32>, vector<128x32xf32> -> vector<128x32xf32>
    %7 = vector.broadcast %5 : vector<1x32xf32> to vector<128x32xf32>
    %8 = arith.addf %6, %7 : vector<128x32xf32>
    %9 = vector.shape_cast %8 : vector<128x32xf32> to vector<16x8x32xf32>
    %10 = vector.extract_strided_slice %9 {offsets = [0, 0, 0], sizes = [16, 8, 16], strides = [1, 1, 1]} : vector<16x8x32xf32> to vector<16x8x16xf32>
    %cst_10 = arith.constant dense<0.000000e+00> : vector<16x8xf32>
    %11 = vector.multi_reduction <add>, %10, %cst_10 [2] : vector<16x8x16xf32> to vector<16x8xf32>
    %12 = vector.shape_cast %11 : vector<16x8xf32> to vector<16x8x1xf32>
    %cst_11 = arith.constant 6.250000e-02 : f32
    %13 = vector.broadcast %cst_11 : f32 to vector<16x8x1xf32>
    %14 = arith.mulf %12, %13 : vector<16x8x1xf32>
    %15 = vector.broadcast %14 : vector<16x8x1xf32> to vector<16x8x16xf32>
    %16 = arith.subf %10, %15 : vector<16x8x16xf32>
    %17 = arith.mulf %16, %16 : vector<16x8x16xf32>
    %cst_12 = arith.constant dense<0.000000e+00> : vector<16x8xf32>
    %18 = vector.multi_reduction <add>, %17, %cst_12 [2] : vector<16x8x16xf32> to vector<16x8xf32>
    %19 = vector.shape_cast %18 : vector<16x8xf32> to vector<16x8x1xf32>
    %cst_13 = arith.constant 6.250000e-02 : f32
    %20 = vector.broadcast %cst_13 : f32 to vector<16x8x1xf32>
    %21 = arith.mulf %19, %20 : vector<16x8x1xf32>
    %cst_14 = arith.constant 9.99999974E-6 : f32
    %22 = vector.broadcast %cst_14 : f32 to vector<16x8x1xf32>
    %23 = arith.addf %21, %22 : vector<16x8x1xf32>
    %24 = math.rsqrt %23 : vector<16x8x1xf32>
    %25 = vector.broadcast %24 : vector<16x8x1xf32> to vector<16x8x16xf32>
    %26 = arith.mulf %16, %25 : vector<16x8x16xf32>
    %27 = vector.shape_cast %2 : vector<1x16xf32> to vector<1x1x16xf32>
    %28 = vector.broadcast %27 : vector<1x1x16xf32> to vector<16x8x16xf32>
    %29 = arith.mulf %26, %28 : vector<16x8x16xf32>
    %30 = vector.shape_cast %3 : vector<1x16xf32> to vector<1x1x16xf32>
    %31 = vector.broadcast %30 : vector<1x1x16xf32> to vector<16x8x16xf32>
    %32 = arith.addf %29, %31 : vector<16x8x16xf32>
    %33 = vector.extract_strided_slice %9 {offsets = [0, 0, 16], sizes = [16, 8, 16], strides = [1, 1, 1]} : vector<16x8x32xf32> to vector<16x8x16xf32>
    %cst_15 = arith.constant dense<0.000000e+00> : vector<16x8xf32>
    %34 = vector.multi_reduction <add>, %33, %cst_15 [2] : vector<16x8x16xf32> to vector<16x8xf32>
    %35 = vector.shape_cast %34 : vector<16x8xf32> to vector<16x8x1xf32>
    %cst_16 = arith.constant 6.250000e-02 : f32
    %36 = vector.broadcast %cst_16 : f32 to vector<16x8x1xf32>
    %37 = arith.mulf %35, %36 : vector<16x8x1xf32>
    %38 = vector.broadcast %37 : vector<16x8x1xf32> to vector<16x8x16xf32>
    %39 = arith.subf %33, %38 : vector<16x8x16xf32>
    %40 = arith.mulf %39, %39 : vector<16x8x16xf32>
    %cst_17 = arith.constant dense<0.000000e+00> : vector<16x8xf32>
    %41 = vector.multi_reduction <add>, %40, %cst_17 [2] : vector<16x8x16xf32> to vector<16x8xf32>
    %42 = vector.shape_cast %41 : vector<16x8xf32> to vector<16x8x1xf32>
    %cst_18 = arith.constant 6.250000e-02 : f32
    %43 = vector.broadcast %cst_18 : f32 to vector<16x8x1xf32>
    %44 = arith.mulf %42, %43 : vector<16x8x1xf32>
    %cst_19 = arith.constant 9.99999974E-6 : f32
    %45 = vector.broadcast %cst_19 : f32 to vector<16x8x1xf32>
    %46 = arith.addf %44, %45 : vector<16x8x1xf32>
    %47 = math.rsqrt %46 : vector<16x8x1xf32>
    %48 = vector.broadcast %47 : vector<16x8x1xf32> to vector<16x8x16xf32>
    %49 = arith.mulf %39, %48 : vector<16x8x16xf32>
    %50 = vector.shape_cast %2 : vector<1x16xf32> to vector<1x1x16xf32>
    %51 = vector.broadcast %50 : vector<1x1x16xf32> to vector<16x8x16xf32>
    %52 = arith.mulf %49, %51 : vector<16x8x16xf32>
    %53 = vector.shape_cast %3 : vector<1x16xf32> to vector<1x1x16xf32>
    %54 = vector.broadcast %53 : vector<1x1x16xf32> to vector<16x8x16xf32>
    %55 = arith.addf %52, %54 : vector<16x8x16xf32>
    %56 = tpu.concatenate %32, %55 in 2 : vector<16x8x16xf32>, vector<16x8x16xf32> -> vector<16x8x32xf32>
    %57 = vector.shape_cast %56 : vector<16x8x32xf32> to vector<16x1x8x32xf32>
    %c0_20 = arith.constant 0 : index
    %c0_21 = arith.constant 0 : index
    %c0_22 = arith.constant 0 : index
    %c0_23 = arith.constant 0 : index
    %58 = vector.load %arg6[%c0_20, %c0_21, %c0_22, %c0_23] : memref<16x2x8x32xf32, #tpu.memory_space<vmem>>, vector<16x1x8x32xf32>
    tpu.vector_store %arg6[%c0_20, %c0_21, %c0_22, %c0_23], %57 {strides = array<i32>} : memref<16x2x8x32xf32, #tpu.memory_space<vmem>>, vector<16x1x8x32xf32>,
    %c0_24 = arith.constant 0 : index
    %c32 = arith.constant 32 : index
    %59 = vector.load %arg2[%c0_24, %c32] : memref<32x64xf32, #tpu.memory_space<vmem>>, vector<32x32xf32>
    %c0_25 = arith.constant 0 : index
    %c32_26 = arith.constant 32 : index
    %60 = vector.load %arg3[%c0_25, %c32_26] : memref<1x64xf32, #tpu.memory_space<vmem>>, vector<1x32xf32>
    %cst_27 = arith.constant dense<0.000000e+00> : vector<128x32xf32>
    %61 = tpu.matmul %1, %59, %cst_27 {dimension_numbers = #tpu.dot_dimension_numbers<[1], [0], [0], [1], [0, 0, 1, 1], [], []>} : vector<128x32xf32>, vector<32x32xf32>, vector<128x32xf32> -> vector<128x32xf32>
    %62 = vector.broadcast %60 : vector<1x32xf32> to vector<128x32xf32>
    %63 = arith.addf %61, %62 : vector<128x32xf32>
    %64 = vector.shape_cast %63 : vector<128x32xf32> to vector<16x8x32xf32>
    %65 = vector.extract_strided_slice %64 {offsets = [0, 0, 0], sizes = [16, 8, 16], strides = [1, 1, 1]} : vector<16x8x32xf32> to vector<16x8x16xf32>
    %cst_28 = arith.constant dense<0.000000e+00> : vector<16x8xf32>
    %66 = vector.multi_reduction <add>, %65, %cst_28 [2] : vector<16x8x16xf32> to vector<16x8xf32>
    %67 = vector.shape_cast %66 : vector<16x8xf32> to vector<16x8x1xf32>
    %cst_29 = arith.constant 6.250000e-02 : f32
    %68 = vector.broadcast %cst_29 : f32 to vector<16x8x1xf32>
    %69 = arith.mulf %67, %68 : vector<16x8x1xf32>
    %70 = vector.broadcast %69 : vector<16x8x1xf32> to vector<16x8x16xf32>
    %71 = arith.subf %65, %70 : vector<16x8x16xf32>
    %72 = arith.mulf %71, %71 : vector<16x8x16xf32>
    %cst_30 = arith.constant dense<0.000000e+00> : vector<16x8xf32>
    %73 = vector.multi_reduction <add>, %72, %cst_30 [2] : vector<16x8x16xf32> to vector<16x8xf32>
    %74 = vector.shape_cast %73 : vector<16x8xf32> to vector<16x8x1xf32>
    %cst_31 = arith.constant 6.250000e-02 : f32
    %75 = vector.broadcast %cst_31 : f32 to vector<16x8x1xf32>
    %76 = arith.mulf %74, %75 : vector<16x8x1xf32>
    %cst_32 = arith.constant 9.99999974E-6 : f32
    %77 = vector.broadcast %cst_32 : f32 to vector<16x8x1xf32>
    %78 = arith.addf %76, %77 : vector<16x8x1xf32>
    %79 = math.rsqrt %78 : vector<16x8x1xf32>
    %80 = vector.broadcast %79 : vector<16x8x1xf32> to vector<16x8x16xf32>
    %81 = arith.mulf %71, %80 : vector<16x8x16xf32>
    %82 = vector.shape_cast %2 : vector<1x16xf32> to vector<1x1x16xf32>
    %83 = vector.broadcast %82 : vector<1x1x16xf32> to vector<16x8x16xf32>
    %84 = arith.mulf %81, %83 : vector<16x8x16xf32>
    %85 = vector.shape_cast %3 : vector<1x16xf32> to vector<1x1x16xf32>
    %86 = vector.broadcast %85 : vector<1x1x16xf32> to vector<16x8x16xf32>
    %87 = arith.addf %84, %86 : vector<16x8x16xf32>
    %88 = vector.extract_strided_slice %64 {offsets = [0, 0, 16], sizes = [16, 8, 16], strides = [1, 1, 1]} : vector<16x8x32xf32> to vector<16x8x16xf32>
    %cst_33 = arith.constant dense<0.000000e+00> : vector<16x8xf32>
    %89 = vector.multi_reduction <add>, %88, %cst_33 [2] : vector<16x8x16xf32> to vector<16x8xf32>
    %90 = vector.shape_cast %89 : vector<16x8xf32> to vector<16x8x1xf32>
    %cst_34 = arith.constant 6.250000e-02 : f32
    %91 = vector.broadcast %cst_34 : f32 to vector<16x8x1xf32>
    %92 = arith.mulf %90, %91 : vector<16x8x1xf32>
    %93 = vector.broadcast %92 : vector<16x8x1xf32> to vector<16x8x16xf32>
    %94 = arith.subf %88, %93 : vector<16x8x16xf32>
    %95 = arith.mulf %94, %94 : vector<16x8x16xf32>
    %cst_35 = arith.constant dense<0.000000e+00> : vector<16x8xf32>
    %96 = vector.multi_reduction <add>, %95, %cst_35 [2] : vector<16x8x16xf32> to vector<16x8xf32>
    %97 = vector.shape_cast %96 : vector<16x8xf32> to vector<16x8x1xf32>
    %cst_36 = arith.constant 6.250000e-02 : f32
    %98 = vector.broadcast %cst_36 : f32 to vector<16x8x1xf32>
    %99 = arith.mulf %97, %98 : vector<16x8x1xf32>
    %cst_37 = arith.constant 9.99999974E-6 : f32
    %100 = vector.broadcast %cst_37 : f32 to vector<16x8x1xf32>
    %101 = arith.addf %99, %100 : vector<16x8x1xf32>
    %102 = math.rsqrt %101 : vector<16x8x1xf32>
    %103 = vector.broadcast %102 : vector<16x8x1xf32> to vector<16x8x16xf32>
    %104 = arith.mulf %94, %103 : vector<16x8x16xf32>
    %105 = vector.shape_cast %2 : vector<1x16xf32> to vector<1x1x16xf32>
    %106 = vector.broadcast %105 : vector<1x1x16xf32> to vector<16x8x16xf32>
    %107 = arith.mulf %104, %106 : vector<16x8x16xf32>
    %108 = vector.shape_cast %3 : vector<1x16xf32> to vector<1x1x16xf32>
    %109 = vector.broadcast %108 : vector<1x1x16xf32> to vector<16x8x16xf32>
    %110 = arith.addf %107, %109 : vector<16x8x16xf32>
    %111 = tpu.concatenate %87, %110 in 2 : vector<16x8x16xf32>, vector<16x8x16xf32> -> vector<16x8x32xf32>
    %112 = vector.shape_cast %111 : vector<16x8x32xf32> to vector<16x1x8x32xf32>
    %c0_38 = arith.constant 0 : index
    %c1 = arith.constant 1 : index
    %c0_39 = arith.constant 0 : index
    %c0_40 = arith.constant 0 : index
    %113 = vector.load %arg6[%c0_38, %c1, %c0_39, %c0_40] : memref<16x2x8x32xf32, #tpu.memory_space<vmem>>, vector<16x1x8x32xf32>
    tpu.vector_store %arg6[%c0_38, %c1, %c0_39, %c0_40], %112 {strides = array<i32>} : memref<16x2x8x32xf32, #tpu.memory_space<vmem>>, vector<16x1x8x32xf32>,
    return
  }
  func.func @transform_0(%arg0: i32) -> (i32, i32, i32) {
    %c0_i32 = arith.constant 0 : i32
    %c0_i32_0 = arith.constant 0 : i32
    %c0_i32_1 = arith.constant 0 : i32
    return %arg0, %c0_i32, %c0_i32_0 : i32, i32, i32
  }
  func.func @transform_1(%arg0: i32) -> (i32, i32) {
    %c0_i32 = arith.constant 0 : i32
    %c0_i32_0 = arith.constant 0 : i32
    %c0_i32_1 = arith.constant 0 : i32
    return %c0_i32, %c0_i32_0 : i32, i32
  }
  func.func @transform_2(%arg0: i32) -> (i32, i32) {
    %c0_i32 = arith.constant 0 : i32
    %c0_i32_0 = arith.constant 0 : i32
    %c0_i32_1 = arith.constant 0 : i32
    return %c0_i32, %c0_i32_0 : i32, i32
  }
  func.func @transform_3(%arg0: i32) -> (i32, i32) {
    %c0_i32 = arith.constant 0 : i32
    %c0_i32_0 = arith.constant 0 : i32
    %c0_i32_1 = arith.constant 0 : i32
    return %c0_i32, %c0_i32_0 : i32, i32
  }
  func.func @transform_4(%arg0: i32) -> (i32, i32) {
    %c0_i32 = arith.constant 0 : i32
    %c0_i32_0 = arith.constant 0 : i32
    %c0_i32_1 = arith.constant 0 : i32
    return %c0_i32, %c0_i32_0 : i32, i32
  }
  func.func @transform_5(%arg0: i32) -> (i32, i32, i32, i32) {
    %c0_i32 = arith.constant 0 : i32
    %c0_i32_0 = arith.constant 0 : i32
    %c0_i32_1 = arith.constant 0 : i32
    %c0_i32_2 = arith.constant 0 : i32
    return %arg0, %c0_i32, %c0_i32_0, %c0_i32_1 : i32, i32, i32, i32
  }
}

</mosaic_0001>

<bundles_post_ra>
// kernel: tpu_custom_call.1
= control target key start
LH: loop header
LB: loop body
LE: loop exit
PB: predicated region body
PF: predicated region fallthrough
CT: control target
= control target key end

     0   :  { %10 = vsyncpa [#allocation3], 0  ;;  %s3804_s0 = inlined_call_operand.hbm [shape: f32[16,8,32], index: 0, kind: input, shape index: {}]   ;;  %s3805_s1 = inlined_call_operand.hbm [shape: f32[32,64], index: 1, kind: input, shape index: {}]   ;;  %s3806_s2 = inlined_call_operand.vmem [shape: f32[1,64], index: 2, kind: input, shape index: {}]   ;;  %s3807_s3 = inlined_call_operand.vmem [shape: f32[1,16], index: 3, kind: input, shape index: {}]   ;;  %s3808_s4 = inlined_call_operand.vmem [shape: f32[1,16], index: 4, kind: input, shape index: {}]   ;;  %s3809_s5 = inlined_call_operand.hbm [shape: f32[16,2,8,32], index: 5, kind: output, shape index: {}]  }
   0x1   :  { %11 = vsyncpa [#allocation6], 0 }
   0x2   :  { %12 = vsyncpa [#allocation4], 0  ;;  %s2138_s18 = smov [#allocation2]   ;;  %s2066_s22 = scalar_lea.hbm %s3804_s0, 2048 }
   0x3   :  { %s18_s19 = sshll.u32 %s2138_s18, 4  ;;  %p2067_p0 = scmp.ne.s32.totalorder %s3804_s0, %s2066_s22  ;;  %s19_s19 = int_to_ptr.vmem [resolvable:$true] %s18_s19 }
   0x4   :  { %p2070_p1 = scmp.lt.u32.totalorder %s2066_s22, %s3804_s0 }
   0x6   :  { %p2072_p2 = pnand %p2070_p1, %p2067_p0 }
   0x8   :  { %2075 = shalt.err (!%p2072_p2)
}
   0x9   :  { %s2076_s27 = scalar_lea.vmem %s19_s19, 2048  ;;  %p2081_p4 = scmp.lt.s32.totalorder %s19_s19, %s19_s19 }
   0xa   :  { %p2077_p3 = scmp.ne.s32.totalorder %s19_s19, %s2076_s27  ;;  %p2082_p5 = scmp.lt.s32.totalorder %s2076_s27, %s2076_s27 }
   0xc   :  { %p2083_p6 = por %p2082_p5, %p2081_p4 }
   0xe   :  { %p2084_p7 = pnand %p2083_p6, %p2077_p3 }
  0x10   :  { %2087 = shalt.err (!%p2084_p7)
}
  0x11   :  { %s2139_s28 = smov 128   ;;  %s2140_s29 = smov 8  }
  0x12   :  { %24 = dma.hbm_to_vmem [thread:$0]  %s3804_s0, 2048, %s19_s19, [#allocation3], %s2139_s28, %s2139_s28, %s2140_s29  }
  0x13   :  { %s2141_s7 = smov [#allocation5]   ;;  %s2088_s11 = scalar_lea.hbm %s3805_s1, 512 }
  0x14   :  { %s30_s8 = sshll.u32 %s2141_s7, 4  ;;  %p2089_p8 = scmp.ne.s32.totalorder %s3805_s1, %s2088_s11  ;;  %s31_s8 = int_to_ptr.vmem [resolvable:$true] %s30_s8 }
  0x15   :  { %p2092_p9 = scmp.lt.u32.totalorder %s2088_s11, %s3805_s1 }
  0x17   :  { %p2094_p10 = pnand %p2092_p9, %p2089_p8 }
  0x19   :  { %2097 = shalt.err (!%p2094_p10)
}
  0x1a   :  { %s2098_s16 = scalar_lea.vmem %s31_s8, 512  ;;  %p2103_p12 = scmp.lt.s32.totalorder %s31_s8, %s31_s8 }
  0x1b   :  { %p2099_p11 = scmp.ne.s32.totalorder %s31_s8, %s2098_s16  ;;  %p2104_p13 = scmp.lt.s32.totalorder %s2098_s16, %s2098_s16 }
  0x1d   :  { %p2105_p0 = por %p2104_p13, %p2103_p12 }
  0x1f   :  { %p2106_p1 = pnand %p2105_p0, %p2099_p11 }
  0x21   :  { %2109 = shalt.err (!%p2106_p1)
}
  0x22   :  { %36 = dma.hbm_to_vmem [thread:$0]  %s3805_s1, 512, %s31_s8, [#allocation6], %s2139_s28, %s2139_s28, %s2140_s29  }
  0x23   :  { %2132 = dma.done.wait [#allocation3], 2048  }
  0x24   :  { %2133 = vsyncadd [#allocation3], 4294965248 }
  0x25   :  { %2134 = dma.done.wait [#allocation6], 512  }
  0x26   :  { %2135 = vsyncadd [#allocation6], 4294966784  ;;  %vm78_vm0 = vcmask 261120   ;;  %v67_v0 = vld [vmem:[#allocation5] sm:$0xff]  ;;  %v68_v1 = vld [vmem:[#allocation5 + $0x8] sm:$0xff]  ;;  %s2142_s18 = smov 96  }
  0x27   :  { %v69_v2 = vld [vmem:[#allocation5 + $0x10] sm:$0xff]  ;;  %v1904_v3 = vpack.c.bf16 %v68_v1, %v67_v0  ;;  %v70_v4 = vld [vmem:[#allocation5 + $0x18] sm:$0xff]  ;;  %v49_v5 = vld [vmem:[#allocation2] sm:$0xff]  ;;  %v1928_v6 = vpack.i.bf16 %v68_v1, %v67_v0  ;;  %vm272_vm1 = vcmask 130048   ;;  %s2144_s22 = smov 16  }
  0x28   :  { %v1908_v7 = vpack.c.bf16 %v70_v4, %v69_v2  ;;  %1848 = vmatprep.mubr.msk.f32.mxu0 %vm78_vm0, %v49_v5  ;;  %1880 = vmatprep.mubr.msk.f32.mxu1 %vm78_vm0, %v49_v5  ;;  %v1933_v8 = vpack.i.bf16 %v70_v4, %v69_v2  ;;  %v50_v9 = vld [vmem:[#allocation2 + $0x8] sm:$0xff]  ;;  %v2211_v10 = vld [vmem:[%s3806_s2] ss:$0 sm:$0xff]  ;;  %v51_v11 = vld [vmem:[#allocation2 + $0x10] sm:$0xff]  ;;  %s2143_s2 = smov 112  }
  0x29   :  { %1905 = vmatprep.subr.bf16.mxu0 %v1904_v3  ;;  %1929 = vrot.lane.b32.xlu0 %v1928_v6, %s2142_s18  ;;  %v52_v12 = vld [vmem:[#allocation2 + $0x18] sm:$0xff]  ;;  %v53_v13 = vld [vmem:[#allocation2 + $0x20] sm:$0xff]  ;;  %v54_v14 = vld [vmem:[#allocation2 + $0x28] sm:$0xff] }
  0x2a   :  { %1907 = vmatpush3.bf16.msra.mxu0 %v1904_v3  ;;  %v55_v15 = vld [vmem:[#allocation2 + $0x30] sm:$0xff]  ;;  %v56_v16 = vld [vmem:[#allocation2 + $0x38] sm:$0xff]  ;;  %v57_v17 = vld [vmem:[#allocation2 + $0x40] sm:$0xff] }
  0x2b   :  { %1909 = vmatprep.subr.bf16.mxu0 %v1908_v7  ;;  %v58_v18 = vld [vmem:[#allocation2 + $0x48] sm:$0xff]  ;;  %v59_v19 = vld [vmem:[#allocation2 + $0x50] sm:$0xff]  ;;  %v60_v20 = vld [vmem:[#allocation2 + $0x58] sm:$0xff] }
  0x2c   :  { %v61_v21 = vld [vmem:[#allocation2 + $0x60] sm:$0xff]  ;;  %v62_v22 = vld [vmem:[#allocation2 + $0x68] sm:$0xff]  ;;  %v63_v23 = vld [vmem:[#allocation2 + $0x70] sm:$0xff] }
  0x2d   :  { %1934 = vrot.lane.b32.xlu0 %v1933_v8, %s2142_s18  ;;  %v64_v24 = vld [vmem:[#allocation2 + $0x78] sm:$0xff] }
  0x2e   :  { %1911 = vmatpush3.bf16.msra.mxu0 %v1908_v7 }
  0x31   :  { %1849 = vmatmul.mubr.msk.f32.vlgmr.msra.gmra.mrb[0].mxu0 %vm78_vm0, %v50_v9  ;;  %957 = vrot.lane.b32.xlu0 %v2211_v10, %s2142_s18 }
  0x32   :  { %1851 = vmatprep.mubr.msk.f32.mxu0 %vm78_vm0, %v51_v11 }
  0x35   :  { %1852 = vmatmul.mubr.msk.f32.gmra.mrb[2].mxu0 %vm78_vm0, %v52_v12 }
  0x36   :  { %1854 = vmatprep.mubr.msk.f32.mxu0 %vm78_vm0, %v53_v13 }
  0x39   :  { %1855 = vmatmul.mubr.msk.f32.gmra.mrb[4].mxu0 %vm78_vm0, %v54_v14 }
  0x3a   :  { %1857 = vmatprep.mubr.msk.f32.mxu0 %vm78_vm0, %v55_v15 }
  0x3d   :  { %1858 = vmatmul.mubr.msk.f32.gmra.mrb[6].mxu0 %vm78_vm0, %v56_v16 }
  0x3e   :  { %1860 = vmatprep.mubr.msk.f32.mxu0 %vm78_vm0, %v57_v17 }
  0x41   :  { %1861 = vmatmul.mubr.msk.f32.gmra.mrb[8].mxu0 %vm78_vm0, %v58_v18 }
  0x42   :  { %1863 = vmatprep.mubr.msk.f32.mxu0 %vm78_vm0, %v59_v19 }
  0x45   :  { %1864 = vmatmul.mubr.msk.f32.gmra.mrb[10].mxu0 %vm78_vm0, %v60_v20 }
  0x46   :  { %1866 = vmatprep.mubr.msk.f32.mxu0 %vm78_vm0, %v61_v21 }
  0x49   :  { %1867 = vmatmul.mubr.msk.f32.gmra.mrb[12].mxu0 %vm78_vm0, %v62_v22 }
  0x4a   :  { %1869 = vmatprep.mubr.msk.f32.mxu0 %vm78_vm0, %v63_v23 }
  0x4d   :  { %1870 = vmatmul.mubr.msk.f32.gmra.mrb[14].mxu0 %vm78_vm0, %v64_v24 }
  0x9b   :  { %v1930_v25 = vpop.permute.xlu0 %1929 }
  0x9c   :  { %v1932_v26 = vunpack.i.h.bf16 %v1930_v25  ;;  %v1931_v27 = vunpack.i.l.bf16 %v1930_v25 }
  0x9e   :  { %v1912_v28 = vpack.c.bf16 %v1932_v26, %v1931_v27 }
  0x9f   :  { %v1935_v29 = vpop.permute.xlu0 %1934 }
  0xa0   :  { %v1937_v30 = vunpack.i.h.bf16 %v1935_v29  ;;  %v1936_v31 = vunpack.i.l.bf16 %v1935_v29  ;;  %1913 = vmatprep.subr.bf16.mxu1 %v1912_v28 }
  0xa1   :  { %1915 = vmatpush3.bf16.msra.mxu1 %v1912_v28 }
  0xa2   :  { %v1916_v32 = vpack.c.bf16 %v1937_v30, %v1936_v31 }
  0xa3   :  { %v2357_v26 = vpop.permute.xlu0 %957 }
  0xa4   :  { %1917 = vmatprep.subr.bf16.mxu1 %v1916_v32 }
  0xa5   :  { %1919 = vmatpush3.bf16.msra.mxu1 %v1916_v32 }
  0xa8   :  { %1881 = vmatmul.mubr.msk.f32.vlgmr.msra.gmra.mrb[0].mxu1 %vm78_vm0, %v50_v9 }
  0xa9   :  { %1883 = vmatprep.mubr.msk.f32.mxu1 %vm78_vm0, %v51_v11 }
  0xac   :  { %1884 = vmatmul.mubr.msk.f32.gmra.mrb[2].mxu1 %vm78_vm0, %v52_v12 }
  0xad   :  { %1886 = vmatprep.mubr.msk.f32.mxu1 %vm78_vm0, %v53_v13 }
  0xb0   :  { %1887 = vmatmul.mubr.msk.f32.gmra.mrb[4].mxu1 %vm78_vm0, %v54_v14 }
  0xb1   :  { %1889 = vmatprep.mubr.msk.f32.mxu1 %vm78_vm0, %v55_v15 }
  0xb4   :  { %1890 = vmatmul.mubr.msk.f32.gmra.mrb[6].mxu1 %vm78_vm0, %v56_v16 }
  0xb5   :  { %1892 = vmatprep.mubr.msk.f32.mxu1 %vm78_vm0, %v57_v17 }
  0xb8   :  { %1893 = vmatmul.mubr.msk.f32.gmra.mrb[8].mxu1 %vm78_vm0, %v58_v18 }
  0xb9   :  { %1895 = vmatprep.mubr.msk.f32.mxu1 %vm78_vm0, %v59_v19 }
  0xbc   :  { %1896 = vmatmul.mubr.msk.f32.gmra.mrb[10].mxu1 %vm78_vm0, %v60_v20 }
  0xbd   :  { %1898 = vmatprep.mubr.msk.f32.mxu1 %vm78_vm0, %v61_v21 }
  0xc0   :  { %1899 = vmatmul.mubr.msk.f32.gmra.mrb[12].mxu1 %vm78_vm0, %v62_v22 }
  0xc1   :  { %1901 = vmatprep.mubr.msk.f32.mxu1 %vm78_vm0, %v63_v23 }
  0xc4   :  { %1902 = vmatmul.mubr.msk.f32.gmra.mrb[14].mxu1 %vm78_vm0, %v64_v24 }
 0x104   :  { %v1850_v33 = vpop.f32.mrb[0].mxu0 }
 0x105   :  { %v2245_v34 = vadd.f32 %v1850_v33, %v2211_v10  ;;  %v193_v35 = vpop.f32.mrb[1].mxu0 }
 0x106   :  { %v2254_v45 = vadd.f32 %v2211_v10, %v193_v35 }
 0x107   :  { %543 = vrot.lane.b32.xlu0 %v2245_v34, %s2143_s2  ;;  %v276_v36 = vsel %vm272_vm1, %v2245_v34, 0.0 }
 0x108   :  { %277 = vadd.xlane.f32.xlu1 %v276_v36  ;;  %v1853_v37 = vpop.f32.mrb[2].mxu0  ;;  %v273_v54 = vsel %vm272_vm1, %v2254_v45, 0.0 }
 0x109   :  { %v203_v38 = vpop.f32.mrb[3].mxu0  ;;  %v2281_v57 = vadd.f32 %v1853_v37, %v2211_v10 }
 0x10a   :  { %v2259_v50 = vadd.f32 %v2211_v10, %v203_v38 }
 0x10b   :  { %v282_v61 = vsel %vm272_vm1, %v2281_v57, 0.0 }
 0x10c   :  { %v1856_v39 = vpop.f32.mrb[4].mxu0  ;;  %v279_v51 = vsel %vm272_vm1, %v2259_v50, 0.0 }
 0x10d   :  { %v213_v40 = vpop.f32.mrb[5].mxu0  ;;  %v2298_v0 = vadd.f32 %v1856_v39, %v2211_v10 }
 0x10e   :  { %v2264_v52 = vadd.f32 %v2211_v10, %v213_v40 }
 0x10f   :  { %v288_v11 = vsel %vm272_vm1, %v2298_v0, 0.0 }
 0x110   :  { %v1859_v41 = vpop.f32.mrb[6].mxu0  ;;  %v285_v12 = vsel %vm272_vm1, %v2264_v52, 0.0 }
 0x111   :  { %v223_v42 = vpop.f32.mrb[7].mxu0  ;;  %v2345_v22 = vadd.f32 %v1859_v41, %v2211_v10 }
 0x112   :  { %v2269_v53 = vadd.f32 %v2211_v10, %v223_v42 }
 0x113   :  { %v294_v28 = vsel %vm272_vm1, %v2345_v22, 0.0 }
 0x114   :  { %v2251_v43 = vpop.f32.mrb[8].mxu0  ;;  %v291_v29 = vsel %vm272_vm1, %v2269_v53, 0.0 }
 0x115   :  { %v233_v44 = vpop.f32.mrb[9].mxu0  ;;  %v2372_v30 = vadd.f32 %v2251_v43, %v2211_v10 }
 0x116   :  { %v2276_v55 = vadd.f32 %v2211_v10, %v233_v44 }
 0x118   :  { %v1865_v46 = vpop.f32.mrb[10].mxu0  ;;  %v297_v37 = vsel %vm272_vm1, %v2276_v55, 0.0 }
 0x119   :  { %541 = vrot.lane.b32.xlu1 %v2254_v45, %s2143_s2  ;;  %v243_v47 = vpop.f32.mrb[11].mxu0  ;;  %v2286_v59 = vadd.f32 %v1865_v46, %v2211_v10 }
 0x11a   :  { %v2293_v62 = vadd.f32 %v2211_v10, %v243_v47 }
 0x11b   :  { %v306_v60 = vsel %vm272_vm1, %v2286_v59, 0.0 }
 0x11c   :  { %v1868_v48 = vpop.f32.mrb[12].mxu0  ;;  %v303_v46 = vsel %vm272_vm1, %v2293_v62, 0.0 }
 0x11d   :  { %v253_v49 = vpop.f32.mrb[13].mxu0  ;;  %v2307_v3 = vadd.f32 %v1868_v48, %v2211_v10 }
 0x11e   :  { %v2318_v9 = vadd.f32 %v2211_v10, %v253_v49 }
 0x11f   :  { %v312_v4 = vsel %vm272_vm1, %v2307_v3, 0.0 }
 0x120   :  { %v1871_v56 = vpop.f32.mrb[14].mxu0 }
 0x121   :  { %v263_v58 = vpop.f32.mrb[15].mxu0  ;;  %v2350_v23 = vadd.f32 %v1871_v56, %v2211_v10 }
 0x122   :  { %v2355_v25 = vadd.f32 %v2211_v10, %v263_v58  ;;  %v300_v10 = vsel %vm272_vm1, %v2372_v30, 0.0 }
 0x123   :  { %v318_v24 = vsel %vm272_vm1, %v2350_v23, 0.0 }
 0x126   :  { %280 = vadd.xlane.f32.xlu0 %v279_v51 }
 0x13c   :  { %549 = vrot.lane.b32.xlu0 %v2264_v52, %s2143_s2 }
 0x13d   :  { %274 = vadd.xlane.f32.xlu1 %v273_v54  ;;  %v309_v54 = vsel %vm272_vm1, %v2318_v9, 0.0 }
 0x140   :  { %553 = vrot.lane.b32.xlu0 %v2269_v53, %s2143_s2 }
 0x144   :  { %557 = vrot.lane.b32.xlu0 %v2276_v55, %s2143_s2 }
 0x14e   :  { %547 = vrot.lane.b32.xlu1 %v2281_v57, %s2143_s2 }
 0x163   :  { %307 = vadd.xlane.f32.xlu0 %v306_v60 }
 0x172   :  { %283 = vadd.xlane.f32.xlu1 %v282_v61 }
 0x179   :  { %561 = vrot.lane.b32.xlu0 %v2293_v62, %s2143_s2 }
 0x17b   :  { %v1882_v63 = vpop.f32.mrb[0].mxu1 }
 0x17c   :  { %v2304_v1 = vpop.f32.mrb[1].mxu1  ;;  %v2362_v27 = vadd.f32 %v1882_v63, %v2357_v26 }
 0x17e   :  { %v1108_v32 = vsel %vm272_vm1, %v2362_v27, 0.0 }
 0x17f   :  { %v1885_v2 = vpop.f32.mrb[2].mxu1 }
 0x180   :  { %v2311_v5 = vpop.f32.mrb[3].mxu1  ;;  %v2382_v36 = vadd.f32 %v1885_v2, %v2357_v26 }
 0x182   :  { %v1114_v42 = vsel %vm272_vm1, %v2382_v36, 0.0 }
 0x183   :  { %545 = vrot.lane.b32.xlu1 %v2259_v50, %s2143_s2  ;;  %v1888_v6 = vpop.f32.mrb[4].mxu1 }
 0x184   :  { %v2313_v7 = vpop.f32.mrb[5].mxu1  ;;  %v2403_v47 = vadd.f32 %v1888_v6, %v2357_v26  ;;  %v544_v6 = vpop.permute.xlu0 %543 }
 0x186   :  { %3883 = vst [vmem:[#allocation11_spill] sm:$0xff] %v2403_v47  ;;  %v1120_v51 = vsel %vm272_vm1, %v2403_v47, 0.0 }
 0x187   :  { %551 = vrot.lane.b32.xlu1 %v2298_v0, %s2143_s2  ;;  %v2315_v8 = vpop.f32.mrb[6].mxu1 }
 0x188   :  { %v2326_v13 = vpop.f32.mrb[7].mxu1  ;;  %v2416_v56 = vadd.f32 %v2315_v8, %v2357_v26  ;;  %v592_v8 = vsel %vm272_vm1, %v544_v6, 0.0 }
 0x189   :  { %v2506_v6 = vadd.f32 %v2326_v13, %v2357_v26 }
 0x18a   :  { %3884 = vst [vmem:[#allocation12_spill] sm:$0xff] %v2416_v56  ;;  %v1126_v2 = vsel %vm272_vm1, %v2416_v56, 0.0 }
 0x18b   :  { %v2328_v14 = vpop.f32.mrb[8].mxu1 }
 0x18c   :  { %v2330_v15 = vpop.f32.mrb[9].mxu1 }
 0x18f   :  { %v2332_v16 = vpop.f32.mrb[10].mxu1 }
 0x190   :  { %v2334_v17 = vpop.f32.mrb[11].mxu1 }
 0x193   :  { %v2336_v18 = vpop.f32.mrb[12].mxu1 }
 0x194   :  { %v2338_v19 = vpop.f32.mrb[13].mxu1 }
 0x195   :  { %v2376_v31 = vpop.xlane.xlu1 %277 }
 0x197   :  { %v2340_v20 = vpop.f32.mrb[14].mxu1 }
 0x198   :  { %313 = vadd.xlane.f32.xlu0 %v312_v4  ;;  %v2342_v21 = vpop.f32.mrb[15].mxu1  ;;  %v315_v4 = vsel %vm272_vm1, %v2355_v25, 0.0 }
 0x199   :  { %v542_v33 = vpop.permute.xlu1 %541 }
 0x19a   :  { %v589_v35 = vsel %vm272_vm1, %v542_v33, 0.0 }
 0x1ab   :  { %289 = vadd.xlane.f32.xlu1 %v288_v11  ;;  %v2434_v11 = vadd.f32 %v2328_v14, %v2357_v26 }
 0x1ad   :  { %3885 = vst [vmem:[#allocation13_spill] sm:$0xff] %v2434_v11  ;;  %v1132_v14 = vsel %vm272_vm1, %v2434_v11, 0.0 }
 0x1ae   :  { %565 = vrot.lane.b32.xlu0 %v2318_v9, %s2143_s2 }
 0x1af   :  { %286 = vadd.xlane.f32.xlu1 %v285_v12  ;;  %v2440_v12 = vadd.f32 %v2304_v1, %v2357_v26  ;;  %v2453_v1 = vadd.f32 %v2332_v16, %v2357_v26 }
 0x1b1   :  { %v1105_v33 = vsel %vm272_vm1, %v2440_v12, 0.0  ;;  %3886 = vst [vmem:[#allocation14_spill] sm:$0xff] %v2453_v1 }
 0x1b3   :  { %v2467_v16 = vpop.xlane.xlu0 %280 }
 0x1c0   :  { %555 = vrot.lane.b32.xlu1 %v2345_v22, %s2143_s2 }
 0x1ca   :  { %v2392_v38 = vpop.xlane.xlu1 %274 }
 0x1cd   :  { %319 = vadd.xlane.f32.xlu0 %v318_v24 }
 0x1ce   :  { %v548_v39 = vpop.permute.xlu1 %547 }
 0x1cf   :  { %v598_v41 = vsel %vm272_vm1, %v548_v39, 0.0  ;;  %v550_v39 = vpop.permute.xlu0 %549 }
 0x1e3   :  { %569 = vrot.lane.b32.xlu0 %v2355_v25, %s2143_s2 }
 0x1e4   :  { %295 = vadd.xlane.f32.xlu1 %v294_v28 }
 0x1e7   :  { %1363 = vrot.lane.b32.xlu0 %v2362_v27, %s2143_s2 }
 0x1e8   :  { %292 = vadd.xlane.f32.xlu1 %v291_v29 }
 0x1f9   :  { %559 = vrot.lane.b32.xlu1 %v2372_v30, %s2143_s2 }
 0x1ff   :  { %v2394_v40 = vpop.xlane.xlu1 %283 }
 0x200   :  { %v324_v13 = vmul.f32 0.0625, %v2394_v40 }
 0x203   :  { %v546_v43 = vpop.permute.xlu1 %545 }
 0x204   :  { %v595_v44 = vsel %vm272_vm1, %v546_v43, 0.0 }
 0x206   :  { %1109 = vadd.xlane.f32.xlu0 %v1108_v32 }
 0x207   :  { %v552_v48 = vpop.permute.xlu1 %551 }
 0x208   :  { %v604_v49 = vsel %vm272_vm1, %v552_v48, 0.0 }
 0x20a   :  { %590 = vadd.xlane.f32.xlu0 %v589_v35  ;;  %v2457_v35 = vadd.f32 %v2311_v5, %v2357_v26  ;;  %v2471_v5 = vadd.f32 %v2336_v18, %v2357_v26 }
 0x20c   :  { %3887 = vst [vmem:[#allocation15_spill] sm:$0xff] %v2471_v5 }
 0x21d   :  { %301 = vadd.xlane.f32.xlu1 %v300_v10  ;;  %v1138_v10 = vsel %vm272_vm1, %v2453_v1, 0.0 }
 0x220   :  { %1367 = vrot.lane.b32.xlu0 %v2382_v36, %s2143_s2 }
 0x221   :  { %298 = vadd.xlane.f32.xlu1 %v297_v37  ;;  %v1111_v37 = vsel %vm272_vm1, %v2457_v35, 0.0 }
 0x232   :  { %563 = vrot.lane.b32.xlu1 %v2286_v59, %s2143_s2 }
 0x238   :  { %v2422_v58 = vpop.xlane.xlu1 %289 }
 0x23c   :  { %v2424_v60 = vpop.xlane.xlu1 %286 }
 0x23f   :  { %599 = vadd.xlane.f32.xlu0 %v598_v41  ;;  %v2475_v41 = vadd.f32 %v2313_v7, %v2357_v26 }
 0x240   :  { %v556_v61 = vpop.permute.xlu1 %555 }
 0x241   :  { %v610_v63 = vsel %vm272_vm1, %v556_v61, 0.0 }
 0x243   :  { %1115 = vadd.xlane.f32.xlu0 %v1114_v42  ;;  %v554_v42 = vpop.permute.xlu0 %553 }
 0x247   :  { %596 = vadd.xlane.f32.xlu0 %v595_v44  ;;  %v2481_v43 = vpop.permute.xlu0 %557 }
 0x24b   :  { %v308_v44 = vpop.xlane.xlu0 %307 }
 0x256   :  { %304 = vadd.xlane.f32.xlu1 %v303_v46  ;;  %v2483_v46 = vpop.permute.xlu0 %561 }
 0x25a   :  { %v314_v48 = vpop.xlane.xlu0 %313 }
 0x25d   :  { %1371 = vrot.lane.b32.xlu0 %v2403_v47, %s2143_s2 }
 0x25e   :  { %v2485_v18 = vpop.permute.xlu0 %565 }
 0x262   :  { %v320_v7 = vpop.xlane.xlu0 %319 }
 0x266   :  { %v2492_v61 = vpop.permute.xlu0 %569 }
 0x267   :  { %567 = vrot.lane.b32.xlu1 %v2307_v3, %s2143_s2 }
 0x271   :  { %v296_v24 = vpop.xlane.xlu1 %295 }
 0x272   :  { %v328_v40 = vmul.f32 0.0625, %v296_v24 }
 0x275   :  { %v2444_v28 = vpop.xlane.xlu1 %292 }
 0x279   :  { %v560_v29 = vpop.permute.xlu1 %559 }
 0x27a   :  { %v616_v32 = vsel %vm272_vm1, %v560_v29, 0.0 }
 0x27c   :  { %605 = vadd.xlane.f32.xlu0 %v604_v49  ;;  %v1144_v49 = vsel %vm272_vm1, %v2471_v5, 0.0 }
 0x280   :  { %1121 = vadd.xlane.f32.xlu0 %v1120_v51  ;;  %v601_v51 = vsel %vm272_vm1, %v550_v39, 0.0 }
 0x28b   :  { %310 = vadd.xlane.f32.xlu1 %v309_v54  ;;  %v1117_v54 = vsel %vm272_vm1, %v2475_v41, 0.0 }
 0x296   :  { %1375 = vrot.lane.b32.xlu0 %v2416_v56, %s2143_s2 }
 0x29c   :  { %571 = vrot.lane.b32.xlu1 %v2350_v23, %s2143_s2 }
 0x2b5   :  { %611 = vadd.xlane.f32.xlu0 %v610_v63  ;;  %v2494_v63 = vpop.permute.xlu0 %1363 }
 0x2b9   :  { %1127 = vadd.xlane.f32.xlu0 %v1126_v2  ;;  %v2498_v2 = vadd.f32 %v2340_v20, %v2357_v26  ;;  %v302_v20 = vpop.xlane.xlu1 %301 }
 0x2ba   :  { %v330_v56 = vmul.f32 0.0625, %v302_v20 }
 0x2bb   :  { %3888 = vst [vmem:[#allocation16_spill] sm:$0xff] %v2498_v2 }
 0x2bc   :  { %v2557_v47 = vsub.f32 %v2372_v30, %v330_v56 }
 0x2be   :  { %3893 = vst [vmem:[#allocation21_spill] sm:$0xff] %v2557_v47 }
 0x2c0   :  { %316 = vadd.xlane.f32.xlu1 %v315_v4  ;;  %v2502_v4 = vpop.xlane.xlu0 %1109 }
 0x2c4   :  { %593 = vadd.xlane.f32.xlu1 %v592_v8  ;;  %v2510_v8 = vpop.xlane.xlu0 %590 }
 0x2c8   :  { %v2512_v29 = vpop.permute.xlu0 %1367 }
 0x2cf   :  { %1379 = vrot.lane.b32.xlu0 %v2434_v11, %s2143_s2 }
 0x2d5   :  { %1361 = vrot.lane.b32.xlu1 %v2440_v12, %s2143_s2 }
 0x2ee   :  { %617 = vadd.xlane.f32.xlu0 %v616_v32  ;;  %v2514_v32 = vpop.xlane.xlu0 %599 }
 0x2f2   :  { %1133 = vadd.xlane.f32.xlu0 %v1132_v14  ;;  %v2516_v14 = vpop.xlane.xlu0 %1115 }
 0x2f6   :  { %v2525_v39 = vpop.xlane.xlu0 %596 }
 0x2f9   :  { %1106 = vadd.xlane.f32.xlu1 %v1105_v33  ;;  %v322_v33 = vmul.f32 0.0625, %v2376_v31 }
 0x308   :  { %1383 = vrot.lane.b32.xlu0 %v2453_v1, %s2143_s2 }
 0x30a   :  { %1365 = vrot.lane.b32.xlu1 %v2457_v35, %s2143_s2 }
 0x327   :  { %1139 = vadd.xlane.f32.xlu0 %v1138_v10  ;;  %v2519_v10 = vpop.xlane.xlu1 %298 }
 0x32e   :  { %1112 = vadd.xlane.f32.xlu1 %v1111_v37  ;;  %v2522_v37 = vsub.f32 %v2245_v34, %v322_v33  ;;  %v1372_v33 = vpop.permute.xlu0 %1371 }
 0x330   :  { %3889 = vst [vmem:[#allocation17_spill] sm:$0xff] %v2522_v37  ;;  %v354_v31 = vmul.f32 %v2522_v37, %v2522_v37  ;;  %v2548_v37 = vsub.f32 %v2345_v22, %v328_v40 }
 0x332   :  { %v372_v11 = vsel %vm272_vm1, %v354_v31, 0.0  ;;  %3892 = vst [vmem:[#allocation20_spill] sm:$0xff] %v2548_v37  ;;  %v607_v31 = vsel %vm272_vm1, %v554_v42, 0.0  ;;  %v360_v20 = vmul.f32 %v2548_v37, %v2548_v37 }
 0x334   :  { %v390_v56 = vsel %vm272_vm1, %v360_v20, 0.0 }
 0x33d   :  { %1387 = vrot.lane.b32.xlu0 %v2471_v5, %s2143_s2  ;;  %v2535_v5 = vpop.permute.xlu1 %563 }
 0x33f   :  { %1369 = vrot.lane.b32.xlu1 %v2475_v41, %s2143_s2 }
 0x35c   :  { %1145 = vadd.xlane.f32.xlu0 %v1144_v49  ;;  %v2528_v49 = vsub.f32 %v2281_v57, %v324_v13 }
 0x35e   :  { %3890 = vst [vmem:[#allocation18_spill] sm:$0xff] %v2528_v49  ;;  %v356_v13 = vmul.f32 %v2528_v49, %v2528_v49  ;;  %v332_v49 = vmul.f32 0.0625, %v308_v44  ;;  %v334_v44 = vmul.f32 0.0625, %v314_v48 }
 0x360   :  { %v2569_v42 = vsub.f32 %v2286_v59, %v332_v49  ;;  %v2575_v37 = vsub.f32 %v2307_v3, %v334_v44 }
 0x362   :  { %3895 = vst [vmem:[#allocation23_spill] sm:$0xff] %v2569_v42  ;;  %3896 = vst [vmem:[#allocation24_spill] sm:$0xff] %v2575_v37  ;;  %v366_v44 = vmul.f32 %v2575_v37, %v2575_v37 }
 0x363   :  { %602 = vadd.xlane.f32.xlu1 %v601_v51  ;;  %v326_v51 = vmul.f32 0.0625, %v2422_v58  ;;  %v2543_v58 = vpop.xlane.xlu1 %304 }
 0x365   :  { %v2538_v1 = vsub.f32 %v2298_v0, %v326_v51 }
 0x367   :  { %1118 = vadd.xlane.f32.xlu1 %v1117_v54  ;;  %v1150_v54 = vsel %vm272_vm1, %v2498_v2, 0.0  ;;  %3891 = vst [vmem:[#allocation19_spill] sm:$0xff] %v2538_v1  ;;  %v358_v51 = vmul.f32 %v2538_v1, %v2538_v1  ;;  %v2553_v24 = vpop.permute.xlu1 %567 }
 0x372   :  { %1391 = vrot.lane.b32.xlu0 %v2498_v2, %s2143_s2  ;;  %v2545_v2 = vpop.xlane.xlu0 %605 }
 0x376   :  { %v2562_v40 = vpop.xlane.xlu0 %1121 }
 0x377   :  { %3894 = vst [vmem:[#allocation22_spill] sm:$0xff] %v2562_v40  ;;  %v364_v40 = vmul.f32 %v2569_v42, %v2569_v42 }
 0x378   :  { %1373 = vrot.lane.b32.xlu1 %v2506_v6, %s2143_s2 }
 0x391   :  { %1151 = vadd.xlane.f32.xlu0 %v1150_v54  ;;  %v378_v54 = vsel %vm272_vm1, %v356_v13, 0.0  ;;  %v2564_v13 = vpop.xlane.xlu1 %310 }
 0x395   :  { %373 = vadd.xlane.f32.xlu0 %v372_v11  ;;  %v384_v11 = vsel %vm272_vm1, %v358_v51, 0.0  ;;  %v362_v51 = vmul.f32 %v2557_v47, %v2557_v47  ;;  %v2580_v49 = vpop.permute.xlu1 %571 }
 0x397   :  { %v396_v1 = vsel %vm272_vm1, %v362_v51, 0.0 }
 0x399   :  { %379 = vadd.xlane.f32.xlu0 %v378_v54  ;;  %v1123_v54 = vsel %vm272_vm1, %v2506_v6, 0.0 }
 0x39c   :  { %608 = vadd.xlane.f32.xlu1 %v607_v31  ;;  %v1376_v31 = vpop.permute.xlu0 %1375 }
 0x39d   :  { %385 = vadd.xlane.f32.xlu0 %v384_v11  ;;  %v336_v11 = vmul.f32 0.0625, %v320_v7  ;;  %v408_v7 = vsel %vm272_vm1, %v366_v44, 0.0  ;;  %v1412_v44 = vsel %vm272_vm1, %v2494_v63, 0.0 }
 0x39f   :  { %v2585_v20 = vsub.f32 %v2350_v23, %v336_v11 }
 0x3a0   :  { %1124 = vadd.xlane.f32.xlu1 %v1123_v54  ;;  %v2582_v48 = vpop.xlane.xlu0 %611  ;;  %v402_v54 = vsel %vm272_vm1, %v364_v40, 0.0 }
 0x3a1   :  { %391 = vadd.xlane.f32.xlu0 %v390_v56  ;;  %3897 = vst [vmem:[#allocation25_spill] sm:$0xff] %v2585_v20  ;;  %v2590_v56 = vpop.xlane.xlu1 %316  ;;  %v368_v51 = vmul.f32 %v2585_v20, %v2585_v20 }
 0x3a3   :  { %v414_v40 = vsel %vm272_vm1, %v368_v51, 0.0  ;;  %v1424_v51 = vsel %vm272_vm1, %v1372_v33, 0.0  ;;  %v613_v33 = vsel %vm272_vm1, %v2481_v43, 0.0 }
 0x3a4   :  { %v2595_v42 = vpop.xlane.xlu0 %1127 }
 0x3a5   :  { %397 = vadd.xlane.f32.xlu0 %v396_v1  ;;  %3898 = vst [vmem:[#allocation26_spill] sm:$0xff] %v2595_v42  ;;  %v2599_v1 = vadd.f32 %v2330_v15, %v2357_v26  ;;  %v594_v11 = vpop.xlane.xlu1 %593  ;;  %v1418_v15 = vsel %vm272_vm1, %v2512_v29, 0.0  ;;  %v1430_v42 = vsel %vm272_vm1, %v1376_v31, 0.0 }
 0x3a7   :  { %v1129_v31 = vsel %vm272_vm1, %v2599_v1, 0.0 }
 0x3a9   :  { %403 = vadd.xlane.f32.xlu0 %v402_v54  ;;  %v1380_v54 = vpop.permute.xlu0 %1379  ;;  %v1362_v37 = vpop.permute.xlu1 %1361 }
 0x3ad   :  { %409 = vadd.xlane.f32.xlu0 %v408_v7  ;;  %v2606_v20 = vpop.xlane.xlu0 %617  ;;  %v1409_v7 = vsel %vm272_vm1, %v1362_v37, 0.0 }
 0x3b1   :  { %1377 = vrot.lane.b32.xlu1 %v2599_v1, %s2143_s2  ;;  %415 = vadd.xlane.f32.xlu0 %v414_v40  ;;  %v2611_v47 = vpop.xlane.xlu0 %1133 }
 0x3b5   :  { %1413 = vadd.xlane.f32.xlu0 %v1412_v44  ;;  %v1384_v40 = vpop.permute.xlu0 %1383  ;;  %v1436_v44 = vsel %vm272_vm1, %v1380_v54, 0.0 }
 0x3b6   :  { %v1442_v37 = vsel %vm272_vm1, %v1384_v40, 0.0  ;;  %v638_v40 = vmul.f32 0.0625, %v594_v11  ;;  %v628_v11 = vsel %vm272_vm1, %v2553_v24, 0.0 }
 0x3b9   :  { %1410 = vadd.xlane.f32.xlu0 %v1409_v7  ;;  %v2615_v63 = vpop.xlane.xlu0 %1139 }
 0x3bd   :  { %1419 = vadd.xlane.f32.xlu0 %v1418_v15  ;;  %v1388_v7 = vpop.permute.xlu0 %1387  ;;  %v2630_v15 = vadd.f32 %v2334_v17, %v2357_v26  ;;  %v619_v17 = vsel %vm272_vm1, %v2483_v46, 0.0  ;;  %v2655_v46 = vadd.f32 %v2338_v19, %v2357_v26 }
 0x3be   :  { %v1448_v29 = vsel %vm272_vm1, %v1388_v7, 0.0 }
 0x3bf   :  { %v1135_v7 = vsel %vm272_vm1, %v2630_v15, 0.0 }
 0x3c1   :  { %1425 = vadd.xlane.f32.xlu0 %v1424_v51 }
 0x3c5   :  { %1431 = vadd.xlane.f32.xlu0 %v1430_v42  ;;  %v622_v42 = vsel %vm272_vm1, %v2535_v5, 0.0 }
 0x3c9   :  { %1437 = vadd.xlane.f32.xlu0 %v1436_v44  ;;  %v2636_v44 = vsub.f32 %v2245_v34, %v638_v40 }
 0x3cb   :  { %3899 = vst [vmem:[#allocation27_spill] sm:$0xff] %v2636_v44  ;;  %v670_v5 = vmul.f32 %v2636_v44, %v2636_v44 }
 0x3cd   :  { %1443 = vadd.xlane.f32.xlu0 %v1442_v37  ;;  %v1107_v37 = vpop.xlane.xlu1 %1106 }
 0x3d1   :  { %1449 = vadd.xlane.f32.xlu0 %v1448_v29  ;;  %v1153_v29 = vmul.f32 0.0625, %v1107_v37 }
 0x3d3   :  { %v2648_v34 = vsub.f32 %v2440_v12, %v1153_v29 }
 0x3d5   :  { %614 = vadd.xlane.f32.xlu1 %v613_v33  ;;  %v1185_v33 = vmul.f32 %v2648_v34, %v2648_v34 }
 0x3d9   :  { %1130 = vadd.xlane.f32.xlu1 %v1129_v31  ;;  %v1201_v31 = vsel %vm272_vm1, %v1185_v33, 0.0 }
 0x3dd   :  { %623 = vadd.xlane.f32.xlu1 %v622_v42  ;;  %v640_v42 = vmul.f32 0.0625, %v2514_v32 }
 0x3df   :  { %v2661_v24 = vsub.f32 %v2281_v57, %v640_v42  ;;  %v625_v57 = vsel %vm272_vm1, %v2485_v18, 0.0  ;;  %v2689_v18 = vadd.f32 %v2342_v21, %v2357_v26 }
 0x3e1   :  { %3900 = vst [vmem:[#allocation28_spill] sm:$0xff] %v2661_v24 }
 0x3e9   :  { %v2626_v54 = vpop.xlane.xlu0 %1145 }
 0x3ed   :  { %v1392_v51 = vpop.permute.xlu0 %1391 }
 0x3ee   :  { %1381 = vrot.lane.b32.xlu1 %v2630_v15, %s2143_s2  ;;  %v1454_v43 = vsel %vm272_vm1, %v1392_v51, 0.0  ;;  %v639_v51 = vmul.f32 0.0625, %v2525_v39 }
 0x3ef   :  { %1455 = vadd.xlane.f32.xlu0 %v1454_v43  ;;  %v672_v43 = vmul.f32 %v2661_v24, %v2661_v24 }
 0x3f0   :  { %v2667_v40 = vsub.f32 %v2259_v50, %v639_v51 }
 0x3f2   :  { %3901 = vst [vmem:[#allocation29_spill] sm:$0xff] %v2667_v40  ;;  %v671_v19 = vmul.f32 %v2667_v40, %v2667_v40 }
 0x405   :  { %703 = vrot.lane.b32.xlu0 %v670_v5, %s2143_s2  ;;  %v2673_v5 = vpop.permute.xlu1 %1365 }
 0x409   :  { %v1113_v32 = vpop.xlane.xlu1 %1112 }
 0x40a   :  { %v1155_v39 = vmul.f32 0.0625, %v1113_v32 }
 0x40c   :  { %v2680_v37 = vsub.f32 %v2457_v35, %v1155_v39 }
 0x40d   :  { %v2691_v33 = vpop.permute.xlu1 %1369 }
 0x40e   :  { %v1187_v29 = vmul.f32 %v2680_v37, %v2680_v37 }
 0x411   :  { %v603_v42 = vpop.xlane.xlu1 %602 }
 0x412   :  { %620 = vadd.xlane.f32.xlu1 %v619_v17  ;;  %v1141_v17 = vsel %vm272_vm1, %v2655_v46, 0.0  ;;  %v641_v51 = vmul.f32 0.0625, %v603_v42 }
 0x415   :  { %v1119_v26 = vpop.xlane.xlu1 %1118 }
 0x416   :  { %1136 = vadd.xlane.f32.xlu1 %v1135_v7  ;;  %v634_v7 = vsel %vm272_vm1, %v2580_v49, 0.0 }
 0x419   :  { %v2709_v32 = vpop.permute.xlu1 %1373 }
 0x41a   :  { %629 = vadd.xlane.f32.xlu1 %v628_v11  ;;  %v1207_v11 = vsel %vm272_vm1, %v1187_v29, 0.0 }
 0x424   :  { %1202 = vadd.xlane.f32.xlu0 %v1201_v31  ;;  %v642_v31 = vmul.f32 0.0625, %v2545_v2  ;;  %v321_v2 = vmul.f32 0.0625, %v2392_v38  ;;  %v325_v38 = vmul.f32 0.0625, %v2424_v60 }
 0x426   :  { %v2697_v49 = vsub.f32 %v2298_v0, %v642_v31  ;;  %v1157_v0 = vmul.f32 0.0625, %v1119_v26  ;;  %v2713_v39 = vsub.f32 %v2254_v45, %v321_v2  ;;  %v329_v2 = vmul.f32 0.0625, %v2519_v10 }
 0x428   :  { %3902 = vst [vmem:[#allocation30_spill] sm:$0xff] %v2697_v49  ;;  %3904 = vst [vmem:[#allocation32_spill] sm:$0xff] %v2713_v39  ;;  %v2720_v29 = vsub.f32 %v2475_v41, %v1157_v0  ;;  %v353_v31 = vmul.f32 %v2713_v39, %v2713_v39 }
 0x42a   :  { %3905 = vst [vmem:[#allocation33_spill] sm:$0xff] %v2720_v29 }
 0x42b   :  { %1385 = vrot.lane.b32.xlu1 %v2655_v46, %s2143_s2 }
 0x43a   :  { %707 = vrot.lane.b32.xlu0 %v672_v43, %s2143_s2  ;;  %v674_v43 = vmul.f32 %v2697_v49, %v2697_v49  ;;  %v3922_v49 = vld [vmem:[#allocation11_spill] sm:$0xff] }
 0x43e   :  { %705 = vrot.lane.b32.xlu0 %v671_v19, %s2143_s2  ;;  %v2702_v19 = vsub.f32 %v2264_v52, %v641_v51  ;;  %v2733_v51 = vsub.f32 %v2264_v52, %v325_v38 }
 0x440   :  { %3903 = vst [vmem:[#allocation31_spill] sm:$0xff] %v2702_v19  ;;  %v673_v21 = vmul.f32 %v2702_v19, %v2702_v19  ;;  %3907 = vst [vmem:[#allocation35_spill] sm:$0xff] %v2733_v51  ;;  %v357_v52 = vmul.f32 %v2733_v51, %v2733_v51  ;;  %v1162_v51 = vmul.f32 0.0625, %v2611_v47 }
 0x442   :  { %v381_v38 = vsel %vm272_vm1, %v357_v52, 0.0 }
 0x44f   :  { %626 = vadd.xlane.f32.xlu1 %v625_v57  ;;  %v323_v57 = vmul.f32 0.0625, %v2467_v16  ;;  %v1147_v16 = vsel %vm272_vm1, %v2689_v18, 0.0 }
 0x453   :  { %1142 = vadd.xlane.f32.xlu1 %v1141_v17  ;;  %v631_v17 = vsel %vm272_vm1, %v2492_v61, 0.0  ;;  %v1189_v61 = vmul.f32 %v2720_v29, %v2720_v29 }
 0x457   :  { %635 = vadd.xlane.f32.xlu1 %v634_v7  ;;  %v2717_v7 = vpop.xlane.xlu1 %608 }
 0x458   :  { %v643_v19 = vmul.f32 0.0625, %v2717_v7 }
 0x45b   :  { %v1125_v42 = vpop.xlane.xlu1 %1124 }
 0x45d   :  { %1208 = vadd.xlane.f32.xlu0 %v1207_v11  ;;  %v2723_v11 = vsub.f32 %v2259_v50, %v323_v57  ;;  %v369_v50 = vsel %vm272_vm1, %v353_v31, 0.0  ;;  %v2748_v57 = vsub.f32 %v2276_v55, %v329_v2  ;;  %v335_v2 = vmul.f32 0.0625, %v2590_v56 }
 0x45f   :  { %3906 = vst [vmem:[#allocation34_spill] sm:$0xff] %v2723_v11  ;;  %v355_v60 = vmul.f32 %v2723_v11, %v2723_v11  ;;  %3909 = vst [vmem:[#allocation37_spill] sm:$0xff] %v2748_v57  ;;  %v3936_v11 = vld [vmem:[#allocation13_spill] sm:$0xff] }
 0x461   :  { %v375_v0 = vsel %vm272_vm1, %v355_v60, 0.0 }
 0x468   :  { %1389 = vrot.lane.b32.xlu1 %v2689_v18, %s2143_s2 }
 0x473   :  { %711 = vrot.lane.b32.xlu0 %v674_v43, %s2143_s2  ;;  %v327_v43 = vmul.f32 0.0625, %v2444_v28  ;;  %v1378_v28 = vpop.permute.xlu1 %1377 }
 0x475   :  { %v2741_v26 = vsub.f32 %v2269_v53, %v327_v43 }
 0x477   :  { %709 = vrot.lane.b32.xlu0 %v673_v21, %s2143_s2  ;;  %v1213_v21 = vsel %vm272_vm1, %v1189_v61, 0.0  ;;  %3908 = vst [vmem:[#allocation36_spill] sm:$0xff] %v2741_v26  ;;  %v2754_v31 = vpop.xlane.xlu1 %614  ;;  %v333_v61 = vmul.f32 0.0625, %v2564_v13 }
 0x47b   :  { %v1131_v60 = vpop.xlane.xlu1 %1130 }
 0x48c   :  { %632 = vadd.xlane.f32.xlu1 %v631_v17  ;;  %v331_v17 = vmul.f32 0.0625, %v2543_v58  ;;  %v644_v58 = vmul.f32 0.0625, %v2582_v48 }
 0x48e   :  { %v2757_v10 = vsub.f32 %v2293_v62, %v331_v17  ;;  %v2772_v13 = vsub.f32 %v2345_v22, %v644_v58  ;;  %v2775_v17 = vsub.f32 %v2355_v25, %v335_v2  ;;  %v1415_v2 = vsel %vm272_vm1, %v2673_v5, 0.0 }
 0x490   :  { %1148 = vadd.xlane.f32.xlu1 %v1147_v16  ;;  %v359_v16 = vmul.f32 %v2741_v26, %v2741_v26  ;;  %3910 = vst [vmem:[#allocation38_spill] sm:$0xff] %v2757_v10  ;;  %v363_v52 = vmul.f32 %v2757_v10, %v2757_v10  ;;  %3912 = vst [vmem:[#allocation40_spill] sm:$0xff] %v2772_v13  ;;  %v676_v56 = vmul.f32 %v2772_v13, %v2772_v13 }
 0x491   :  { %3913 = vst [vmem:[#allocation41_spill] sm:$0xff] %v2775_v17 }
 0x492   :  { %v387_v43 = vsel %vm272_vm1, %v359_v16, 0.0  ;;  %v399_v48 = vsel %vm272_vm1, %v363_v52, 0.0  ;;  %v624_v16 = vpop.xlane.xlu1 %623 }
 0x494   :  { %370 = vadd.xlane.f32.xlu1 %v369_v50  ;;  %v361_v50 = vmul.f32 %v2748_v57, %v2748_v57 }
 0x496   :  { %1214 = vadd.xlane.f32.xlu0 %v1213_v21  ;;  %v2765_v21 = vsub.f32 %v2318_v9, %v333_v61  ;;  %v1382_v22 = vpop.permute.xlu1 %1381 }
 0x497   :  { %v1439_v5 = vsel %vm272_vm1, %v1382_v22, 0.0 }
 0x498   :  { %376 = vadd.xlane.f32.xlu1 %v375_v0  ;;  %3911 = vst [vmem:[#allocation39_spill] sm:$0xff] %v2765_v21  ;;  %v393_v0 = vsel %vm272_vm1, %v361_v50, 0.0 }
 0x49c   :  { %382 = vadd.xlane.f32.xlu1 %v381_v38  ;;  %v365_v38 = vmul.f32 %v2765_v21, %v2765_v21 }
 0x49e   :  { %v405_v61 = vsel %vm272_vm1, %v365_v38, 0.0  ;;  %v1159_v38 = vmul.f32 0.0625, %v1125_v42  ;;  %v646_v42 = vmul.f32 0.0625, %v2606_v20  ;;  %v1161_v20 = vmul.f32 0.0625, %v1131_v60 }
 0x49f   :  { %v2787_v58 = vpop.xlane.xlu1 %620 }
 0x4a0   :  { %388 = vadd.xlane.f32.xlu1 %v387_v43  ;;  %v367_v43 = vmul.f32 %v2775_v17, %v2775_v17 }
 0x4a2   :  { %v411_v50 = vsel %vm272_vm1, %v367_v43, 0.0  ;;  %v2801_v43 = vsub.f32 %v2506_v6, %v1159_v38 }
 0x4a3   :  { %v2793_v52 = vpop.xlane.xlu1 %1136 }
 0x4a4   :  { %394 = vadd.xlane.f32.xlu1 %v393_v0  ;;  %v1421_v0 = vsel %vm272_vm1, %v2691_v33, 0.0  ;;  %3914 = vst [vmem:[#allocation42_spill] sm:$0xff] %v2801_v43  ;;  %v1191_v33 = vmul.f32 %v2801_v43, %v2801_v43 }
 0x4a8   :  { %400 = vadd.xlane.f32.xlu1 %v399_v48  ;;  %v1427_v48 = vsel %vm272_vm1, %v2709_v32, 0.0  ;;  %v1219_v32 = vsel %vm272_vm1, %v1191_v33, 0.0  ;;  %v2821_v33 = vpop.xlane.xlu0 %1151 }
 0x4ac   :  { %406 = vadd.xlane.f32.xlu1 %v405_v61  ;;  %715 = vrot.lane.b32.xlu0 %v676_v56, %s2143_s2  ;;  %v2797_v56 = vpop.xlane.xlu1 %629  ;;  %v1433_v61 = vsel %vm272_vm1, %v1378_v28, 0.0  ;;  %v2810_v28 = vsub.f32 %v2372_v30, %v646_v42  ;;  %v2831_v42 = vpop.xlane.xlu0 %373 }
 0x4ae   :  { %3915 = vst [vmem:[#allocation43_spill] sm:$0xff] %v2810_v28  ;;  %v678_v22 = vmul.f32 %v2810_v28, %v2810_v28 }
 0x4b0   :  { %412 = vadd.xlane.f32.xlu1 %v411_v50  ;;  %v1386_v50 = vpop.permute.xlu1 %1385  ;;  %v2837_v60 = vpop.xlane.xlu0 %379 }
 0x4b4   :  { %1416 = vadd.xlane.f32.xlu1 %v1415_v2  ;;  %v1445_v2 = vsel %vm272_vm1, %v1386_v50, 0.0  ;;  %v637_v50 = vmul.f32 0.0625, %v2510_v8 }
 0x4b6   :  { %v2824_v30 = vsub.f32 %v2254_v45, %v637_v50  ;;  %v2839_v45 = vpop.xlane.xlu0 %385 }
 0x4b8   :  { %1422 = vadd.xlane.f32.xlu1 %v1421_v0  ;;  %3916 = vst [vmem:[#allocation44_spill] sm:$0xff] %v2824_v30 }
 0x4bc   :  { %1428 = vadd.xlane.f32.xlu1 %v1427_v48 }
 0x4c0   :  { %1434 = vadd.xlane.f32.xlu1 %v1433_v61 }
 0x4c4   :  { %1440 = vadd.xlane.f32.xlu1 %v1439_v5 }
 0x4c8   :  { %1446 = vadd.xlane.f32.xlu1 %v1445_v2  ;;  %v2827_v2 = vsub.f32 %v2599_v1, %v1161_v20  ;;  %v1154_v20 = vmul.f32 0.0625, %v2502_v4 }
 0x4ca   :  { %3917 = vst [vmem:[#allocation45_spill] sm:$0xff] %v2827_v2 }
 0x4cb   :  { %1220 = vadd.xlane.f32.xlu0 %v1219_v32  ;;  %v669_v32 = vmul.f32 %v2824_v30, %v2824_v30 }
 0x4dc   :  { %v2812_v0 = vpop.xlane.xlu1 %626 }
 0x4e0   :  { %v2816_v48 = vpop.xlane.xlu1 %1142 }
 0x4e1   :  { %719 = vrot.lane.b32.xlu0 %v678_v22, %s2143_s2  ;;  %v1193_v22 = vmul.f32 %v2827_v2, %v2827_v2 }
 0x4e3   :  { %v1225_v8 = vsel %vm272_vm1, %v1193_v22, 0.0  ;;  %v2852_v22 = vsub.f32 %v2362_v27, %v1154_v20 }
 0x4e4   :  { %v636_v38 = vpop.xlane.xlu1 %635 }
 0x4e5   :  { %3919 = vst [vmem:[#allocation47_spill] sm:$0xff] %v2852_v22  ;;  %v1186_v4 = vmul.f32 %v2852_v22, %v2852_v22 }
 0x4e7   :  { %v1204_v20 = vsel %vm272_vm1, %v1186_v4, 0.0 }
 0x4e8   :  { %v1390_v61 = vpop.permute.xlu1 %1389 }
 0x4e9   :  { %v1451_v5 = vsel %vm272_vm1, %v1390_v61, 0.0  ;;  %v2841_v61 = vpop.xlane.xlu0 %391 }
 0x4ea   :  { %1452 = vadd.xlane.f32.xlu1 %v1451_v5  ;;  %v648_v5 = vmul.f32 0.0625, %v624_v16 }
 0x4ec   :  { %v2844_v50 = vsub.f32 %v2286_v59, %v648_v5  ;;  %v3921_v59 = vld [vmem:[#allocation22_spill] sm:$0xff] }
 0x4ed   :  { %v2847_v28 = vpop.xlane.xlu0 %397  ;;  %v1158_v5 = vmul.f32 0.0625, %v3921_v59 }
 0x4ee   :  { %3918 = vst [vmem:[#allocation46_spill] sm:$0xff] %v2844_v50 }
 0x4ef   :  { %v2865_v24 = vsub.f32 %v3922_v49, %v1158_v5  ;;  %v1163_v5 = vmul.f32 0.0625, %v2793_v52 }
 0x4f1   :  { %v2856_v13 = vpop.xlane.xlu0 %403  ;;  %3923 = vst [vmem:[#allocation22_spill] sm:$0xff] %v2865_v24  ;;  %v2880_v4 = vsub.f32 %v2630_v15, %v1163_v5 }
 0x4f3   :  { %3924 = vst [vmem:[#allocation11_spill] sm:$0xff] %v2880_v4 }
 0x4fb   :  { %701 = vrot.lane.b32.xlu1 %v669_v32, %s2143_s2  ;;  %v680_v32 = vmul.f32 %v2844_v50, %v2844_v50  ;;  %v2867_v50 = vpop.xlane.xlu0 %409 }
 0x4ff   :  { %v2875_v59 = vpop.xlane.xlu0 %415 }
 0x500   :  { %1226 = vadd.xlane.f32.xlu0 %v1225_v8  ;;  %v1156_v8 = vmul.f32 0.0625, %v2516_v14 }
 0x502   :  { %v2859_v16 = vsub.f32 %v2382_v36, %v1156_v8  ;;  %v1190_v8 = vmul.f32 %v2865_v24, %v2865_v24 }
 0x503   :  { %v1414_v44 = vpop.xlane.xlu0 %1413 }
 0x504   :  { %3920 = vst [vmem:[#allocation48_spill] sm:$0xff] %v2859_v16  ;;  %v1188_v14 = vmul.f32 %v2859_v16, %v2859_v16  ;;  %v1216_v30 = vsel %vm272_vm1, %v1190_v8, 0.0  ;;  %v1458_v24 = vmul.f32 0.0625, %v1414_v44 }
 0x516   :  { %723 = vrot.lane.b32.xlu0 %v680_v32, %s2143_s2  ;;  %v1210_v32 = vsel %vm272_vm1, %v1188_v14, 0.0  ;;  %v1195_v14 = vmul.f32 %v2880_v4, %v2880_v4  ;;  %v650_v4 = vmul.f32 0.0625, %v2797_v56  ;;  %v2921_v56 = vsub.f32 %v2362_v27, %v1458_v24 }
 0x518   :  { %v1231_v40 = vsel %vm272_vm1, %v1195_v14, 0.0  ;;  %3928 = vst [vmem:[#allocation52_spill] sm:$0xff] %v2921_v56 }
 0x519   :  { %v2896_v8 = vpop.xlane.xlu1 %632 }
 0x51d   :  { %v2900_v5 = vpop.xlane.xlu1 %1148 }
 0x51f   :  { %1205 = vadd.xlane.f32.xlu1 %v1204_v20  ;;  %v2883_v20 = vpop.xlane.xlu0 %1410 }
 0x521   :  { %v2908_v14 = vpop.xlane.xlu1 %370 }
 0x523   :  { %1211 = vadd.xlane.f32.xlu1 %v1210_v32  ;;  %v2888_v32 = vsub.f32 %v2269_v53, %v643_v19  ;;  %v2906_v19 = vsub.f32 %v2307_v3, %v650_v4  ;;  %v3929_v4 = vld [vmem:[#allocation26_spill] sm:$0xff] }
 0x524   :  { %v1160_v44 = vmul.f32 0.0625, %v3929_v4 }
 0x525   :  { %3925 = vst [vmem:[#allocation49_spill] sm:$0xff] %v2888_v32  ;;  %v675_v52 = vmul.f32 %v2888_v32, %v2888_v32  ;;  %3926 = vst [vmem:[#allocation50_spill] sm:$0xff] %v2906_v19  ;;  %v2917_v22 = vpop.xlane.xlu1 %376 }
 0x527   :  { %1217 = vadd.xlane.f32.xlu1 %v1216_v30  ;;  %v2893_v30 = vpop.xlane.xlu0 %1419 }
 0x52b   :  { %v2898_v7 = vpop.xlane.xlu0 %1425 }
 0x52f   :  { %v2903_v53 = vpop.xlane.xlu0 %1431 }
 0x533   :  { %v2910_v32 = vpop.xlane.xlu0 %1437 }
 0x535   :  { %1232 = vadd.xlane.f32.xlu0 %v1231_v40  ;;  %v652_v40 = vmul.f32 0.0625, %v636_v38 }
 0x537   :  { %v2915_v16 = vsub.f32 %v2350_v23, %v652_v40  ;;  %v2925_v38 = vpop.xlane.xlu0 %1443  ;;  %v1490_v23 = vmul.f32 %v2921_v56, %v2921_v56  ;;  %v2931_v40 = vpop.xlane.xlu1 %382 }
 0x538   :  { %713 = vrot.lane.b32.xlu1 %v675_v52, %s2143_s2  ;;  %v682_v52 = vmul.f32 %v2906_v19, %v2906_v19  ;;  %v3930_v19 = vld [vmem:[#allocation12_spill] sm:$0xff] }
 0x539   :  { %3927 = vst [vmem:[#allocation51_spill] sm:$0xff] %v2915_v16  ;;  %v684_v3 = vmul.f32 %v2915_v16, %v2915_v16  ;;  %v2934_v2 = vsub.f32 %v3930_v19, %v1160_v44 }
 0x53b   :  { %3931 = vst [vmem:[#allocation26_spill] sm:$0xff] %v2934_v2  ;;  %v2937_v27 = vpop.xlane.xlu0 %1449  ;;  %v2939_v24 = vpop.xlane.xlu1 %388 }
 0x53f   :  { %v2943_v4 = vpop.xlane.xlu0 %1455  ;;  %v2946_v56 = vpop.xlane.xlu1 %394 }
 0x543   :  { %v2948_v16 = vpop.permute.xlu0 %703  ;;  %v2953_v43 = vpop.xlane.xlu1 %400 }
 0x547   :  { %v2950_v44 = vpop.xlane.xlu0 %1202 }
 0x54b   :  { %727 = vrot.lane.b32.xlu0 %v682_v52, %s2143_s2  ;;  %v1192_v52 = vmul.f32 %v2934_v2, %v2934_v2  ;;  %v2958_v21 = vpop.permute.xlu0 %707  ;;  %v2960_v2 = vpop.xlane.xlu1 %406 }
 0x54c   :  { %3933 = vst [vmem:[#allocation53_spill] sm:$0xff] %v2960_v2 }
 0x54f   :  { %731 = vrot.lane.b32.xlu0 %v684_v3, %s2143_s2  ;;  %v1222_v3 = vsel %vm272_vm1, %v1192_v52, 0.0  ;;  %v2965_v10 = vpop.xlane.xlu1 %412 }
 0x550   :  { %3934 = vst [vmem:[#allocation54_spill] sm:$0xff] %v2965_v10 }
 0x553   :  { %1523 = vrot.lane.b32.xlu0 %v1490_v23, %s2143_s2  ;;  %v645_v23 = vmul.f32 0.0625, %v2754_v31  ;;  %v2968_v31 = vpop.xlane.xlu1 %1416 }
 0x555   :  { %v2956_v17 = vsub.f32 %v2276_v55, %v645_v23 }
 0x557   :  { %3932 = vst [vmem:[#allocation12_spill] sm:$0xff] %v2956_v17  ;;  %v677_v52 = vmul.f32 %v2956_v17, %v2956_v17  ;;  %v1423_v26 = vpop.xlane.xlu1 %1422 }
 0x558   :  { %v1461_v55 = vmul.f32 0.0625, %v1423_v26 }
 0x55a   :  { %v2971_v23 = vsub.f32 %v2475_v41, %v1461_v55  ;;  %v647_v41 = vmul.f32 0.0625, %v2787_v58 }
 0x55c   :  { %1223 = vadd.xlane.f32.xlu1 %v1222_v3  ;;  %v706_v3 = vpop.permute.xlu0 %705  ;;  %3935 = vst [vmem:[#allocation55_spill] sm:$0xff] %v2971_v23  ;;  %v1493_v17 = vmul.f32 %v2971_v23, %v2971_v23  ;;  %v2987_v47 = vsub.f32 %v2293_v62, %v647_v41  ;;  %v1164_v41 = vmul.f32 0.0625, %v2615_v63 }
 0x55d   :  { %v755_v57 = vsel %vm272_vm1, %v706_v3, 0.0 }
 0x55e   :  { %3938 = vst [vmem:[#allocation56_spill] sm:$0xff] %v2987_v47 }
 0x560   :  { %v2983_v26 = vpop.xlane.xlu0 %1208 }
 0x564   :  { %v2989_v55 = vpop.permute.xlu0 %711 }
 0x56d   :  { %717 = vrot.lane.b32.xlu1 %v677_v52, %s2143_s2  ;;  %v2977_v52 = vsub.f32 %v3936_v11, %v1162_v51  ;;  %v679_v51 = vmul.f32 %v2987_v47, %v2987_v47 }
 0x56f   :  { %3937 = vst [vmem:[#allocation13_spill] sm:$0xff] %v2977_v52 }
 0x572   :  { %756 = vadd.xlane.f32.xlu0 %v755_v57  ;;  %v1194_v57 = vmul.f32 %v2977_v52, %v2977_v52  ;;  %v1429_v52 = vpop.xlane.xlu1 %1428 }
 0x573   :  { %v1463_v29 = vmul.f32 0.0625, %v1429_v52 }
 0x574   :  { %v1228_v3 = vsel %vm272_vm1, %v1194_v57, 0.0 }
 0x575   :  { %v2996_v58 = vsub.f32 %v2506_v6, %v1463_v29 }
 0x576   :  { %v1435_v57 = vpop.xlane.xlu1 %1434 }
 0x577   :  { %3939 = vst [vmem:[#allocation57_spill] sm:$0xff] %v2996_v58  ;;  %v1495_v10 = vmul.f32 %v2996_v58, %v2996_v58 }
 0x588   :  { %1529 = vrot.lane.b32.xlu0 %v1493_v17, %s2143_s2  ;;  %v710_v17 = vpop.permute.xlu0 %709 }
 0x589   :  { %v761_v23 = vsel %vm272_vm1, %v710_v17, 0.0  ;;  %v649_v17 = vmul.f32 0.0625, %v2812_v0 }
 0x58b   :  { %v3016_v58 = vsub.f32 %v2318_v9, %v649_v17  ;;  %v1465_v9 = vmul.f32 0.0625, %v1435_v57 }
 0x58d   :  { %3942 = vst [vmem:[#allocation58_spill] sm:$0xff] %v3016_v58 }
 0x591   :  { %1229 = vadd.xlane.f32.xlu1 %v1228_v3  ;;  %v1441_v3 = vpop.xlane.xlu1 %1440 }
 0x595   :  { %v1447_v62 = vpop.xlane.xlu1 %1446 }
 0x599   :  { %v3001_v47 = vpop.xlane.xlu1 %1452 }
 0x59d   :  { %v702_v52 = vpop.permute.xlu1 %701 }
 0x5a2   :  { %721 = vrot.lane.b32.xlu1 %v679_v51, %s2143_s2  ;;  %v3940_v51 = vld [vmem:[#allocation14_spill] sm:$0xff] }
 0x5a3   :  { %v3004_v2 = vsub.f32 %v3940_v51, %v1164_v41  ;;  %v651_v41 = vmul.f32 0.0625, %v2896_v8  ;;  %v3032_v8 = vsub.f32 %v2599_v1, %v1465_v9 }
 0x5a5   :  { %3941 = vst [vmem:[#allocation14_spill] sm:$0xff] %v3004_v2  ;;  %3944 = vst [vmem:[#allocation60_spill] sm:$0xff] %v3032_v8  ;;  %v1497_v17 = vmul.f32 %v3032_v8, %v3032_v8 }
 0x5a7   :  { %762 = vadd.xlane.f32.xlu0 %v761_v23  ;;  %v1196_v23 = vmul.f32 %v3004_v2, %v3004_v2  ;;  %v3024_v2 = vsub.f32 %v2355_v25, %v651_v41  ;;  %v752_v25 = vsel %vm272_vm1, %v2948_v16, 0.0  ;;  %v1457_v41 = vmul.f32 0.0625, %v2883_v20 }
 0x5a9   :  { %v1234_v6 = vsel %vm272_vm1, %v1196_v23, 0.0  ;;  %3943 = vst [vmem:[#allocation59_spill] sm:$0xff] %v3024_v2 }
 0x5ac   :  { %v3010_v29 = vpop.xlane.xlu1 %1205 }
 0x5b0   :  { %v3012_v63 = vpop.xlane.xlu1 %1211 }
 0x5b4   :  { %v3019_v39 = vpop.xlane.xlu1 %1217 }
 0x5b8   :  { %v714_v23 = vpop.permute.xlu1 %713 }
 0x5b9   :  { %v767_v0 = vsel %vm272_vm1, %v714_v23, 0.0  ;;  %v3043_v23 = vsub.f32 %v2440_v12, %v1457_v41  ;;  %v3055_v12 = vpop.xlane.xlu0 %1214 }
 0x5bb   :  { %3945 = vst [vmem:[#allocation61_spill] sm:$0xff] %v3043_v23  ;;  %v1489_v1 = vmul.f32 %v3043_v23, %v3043_v23 }
 0x5bd   :  { %1533 = vrot.lane.b32.xlu0 %v1495_v10, %s2143_s2  ;;  %v681_v10 = vmul.f32 %v3016_v58, %v3016_v58  ;;  %v3057_v9 = vpop.permute.xlu0 %715 }
 0x5c6   :  { %1235 = vadd.xlane.f32.xlu1 %v1234_v6  ;;  %v683_v6 = vmul.f32 %v3024_v2, %v3024_v2 }
 0x5d7   :  { %725 = vrot.lane.b32.xlu1 %v681_v10, %s2143_s2 }
 0x5db   :  { %729 = vrot.lane.b32.xlu1 %v683_v6, %s2143_s2 }
 0x5dc   :  { %768 = vadd.xlane.f32.xlu0 %v767_v0  ;;  %v1467_v0 = vmul.f32 0.0625, %v1441_v3  ;;  %v1460_v3 = vmul.f32 0.0625, %v2893_v30  ;;  %v1469_v30 = vmul.f32 0.0625, %v1447_v62 }
 0x5de   :  { %v3050_v16 = vsub.f32 %v2630_v15, %v1467_v0  ;;  %v3078_v58 = vsub.f32 %v2655_v46, %v1469_v30 }
 0x5e0   :  { %3946 = vst [vmem:[#allocation62_spill] sm:$0xff] %v3050_v16  ;;  %v1499_v20 = vmul.f32 %v3050_v16, %v3050_v16  ;;  %3948 = vst [vmem:[#allocation64_spill] sm:$0xff] %v3078_v58 }
 0x5e9   :  { %v3040_v10 = vpop.xlane.xlu1 %1223 }
 0x5ed   :  { %v718_v57 = vpop.permute.xlu1 %717 }
 0x5ee   :  { %v773_v6 = vsel %vm272_vm1, %v718_v57, 0.0  ;;  %v3068_v57 = vsub.f32 %v2382_v36, %v1460_v3  ;;  %v1501_v36 = vmul.f32 %v3078_v58, %v3078_v58  ;;  %v758_v3 = vsel %vm272_vm1, %v2958_v21, 0.0 }
 0x5f0   :  { %3947 = vst [vmem:[#allocation63_spill] sm:$0xff] %v3068_v57  ;;  %v1492_v0 = vmul.f32 %v3068_v57, %v3068_v57 }
 0x5f2   :  { %1537 = vrot.lane.b32.xlu0 %v1497_v17, %s2143_s2  ;;  %v3059_v17 = vpop.xlane.xlu0 %1220 }
 0x5f6   :  { %v3062_v41 = vpop.permute.xlu0 %719 }
 0x5f7   :  { %v776_v8 = vsel %vm272_vm1, %v3062_v41, 0.0  ;;  %v1470_v41 = vmul.f32 0.0625, %v2937_v27 }
 0x5fa   :  { %v3065_v15 = vpop.xlane.xlu0 %1226 }
 0x5ff   :  { %753 = vadd.xlane.f32.xlu1 %v752_v25  ;;  %v749_v25 = vsel %vm272_vm1, %v702_v52, 0.0 }
 0x610   :  { %1521 = vrot.lane.b32.xlu1 %v1489_v1, %s2143_s2 }
 0x611   :  { %774 = vadd.xlane.f32.xlu0 %v773_v6  ;;  %v724_v6 = vpop.permute.xlu0 %723 }
 0x615   :  { %v3090_v62 = vpop.xlane.xlu0 %1232 }
 0x619   :  { %v728_v30 = vpop.permute.xlu0 %727 }
 0x61e   :  { %v3070_v1 = vpop.xlane.xlu1 %1229 }
 0x622   :  { %v722_v52 = vpop.permute.xlu1 %721 }
 0x627   :  { %1541 = vrot.lane.b32.xlu0 %v1499_v20, %s2143_s2  ;;  %v782_v20 = vsel %vm272_vm1, %v724_v6, 0.0  ;;  %v1459_v6 = vmul.f32 0.0625, %v2968_v31  ;;  %v788_v31 = vsel %vm272_vm1, %v728_v30, 0.0 }
 0x634   :  { %750 = vadd.xlane.f32.xlu1 %v749_v25  ;;  %v779_v25 = vsel %vm272_vm1, %v722_v52, 0.0 }
 0x645   :  { %1527 = vrot.lane.b32.xlu1 %v1492_v0, %s2143_s2  ;;  %v1462_v0 = vmul.f32 0.0625, %v2898_v7 }
 0x646   :  { %783 = vadd.xlane.f32.xlu0 %v782_v20  ;;  %v3088_v20 = vsub.f32 %v2457_v35, %v1459_v6  ;;  %v1471_v35 = vmul.f32 0.0625, %v3001_v47  ;;  %v1165_v6 = vmul.f32 0.0625, %v2816_v48 }
 0x647   :  { %v3093_v52 = vsub.f32 %v3922_v49, %v1462_v0  ;;  %v1464_v0 = vmul.f32 0.0625, %v2903_v53 }
 0x648   :  { %3949 = vst [vmem:[#allocation65_spill] sm:$0xff] %v3088_v20  ;;  %v3104_v7 = vsub.f32 %v2689_v18, %v1471_v35  ;;  %v3116_v47 = vsub.f32 %v2655_v46, %v1165_v6  ;;  %v3140_v6 = vpop.permute.xlu0 %731 }
 0x649   :  { %3950 = vst [vmem:[#allocation66_spill] sm:$0xff] %v3093_v52  ;;  %v1494_v21 = vmul.f32 %v3093_v52, %v3093_v52 }
 0x64a   :  { %780 = vadd.xlane.f32.xlu0 %v779_v25  ;;  %v1491_v25 = vmul.f32 %v3088_v20, %v3088_v20  ;;  %3951 = vst [vmem:[#allocation67_spill] sm:$0xff] %v3104_v7  ;;  %v1503_v49 = vmul.f32 %v3104_v7, %v3104_v7 }
 0x660   :  { %1545 = vrot.lane.b32.xlu0 %v1501_v36, %s2143_s2  ;;  %v764_v36 = vsel %vm272_vm1, %v2989_v55, 0.0  ;;  %v1197_v55 = vmul.f32 %v3116_v47, %v3116_v47 }
 0x662   :  { %v1237_v46 = vsel %vm272_vm1, %v1197_v55, 0.0  ;;  %v770_v55 = vsel %vm272_vm1, %v3057_v9, 0.0 }
 0x669   :  { %759 = vadd.xlane.f32.xlu1 %v758_v3  ;;  %v3111_v3 = vpop.xlane.xlu1 %1235 }
 0x66d   :  { %v3119_v30 = vpop.permute.xlu1 %725 }
 0x66e   :  { %v785_v27 = vsel %vm272_vm1, %v3119_v30, 0.0 }
 0x671   :  { %v730_v53 = vpop.permute.xlu1 %729 }
 0x672   :  { %v791_v35 = vsel %vm272_vm1, %v730_v53, 0.0 }
 0x67a   :  { %1525 = vrot.lane.b32.xlu1 %v1491_v25, %s2143_s2  ;;  %v1167_v25 = vmul.f32 0.0625, %v2900_v5 }
 0x67e   :  { %1531 = vrot.lane.b32.xlu1 %v1494_v21, %s2143_s2  ;;  %v3122_v21 = vsub.f32 %v3930_v19, %v1464_v0  ;;  %v3142_v0 = vpop.permute.xlu0 %1523 }
 0x67f   :  { %789 = vadd.xlane.f32.xlu0 %v788_v31  ;;  %v3125_v31 = vsub.f32 %v2689_v18, %v1167_v25 }
 0x680   :  { %3952 = vst [vmem:[#allocation68_spill] sm:$0xff] %v3122_v21  ;;  %v1496_v48 = vmul.f32 %v3122_v21, %v3122_v21 }
 0x681   :  { %3953 = vst [vmem:[#allocation69_spill] sm:$0xff] %v3125_v31  ;;  %v1199_v5 = vmul.f32 %v3125_v31, %v3125_v31 }
 0x682   :  { %v3144_v25 = vpop.xlane.xlu0 %756 }
 0x683   :  { %v1243_v18 = vsel %vm272_vm1, %v1199_v5, 0.0 }
 0x68c   :  { %v3135_v19 = vpop.xlane.xlu1 %753 }
 0x695   :  { %1549 = vrot.lane.b32.xlu0 %v1503_v49, %s2143_s2  ;;  %v1522_v49 = vpop.permute.xlu1 %1521 }
 0x6a2   :  { %765 = vadd.xlane.f32.xlu1 %v764_v36  ;;  %v1569_v36 = vsel %vm272_vm1, %v1522_v49, 0.0 }
 0x6b3   :  { %1535 = vrot.lane.b32.xlu1 %v1496_v48, %s2143_s2  ;;  %v1530_v48 = vpop.permute.xlu0 %1529 }
 0x6b4   :  { %1238 = vadd.xlane.f32.xlu0 %v1237_v46  ;;  %v1466_v46 = vmul.f32 0.0625, %v2910_v32 }
 0x6b6   :  { %v3152_v53 = vsub.f32 %v3936_v11, %v1466_v46 }
 0x6b7   :  { %v3149_v5 = vpop.xlane.xlu0 %762 }
 0x6b8   :  { %1244 = vadd.xlane.f32.xlu0 %v1243_v18  ;;  %3954 = vst [vmem:[#allocation70_spill] sm:$0xff] %v3152_v53 }
 0x6bb   :  { %v1534_v18 = vpop.permute.xlu0 %1533 }
 0x6bc   :  { %792 = vadd.xlane.f32.xlu0 %v791_v35  ;;  %v1498_v35 = vmul.f32 %v3152_v53, %v3152_v53  ;;  %v1581_v53 = vsel %vm272_vm1, %v1530_v48, 0.0 }
 0x6bf   :  { %v3156_v49 = vpop.xlane.xlu0 %768 }
 0x6c0   :  { %1570 = vadd.xlane.f32.xlu0 %v1569_v36 }
 0x6c1   :  { %v3159_v36 = vpop.xlane.xlu1 %750 }
 0x6c3   :  { %v1538_v9 = vpop.permute.xlu0 %1537 }
 0x6c4   :  { %v1593_v58 = vsel %vm272_vm1, %v1538_v9, 0.0 }
 0x6c5   :  { %v1528_v21 = vpop.permute.xlu1 %1527 }
 0x6d7   :  { %771 = vadd.xlane.f32.xlu1 %v770_v55  ;;  %v3161_v55 = vpop.xlane.xlu0 %774 }
 0x6db   :  { %v1542_v52 = vpop.permute.xlu0 %1541 }
 0x6df   :  { %v3166_v46 = vpop.xlane.xlu0 %783 }
 0x6e3   :  { %v3169_v7 = vpop.xlane.xlu0 %780 }
 0x6e7   :  { %v1546_v16 = vpop.permute.xlu0 %1545 }
 0x6e8   :  { %1539 = vrot.lane.b32.xlu1 %v1498_v35, %s2143_s2  ;;  %v1587_v35 = vsel %vm272_vm1, %v1534_v18, 0.0  ;;  %v1605_v48 = vsel %vm272_vm1, %v1546_v16, 0.0  ;;  %v1468_v18 = vmul.f32 0.0625, %v2925_v38  ;;  %v3197_v38 = vld [vmem:[%s3807_s3] ss:$0 sm:$0xff] }
 0x6f6   :  { %v3163_v32 = vpop.xlane.xlu1 %759 }
 0x6fa   :  { %v1526_v57 = vpop.permute.xlu1 %1525 }
 0x6fb   :  { %v1575_v11 = vsel %vm272_vm1, %v1526_v57, 0.0  ;;  %v1599_v57 = vsel %vm272_vm1, %v1542_v52, 0.0  ;;  %v3956_v52 = vld [vmem:[#allocation15_spill] sm:$0xff] }
 0x6fc   :  { %1576 = vadd.xlane.f32.xlu0 %v1575_v11  ;;  %v3188_v9 = vsub.f32 %v3956_v52, %v1470_v41 }
 0x6fe   :  { %3957 = vst [vmem:[#allocation15_spill] sm:$0xff] %v3188_v9  ;;  %v1502_v16 = vmul.f32 %v3188_v9, %v3188_v9  ;;  %v3967_v9 = vld [vmem:[#allocation23_spill] sm:$0xff] }
 0x700   :  { %1582 = vadd.xlane.f32.xlu0 %v1581_v53 }
 0x704   :  { %1588 = vadd.xlane.f32.xlu0 %v1587_v35  ;;  %v3958_v35 = vld [vmem:[#allocation16_spill] sm:$0xff] }
 0x708   :  { %1594 = vadd.xlane.f32.xlu0 %v1593_v58  ;;  %v3182_v58 = vsub.f32 %v3940_v51, %v1468_v18  ;;  %v1472_v51 = vmul.f32 0.0625, %v2943_v4 }
 0x70a   :  { %3955 = vst [vmem:[#allocation71_spill] sm:$0xff] %v3182_v58 }
 0x70c   :  { %777 = vadd.xlane.f32.xlu1 %v776_v8  ;;  %v3176_v20 = vpop.xlane.xlu0 %789  ;;  %1600 = vadd.xlane.f32.xlu0 %v1599_v57  ;;  %v1500_v8 = vmul.f32 %v3182_v58, %v3182_v58  ;;  %v3205_v57 = vsub.f32 %v3958_v35, %v1472_v51 }
 0x70e   :  { %3959 = vst [vmem:[#allocation16_spill] sm:$0xff] %v3205_v57 }
 0x710   :  { %v1550_v53 = vpop.permute.xlu0 %1549  ;;  %1606 = vadd.xlane.f32.xlu0 %v1605_v48  ;;  %v1504_v48 = vmul.f32 %v3205_v57, %v3205_v57 }
 0x711   :  { %v1611_v11 = vsel %vm272_vm1, %v1550_v53, 0.0  ;;  %v1166_v53 = vmul.f32 0.0625, %v2626_v54  ;;  %v1532_v54 = vpop.permute.xlu1 %1531 }
 0x713   :  { %v3212_v18 = vsub.f32 %v3956_v52, %v1166_v53  ;;  %v794_v52 = vsel %vm272_vm1, %v3140_v6, 0.0  ;;  %v1584_v53 = vsel %vm272_vm1, %v1532_v54, 0.0 }
 0x714   :  { %1612 = vadd.xlane.f32.xlu0 %v1611_v11  ;;  %v1168_v11 = vmul.f32 0.0625, %v2821_v33 }
 0x715   :  { %3960 = vst [vmem:[#allocation72_spill] sm:$0xff] %v3212_v18  ;;  %v1198_v4 = vmul.f32 %v3212_v18, %v3212_v18  ;;  %v3968_v18 = vld [vmem:[#allocation24_spill] sm:$0xff] }
 0x716   :  { %v3216_v30 = vsub.f32 %v3958_v35, %v1168_v11  ;;  %v1578_v35 = vsel %vm272_vm1, %v1528_v21, 0.0 }
 0x717   :  { %v1240_v41 = vsel %vm272_vm1, %v1198_v4, 0.0 }
 0x718   :  { %3961 = vst [vmem:[#allocation73_spill] sm:$0xff] %v3216_v30 }
 0x71d   :  { %1543 = vrot.lane.b32.xlu1 %v1500_v8, %s2143_s2  ;;  %v1200_v8 = vmul.f32 %v3216_v30, %v3216_v30 }
 0x721   :  { %1547 = vrot.lane.b32.xlu1 %v1502_v16, %s2143_s2  ;;  %v1246_v16 = vsel %vm272_vm1, %v1200_v8, 0.0 }
 0x72a   :  { %861 = vrot.lane.b32.xlu0 %v3197_v38, %s2144_s22 }
 0x72f   :  { %v3226_v33 = vpop.xlane.xlu1 %765 }
 0x733   :  { %v1536_v51 = vpop.permute.xlu1 %1535 }
 0x734   :  { %v1590_v11 = vsel %vm272_vm1, %v1536_v51, 0.0  ;;  %v3246_v51 = vld [vmem:[%s3808_s4] ss:$0 sm:$0xff]  ;;  %s2145_s4 = smov [#allocation7]  }
 0x735   :  { %s1751_s24 = sshll.u32 %s2145_s4, 4  ;;  %s1752_s24 = int_to_ptr.vmem [resolvable:$true] %s1751_s24 }
 0x736   :  { %s2110_s25 = scalar_lea.vmem %s1752_s24, 4096  ;;  %p2115_p3 = scmp.lt.s32.totalorder %s1752_s24, %s1752_s24 }
 0x737   :  { %p2111_p2 = scmp.ne.s32.totalorder %s1752_s24, %s2110_s25  ;;  %p2116_p4 = scmp.lt.s32.totalorder %s2110_s25, %s2110_s25 }
 0x739   :  { %p2117_p5 = por %p2116_p4, %p2115_p3 }
 0x73b   :  { %p2118_p6 = pnand %p2117_p5, %p2111_p2 }
 0x745   :  { %786 = vadd.xlane.f32.xlu1 %v785_v27  ;;  %v1572_v27 = vsel %vm272_vm1, %v3142_v0, 0.0 }
 0x756   :  { %1551 = vrot.lane.b32.xlu1 %v1504_v48, %s2143_s2 }
 0x764   :  { %v3231_v48 = vpop.xlane.xlu1 %771 }
 0x768   :  { %v1540_v4 = vpop.permute.xlu1 %1539 }
 0x769   :  { %v1596_v6 = vsel %vm272_vm1, %v1540_v4, 0.0  ;;  %v424_v4 = vmul.f32 0.0625, %v2841_v61  ;;  %v1249_v61 = vmul.f32 0.0625, %v2950_v44  ;;  %v419_v44 = vmul.f32 0.0625, %v2917_v22 }
 0x76a   :  { %v423_v22 = vmul.f32 0.0625, %v2939_v24 }
 0x76b   :  { %v440_v57 = vadd.f32 1e-05, %v424_v4 }
 0x76c   :  { %v439_v2 = vadd.f32 1e-05, %v423_v22  ;;  %v3969_v22 = vld [vmem:[#allocation25_spill] sm:$0xff] }
 0x77a   :  { %1241 = vadd.xlane.f32.xlu1 %v1240_v41 }
 0x77e   :  { %1247 = vadd.xlane.f32.xlu1 %v1246_v16 }
 0x782   :  { %795 = vadd.xlane.f32.xlu1 %v794_v52 }
 0x786   :  { %1573 = vadd.xlane.f32.xlu1 %v1572_v27 }
 0x78a   :  { %1579 = vadd.xlane.f32.xlu1 %v1578_v35  ;;  %v418_v35 = vmul.f32 0.0625, %v2831_v42 }
 0x78e   :  { %1585 = vadd.xlane.f32.xlu1 %v1584_v53  ;;  %v420_v53 = vmul.f32 0.0625, %v2837_v60  ;;  %v432_v60 = vmul.f32 0.0625, %v2875_v59 }
 0x792   :  { %1591 = vadd.xlane.f32.xlu1 %v1590_v11  ;;  %v422_v11 = vmul.f32 0.0625, %v2839_v45 }
 0x796   :  { %1597 = vadd.xlane.f32.xlu1 %v1596_v6  ;;  %v434_v6 = vadd.f32 1e-05, %v418_v35 }
 0x798   :  { %1938 = vrsqrt.f32 %v434_v6  ;;  %v1253_v6 = vmul.f32 0.0625, %v3055_v12 }
 0x799   :  { %v3236_v41 = vpop.xlane.xlu1 %777 }
 0x79d   :  { %v1544_v0 = vpop.permute.xlu1 %1543 }
 0x79e   :  { %v1602_v8 = vsel %vm272_vm1, %v1544_v0, 0.0  ;;  %v426_v0 = vmul.f32 0.0625, %v2847_v28  ;;  %v1251_v28 = vmul.f32 0.0625, %v2983_v26 }
 0x79f   :  { %1603 = vadd.xlane.f32.xlu1 %v1602_v8  ;;  %v436_v8 = vadd.f32 1e-05, %v420_v53 }
 0x7a0   :  { %v442_v42 = vadd.f32 1e-05, %v426_v0  ;;  %v1267_v4 = vadd.f32 1e-05, %v1251_v28 }
 0x7a1   :  { %v1548_v21 = vpop.permute.xlu1 %1547  ;;  %1940 = vrsqrt.f32 %v436_v8  ;;  %v1269_v8 = vadd.f32 1e-05, %v1253_v6  ;;  %v3965_v6 = vld [vmem:[#allocation20_spill] sm:$0xff] }
 0x7a2   :  { %v1608_v16 = vsel %vm272_vm1, %v1548_v21, 0.0  ;;  %v428_v21 = vmul.f32 0.0625, %v2856_v13  ;;  %v417_v13 = vmul.f32 0.0625, %v2908_v14  ;;  %v1939_v26 = vpop.eup %1938 }
 0x7a3   :  { %1609 = vadd.xlane.f32.xlu1 %v1608_v16  ;;  %v3256_v16 = vpop.xlane.xlu0 %1238 }
 0x7a4   :  { %v444_v45 = vadd.f32 1e-05, %v428_v21  ;;  %v433_v59 = vadd.f32 1e-05, %v417_v13  ;;  %v3963_v13 = vld [vmem:[#allocation18_spill] sm:$0xff] }
 0x7a7   :  { %v3263_v53 = vpop.xlane.xlu0 %1244 }
 0x7ab   :  { %v3267_v0 = vpop.xlane.xlu0 %792  ;;  %v1941_v14 = vpop.eup %1940 }
 0x7d2   :  { %v3240_v52 = vpop.xlane.xlu1 %786 }
 0x7d6   :  { %v1552_v54 = vpop.permute.xlu1 %1551 }
 0x7d7   :  { %v1614_v27 = vsel %vm272_vm1, %v1552_v54, 0.0  ;;  %v438_v54 = vadd.f32 1e-05, %v422_v11  ;;  %v1265_v11 = vadd.f32 1e-05, %v1249_v61 }
 0x7d8   :  { %1615 = vadd.xlane.f32.xlu1 %v1614_v27  ;;  %v430_v27 = vmul.f32 0.0625, %v2867_v50  ;;  %v448_v50 = vadd.f32 1e-05, %v432_v60 }
 0x7d9   :  { %1942 = vrsqrt.f32 %v438_v54  ;;  %v3962_v54 = vld [vmem:[#allocation17_spill] sm:$0xff] }
 0x7da   :  { %v446_v35 = vadd.f32 1e-05, %v430_v27  ;;  %1944 = vrsqrt.f32 %v440_v57  ;;  %v466_v27 = vmul.f32 %v1939_v26, %v3962_v54 }
 0x7db   :  { %1946 = vrsqrt.f32 %v442_v42  ;;  %v435_v42 = vadd.f32 1e-05, %v419_v44 }
 0x7dc   :  { %1948 = vrsqrt.f32 %v444_v45  ;;  %v421_v45 = vmul.f32 0.0625, %v2931_v40  ;;  %v3966_v40 = vld [vmem:[#allocation21_spill] sm:$0xff] }
 0x7dd   :  { %1950 = vrsqrt.f32 %v446_v35  ;;  %v3274_v35 = vpop.xlane.xlu0 %1570 }
 0x7de   :  { %1952 = vrsqrt.f32 %v448_v50  ;;  %v468_v50 = vmul.f32 %v1941_v14, %v3963_v13  ;;  %v437_v30 = vadd.f32 1e-05, %v421_v45 }
 0x7df   :  { %1954 = vrsqrt.f32 %v1265_v11  ;;  %v488_v11 = vmul.f32 %v3197_v38, %v466_v27 }
 0x7e0   :  { %1956 = vrsqrt.f32 %v1267_v4  ;;  %v3964_v4 = vld [vmem:[#allocation19_spill] sm:$0xff] }
 0x7e1   :  { %1958 = vrsqrt.f32 %v433_v59  ;;  %v3283_v31 = vpop.xlane.xlu0 %1576 }
 0x7e2   :  { %1960 = vrsqrt.f32 %v1269_v8  ;;  %v490_v8 = vmul.f32 %v3197_v38, %v468_v50 }
 0x7e3   :  { %v1943_v57 = vpop.eup %1942  ;;  %1962 = vrsqrt.f32 %v435_v42  ;;  %v3290_v42 = vadd.f32 %v3246_v51, %v488_v11 }
 0x7e4   :  { %v1945_v21 = vpop.eup %1944  ;;  %v470_v59 = vmul.f32 %v1943_v57, %v3964_v4  ;;  %v425_v57 = vmul.f32 0.0625, %v2946_v56  ;;  %1964 = vrsqrt.f32 %v437_v30  ;;  %v3302_v11 = vadd.f32 %v3246_v51, %v490_v8  ;;  %v3970_v4 = vld [vmem:[#allocation32_spill] sm:$0xff] }
 0x7e5   :  { %v1947_v60 = vpop.eup %1946  ;;  %v472_v44 = vmul.f32 %v1945_v21, %v3965_v6  ;;  %1966 = vrsqrt.f32 %v439_v2  ;;  %v3971_v6 = vld [vmem:[#allocation53_spill] sm:$0xff] }
 0x7e6   :  { %v1949_v12 = vpop.eup %1948  ;;  %v474_v54 = vmul.f32 %v1947_v60, %v3966_v40  ;;  %v3313_v40 = vpop.xlane.xlu0 %1582 }
 0x7e7   :  { %v1951_v28 = vpop.eup %1950  ;;  %v476_v58 = vmul.f32 %v1949_v12, %v3967_v9  ;;  %v492_v9 = vmul.f32 %v3197_v38, %v470_v59  ;;  %v494_v60 = vmul.f32 %v3197_v38, %v472_v44  ;;  %v429_v44 = vmul.f32 0.0625, %v3971_v6 }
 0x7e8   :  { %v1953_v26 = vpop.eup %1952  ;;  %v478_v23 = vmul.f32 %v1951_v28, %v3968_v18  ;;  %v427_v18 = vmul.f32 0.0625, %v2953_v43  ;;  %v496_v45 = vmul.f32 %v3197_v38, %v474_v54  ;;  %v441_v43 = vadd.f32 1e-05, %v425_v57 }
 0x7e9   :  { %880 = vrot.lane.b32.xlu1 %v3246_v51, %s2144_s22  ;;  %v1955_v24 = vpop.eup %1954  ;;  %v498_v12 = vmul.f32 %v3197_v38, %v476_v58  ;;  %v480_v28 = vmul.f32 %v1953_v26, %v3969_v22  ;;  %v3307_v58 = vadd.f32 %v3246_v51, %v492_v9  ;;  %v3310_v30 = vadd.f32 %v3246_v51, %v494_v60  ;;  %v3972_v26 = vld [vmem:[#allocation54_spill] sm:$0xff] }
 0x7ea   :  { %v1957_v14 = vpop.eup %1956  ;;  %v500_v56 = vmul.f32 %v3197_v38, %v478_v23  ;;  %v1297_v13 = vmul.f32 %v1955_v24, %v2648_v34  ;;  %v443_v23 = vadd.f32 1e-05, %v427_v18  ;;  %v431_v34 = vmul.f32 0.0625, %v3972_v26 }
 0x7eb   :  { %v1959_v21 = vpop.eup %1958  ;;  %v1299_v50 = vmul.f32 %v1957_v14, %v2680_v37  ;;  %v3316_v2 = vadd.f32 %v3246_v51, %v496_v45  ;;  %v3319_v54 = vadd.f32 %v3246_v51, %v498_v12  ;;  %v502_v24 = vmul.f32 %v3197_v38, %v480_v28  ;;  %v3974_v28 = vld [vmem:[#allocation33_spill] sm:$0xff] }
 0x7ec   :  { %v465_v59 = vmul.f32 %v1959_v21, %v3970_v4  ;;  %v1961_v37 = vpop.eup %1960  ;;  %v1255_v14 = vmul.f32 0.0625, %v3059_v17  ;;  %v3326_v21 = vadd.f32 %v3246_v51, %v500_v56  ;;  %v1313_v9 = vmul.f32 %v3197_v38, %v1297_v13  ;;  %v3976_v13 = vld [vmem:[#allocation34_spill] sm:$0xff] }
 0x7ed   :  { %v1963_v57 = vpop.eup %1962  ;;  %v1315_v60 = vmul.f32 %v3197_v38, %v1299_v50  ;;  %v1257_v18 = vmul.f32 0.0625, %v3065_v15  ;;  %1968 = vrsqrt.f32 %v441_v43  ;;  %v445_v12 = vadd.f32 1e-05, %v429_v44 }
 0x7ee   :  { %3973 = vst [vmem:[#allocation17_spill] sm:$0xff] %v3326_v21  ;;  %v487_v45 = vmul.f32 %v3197_v38, %v465_v59  ;;  %v1250_v22 = vmul.f32 0.0625, %v3010_v29  ;;  %v1301_v17 = vmul.f32 %v1961_v37, %v3974_v28  ;;  %1970 = vrsqrt.f32 %v443_v23  ;;  %v3347_v23 = vpop.xlane.xlu0 %1588  ;;  %v3979_v28 = vld [vmem:[#allocation35_spill] sm:$0xff] }
 0x7ef   :  { %v447_v4 = vadd.f32 1e-05, %v431_v34  ;;  %v1252_v6 = vmul.f32 0.0625, %v3012_v63  ;;  %v3336_v56 = vadd.f32 %v3246_v51, %v502_v24  ;;  %v467_v26 = vmul.f32 %v1963_v57, %v3976_v13  ;;  %v1965_v63 = vpop.eup %1964  ;;  %v3980_v13 = vld [vmem:[#allocation36_spill] sm:$0xff] }
 0x7f0   :  { %v1271_v50 = vadd.f32 1e-05, %v1255_v14  ;;  %v1254_v15 = vmul.f32 0.0625, %v3019_v39  ;;  %v3341_v59 = vadd.f32 %v3246_v51, %v1313_v9  ;;  %v3344_v43 = vadd.f32 %v3246_v51, %v1315_v60  ;;  %v1967_v14 = vpop.eup %1966 }
 0x7f1   :  { %3975 = vst [vmem:[#allocation18_spill] sm:$0xff] %v3336_v56  ;;  %v1273_v29 = vadd.f32 1e-05, %v1257_v18  ;;  %v1259_v44 = vmul.f32 0.0625, %v3090_v62  ;;  %v3350_v34 = vadd.f32 %v3246_v51, %v487_v45  ;;  %1972 = vrsqrt.f32 %v445_v12 }
 0x7f2   :  { %3977 = vst [vmem:[#allocation19_spill] sm:$0xff] %v3341_v59  ;;  %3978 = vst [vmem:[#allocation20_spill] sm:$0xff] %v3344_v43  ;;  %v1266_v37 = vadd.f32 1e-05, %v1250_v22  ;;  %v1256_v24 = vmul.f32 0.0625, %v3040_v10  ;;  %v1317_v57 = vmul.f32 %v3197_v38, %v1301_v17  ;;  %1974 = vrsqrt.f32 %v447_v4 }
 0x7f3   :  { %v1268_v9 = vadd.f32 1e-05, %v1252_v6  ;;  %v799_v60 = vmul.f32 0.0625, %v3144_v25  ;;  %v489_v62 = vmul.f32 %v3197_v38, %v467_v26  ;;  %1976 = vrsqrt.f32 %v1271_v50 }
 0x7f4   :  { %v1270_v18 = vadd.f32 1e-05, %v1254_v15  ;;  %v1258_v45 = vmul.f32 0.0625, %v3070_v1  ;;  %v469_v12 = vmul.f32 %v1965_v63, %v3979_v28  ;;  %1978 = vrsqrt.f32 %v1273_v29  ;;  %v3367_v1 = vpop.xlane.xlu0 %1594 }
 0x7f5   :  { %v1275_v22 = vadd.f32 1e-05, %v1259_v44  ;;  %v801_v10 = vmul.f32 0.0625, %v3149_v5  ;;  %v471_v43 = vmul.f32 %v1967_v14, %v3980_v13  ;;  %1980 = vrsqrt.f32 %v1266_v37 }
 0x7f6   :  { %v1272_v17 = vadd.f32 1e-05, %v1256_v24  ;;  %v1260_v4 = vmul.f32 0.0625, %v3111_v3  ;;  %v3364_v25 = vadd.f32 %v3246_v51, %v1317_v57  ;;  %1982 = vrsqrt.f32 %v1268_v9  ;;  %v3982_v9 = vld [vmem:[#allocation37_spill] sm:$0xff] }
 0x7f7   :  { %v815_v6 = vadd.f32 1e-05, %v799_v60  ;;  %v803_v26 = vmul.f32 0.0625, %v3156_v49  ;;  %v1969_v50 = vpop.eup %1968  ;;  %v3370_v15 = vadd.f32 %v3246_v51, %v489_v62  ;;  %1984 = vrsqrt.f32 %v1270_v18 }
 0x7f8   :  { %3981 = vst [vmem:[#allocation21_spill] sm:$0xff] %v3364_v25  ;;  %v1274_v5 = vadd.f32 1e-05, %v1258_v45  ;;  %v798_v29 = vmul.f32 0.0625, %v3135_v19  ;;  %v1971_v3 = vpop.eup %1970  ;;  %v491_v63 = vmul.f32 %v3197_v38, %v469_v12  ;;  %1986 = vrsqrt.f32 %v1275_v22  ;;  %v3983_v45 = vld [vmem:[#allocation38_spill] sm:$0xff]  ;;  %v1601_v13 = vpop.xlane.xlu0 %1600 }
 0x7f9   :  { %v817_v37 = vadd.f32 1e-05, %v801_v10  ;;  %v805_v24 = vmul.f32 0.0625, %v3161_v55  ;;  %v493_v49 = vmul.f32 %v3197_v38, %v471_v43  ;;  %1988 = vrsqrt.f32 %v1272_v17 }
 0x7fa   :  { %v1276_v14 = vadd.f32 1e-05, %v1260_v4  ;;  %v797_v57 = vmul.f32 0.0625, %v3159_v36  ;;  %v473_v60 = vmul.f32 %v1969_v50, %v3982_v9  ;;  %1990 = vrsqrt.f32 %v815_v6 }
 0x7fb   :  { %v819_v62 = vadd.f32 1e-05, %v803_v26  ;;  %v808_v19 = vmul.f32 0.0625, %v3166_v46  ;;  %v1973_v18 = vpop.eup %1972  ;;  %v475_v28 = vmul.f32 %v1971_v3, %v3983_v45  ;;  %1992 = vrsqrt.f32 %v1274_v5 }
 0x7fc   :  { %v814_v12 = vadd.f32 1e-05, %v798_v29  ;;  %v807_v22 = vmul.f32 0.0625, %v3169_v7  ;;  %v1975_v55 = vpop.eup %1974  ;;  %v3384_v43 = vadd.f32 %v3246_v51, %v491_v63  ;;  %1994 = vrsqrt.f32 %v817_v37 }
 0x7fd   :  { %v821_v10 = vadd.f32 1e-05, %v805_v24  ;;  %v800_v36 = vmul.f32 0.0625, %v3163_v32  ;;  %v1977_v17 = vpop.eup %1976  ;;  %v3388_v4 = vadd.f32 %v3246_v51, %v493_v49  ;;  %1996 = vrsqrt.f32 %v1276_v14 }
 0x7fe   :  { %v813_v46 = vadd.f32 1e-05, %v797_v57  ;;  %v810_v6 = vmul.f32 0.0625, %v3176_v20  ;;  %v1979_v7 = vpop.eup %1978  ;;  %v495_v50 = vmul.f32 %v3197_v38, %v473_v60  ;;  %1998 = vrsqrt.f32 %v819_v62  ;;  %v3984_v20 = vld [vmem:[#allocation39_spill] sm:$0xff]  ;;  %v3985_v60 = vld [vmem:[#allocation41_spill] sm:$0xff] }
 0x7ff   :  { %v824_v5 = vadd.f32 1e-05, %v808_v19  ;;  %v802_v29 = vmul.f32 0.0625, %v3226_v33  ;;  %v3395_v3 = vpop.eup %1980  ;;  %v497_v32 = vmul.f32 %v3197_v38, %v475_v28  ;;  %2000 = vrsqrt.f32 %v814_v12  ;;  %v1607_v12 = vpop.xlane.xlu0 %1606 }
 0x800   :  { %v823_v63 = vadd.f32 1e-05, %v807_v22  ;;  %v1261_v37 = vmul.f32 0.0625, %v3256_v16  ;;  %v3399_v24 = vpop.eup %1982  ;;  %v477_v49 = vmul.f32 %v1973_v18, %v3984_v20  ;;  %2002 = vrsqrt.f32 %v821_v10 }
 0x801   :  { %v816_v14 = vadd.f32 1e-05, %v800_v36  ;;  %v1263_v57 = vmul.f32 0.0625, %v3263_v53  ;;  %v3403_v9 = vpop.eup %1984  ;;  %v479_v33 = vmul.f32 %v1975_v55, %v3985_v60  ;;  %2004 = vrsqrt.f32 %v813_v46 }
 0x802   :  { %v826_v62 = vadd.f32 1e-05, %v810_v6  ;;  %v811_v19 = vmul.f32 0.0625, %v3267_v0  ;;  %v3407_v45 = vpop.eup %1986  ;;  %v3410_v16 = vadd.f32 %v3246_v51, %v495_v50  ;;  %2006 = vrsqrt.f32 %v824_v5 }
 0x803   :  { %v818_v28 = vadd.f32 1e-05, %v802_v29  ;;  %v1617_v18 = vmul.f32 0.0625, %v3274_v35  ;;  %v3413_v22 = vpop.eup %1988  ;;  %v3416_v53 = vadd.f32 %v3246_v51, %v497_v32  ;;  %2008 = vrsqrt.f32 %v823_v63 }
 0x804   :  { %v1277_v55 = vadd.f32 1e-05, %v1261_v37  ;;  %v804_v10 = vmul.f32 0.0625, %v3231_v48  ;;  %v3421_v36 = vpop.eup %1990  ;;  %v499_v46 = vmul.f32 %v3197_v38, %v477_v49  ;;  %2010 = vrsqrt.f32 %v816_v14  ;;  %v3986_v48 = vld [vmem:[#allocation42_spill] sm:$0xff] }
 0x805   :  { %v1279_v6 = vadd.f32 1e-05, %v1263_v57  ;;  %v1619_v35 = vmul.f32 0.0625, %v3283_v31  ;;  %v3425_v50 = vpop.eup %1992  ;;  %v501_v5 = vmul.f32 %v3197_v38, %v479_v33  ;;  %2012 = vrsqrt.f32 %v826_v62  ;;  %v3987_v57 = vld [vmem:[#allocation45_spill] sm:$0xff] }
 0x806   :  { %v827_v29 = vadd.f32 1e-05, %v811_v19  ;;  %v1621_v32 = vmul.f32 0.0625, %v3313_v40  ;;  %v3429_v63 = vpop.eup %1994  ;;  %v1303_v37 = vmul.f32 %v1977_v17, %v3986_v48  ;;  %2014 = vrsqrt.f32 %v818_v28  ;;  %v1613_v28 = vpop.xlane.xlu0 %1612 }
 0x807   :  { %v3271_v61 = vpop.xlane.xlu1 %1241  ;;  %v1633_v20 = vadd.f32 1e-05, %v1617_v18  ;;  %v1623_v49 = vmul.f32 0.0625, %v3347_v23  ;;  %v3433_v14 = vpop.eup %1996  ;;  %v1305_v31 = vmul.f32 %v1979_v7, %v3987_v57  ;;  %2016 = vrsqrt.f32 %v1277_v55 }
 0x808   :  { %v820_v60 = vadd.f32 1e-05, %v804_v10  ;;  %v1625_v33 = vmul.f32 0.0625, %v3367_v1  ;;  %v3437_v62 = vpop.eup %1998  ;;  %v3440_v40 = vadd.f32 %v3246_v51, %v499_v46  ;;  %2018 = vrsqrt.f32 %v1279_v6 }
 0x809   :  { %v1635_v19 = vadd.f32 1e-05, %v1619_v35  ;;  %v1627_v17 = vmul.f32 0.0625, %v1601_v13  ;;  %v3442_v18 = vpop.eup %2000  ;;  %v3445_v23 = vadd.f32 %v3246_v51, %v501_v5  ;;  %2020 = vrsqrt.f32 %v827_v29  ;;  %v3989_v29 = vld [vmem:[#allocation47_spill] sm:$0xff] }
 0x80a   :  { %v1637_v7 = vadd.f32 1e-05, %v1621_v32  ;;  %v806_v55 = vmul.f32 0.0625, %v3236_v41  ;;  %v3448_v1 = vpop.eup %2002  ;;  %v1319_v48 = vmul.f32 %v3197_v38, %v1303_v37  ;;  %2022 = vrsqrt.f32 %v1633_v20  ;;  %v3990_v20 = vld [vmem:[#allocation48_spill] sm:$0xff] }
 0x80b   :  { %v3287_v27 = vpop.xlane.xlu1 %1247  ;;  %3988 = vst [vmem:[#allocation23_spill] sm:$0xff] %v3445_v23  ;;  %v1639_v46 = vadd.f32 1e-05, %v1623_v49  ;;  %v1629_v6 = vmul.f32 0.0625, %v1607_v12  ;;  %v3451_v35 = vpop.eup %2004  ;;  %v1321_v13 = vmul.f32 %v3197_v38, %v1305_v31  ;;  %2024 = vrsqrt.f32 %v820_v60 }
 0x80c   :  { %v1641_v57 = vadd.f32 1e-05, %v1625_v33  ;;  %v1631_v5 = vmul.f32 0.0625, %v1613_v28  ;;  %v3454_v25 = vpop.eup %2006  ;;  %v1298_v41 = vmul.f32 %v3395_v3, %v3989_v29  ;;  %2026 = vrsqrt.f32 %v1635_v19 }
 0x80d   :  { %v1643_v32 = vadd.f32 1e-05, %v1627_v17  ;;  %v809_v59 = vmul.f32 0.0625, %v3240_v52  ;;  %v3459_v37 = vpop.eup %2008  ;;  %v1300_v12 = vmul.f32 %v3399_v24, %v3990_v20  ;;  %2028 = vrsqrt.f32 %v1637_v7 }
 0x80e   :  { %v822_v49 = vadd.f32 1e-05, %v806_v55  ;;  %v1262_v31 = vmul.f32 0.0625, %v3271_v61  ;;  %v3464_v33 = vpop.eup %2010  ;;  %v3467_v28 = vadd.f32 %v3246_v51, %v1319_v48  ;;  %2030 = vrsqrt.f32 %v1639_v46 }
 0x80f   :  { %v3323_v8 = vpop.xlane.xlu1 %795  ;;  %v1645_v3 = vadd.f32 1e-05, %v1629_v6  ;;  %v1264_v19 = vmul.f32 0.0625, %v3287_v27  ;;  %v3470_v52 = vpop.eup %2012  ;;  %v3473_v17 = vadd.f32 %v3246_v51, %v1321_v13  ;;  %2032 = vrsqrt.f32 %v1641_v57  ;;  %v3993_v57 = vld [vmem:[#allocation22_spill] sm:$0xff] }
 0x810   :  { %3991 = vst [vmem:[#allocation24_spill] sm:$0xff] %v3467_v28  ;;  %v1647_v24 = vadd.f32 1e-05, %v1631_v5  ;;  %v812_v7 = vmul.f32 0.0625, %v3323_v8  ;;  %v3476_v61 = vpop.eup %2014  ;;  %v1314_v55 = vmul.f32 %v3197_v38, %v1298_v41  ;;  %2034 = vrsqrt.f32 %v1643_v32 }
 0x811   :  { %3992 = vst [vmem:[#allocation25_spill] sm:$0xff] %v3473_v17  ;;  %v825_v48 = vadd.f32 1e-05, %v809_v59  ;;  %v2017_v6 = vpop.eup %2016  ;;  %v1316_v27 = vmul.f32 %v3197_v38, %v1300_v12  ;;  %2036 = vrsqrt.f32 %v822_v49  ;;  %v1278_v29 = vadd.f32 1e-05, %v1262_v31  ;;  %v3994_v59 = vld [vmem:[#allocation11_spill] sm:$0xff] }
 0x812   :  { %v2019_v20 = vpop.eup %2018  ;;  %v1302_v5 = vmul.f32 %v3403_v9, %v3993_v57  ;;  %2038 = vrsqrt.f32 %v1645_v3  ;;  %v1280_v8 = vadd.f32 1e-05, %v1264_v19  ;;  %v828_v32 = vadd.f32 1e-05, %v812_v7 }
 0x813   :  { %v3353_v39 = vpop.xlane.xlu1 %1573  ;;  %v3485_v41 = vpop.eup %2020  ;;  %2040 = vrsqrt.f32 %v1647_v24 }
 0x814   :  { %v1618_v46 = vmul.f32 0.0625, %v3353_v39  ;;  %v1307_v39 = vmul.f32 %v3407_v45, %v3994_v59  ;;  %v3490_v31 = vpop.eup %2022  ;;  %2042 = vrsqrt.f32 %v825_v48  ;;  %v3997_v59 = vld [vmem:[#allocation14_spill] sm:$0xff] }
 0x815   :  { %v3494_v19 = vpop.eup %2024  ;;  %2044 = vrsqrt.f32 %v1278_v29  ;;  %v1309_v29 = vmul.f32 %v2017_v6, %v3116_v47  ;;  %v3511_v47 = vadd.f32 %v3246_v51, %v1316_v27 }
 0x816   :  { %v1634_v9 = vadd.f32 1e-05, %v1618_v46  ;;  %v2027_v7 = vpop.eup %2026  ;;  %2046 = vrsqrt.f32 %v1280_v8  ;;  %v3998_v8 = vld [vmem:[#allocation69_spill] sm:$0xff] }
 0x817   :  { %v3373_v44 = vpop.xlane.xlu1 %1579  ;;  %v2029_v21 = vpop.eup %2028  ;;  %2048 = vrsqrt.f32 %v828_v32  ;;  %4000 = vst [vmem:[#allocation53_spill] sm:$0xff] %v3511_v47 }
 0x818   :  { %v1620_v13 = vmul.f32 0.0625, %v3373_v44  ;;  %v3995_v44 = vld [vmem:[#allocation26_spill] sm:$0xff]  ;;  %v2031_v46 = vpop.eup %2030  ;;  %2050 = vrsqrt.f32 %v1634_v9 }
 0x819   :  { %v1304_v28 = vmul.f32 %v3413_v22, %v3995_v44  ;;  %v1318_v22 = vmul.f32 %v3197_v38, %v1302_v5  ;;  %v3507_v5 = vadd.f32 %v3246_v51, %v1314_v55  ;;  %v4004_v55 = vld [vmem:[#allocation29_spill] sm:$0xff] }
 0x81a   :  { %v1636_v45 = vadd.f32 1e-05, %v1620_v13  ;;  %v2033_v13 = vpop.eup %2032 }
 0x81b   :  { %v3391_v26 = vpop.xlane.xlu1 %1585  ;;  %v2035_v44 = vpop.eup %2034  ;;  %3999 = vst [vmem:[#allocation32_spill] sm:$0xff] %v3507_v5  ;;  %v3514_v6 = vadd.f32 %v3246_v51, %v1318_v22  ;;  %v4009_v22 = vld [vmem:[#allocation27_spill] sm:$0xff]  ;;  %v4040_v5 = vld [vmem:[#allocation68_spill] sm:$0xff] }
 0x81c   :  { %v1622_v17 = vmul.f32 0.0625, %v3391_v26  ;;  %v3996_v26 = vld [vmem:[#allocation13_spill] sm:$0xff]  ;;  %2052 = vrsqrt.f32 %v1636_v45 }
 0x81d   :  { %v1306_v57 = vmul.f32 %v3425_v50, %v3996_v26  ;;  %v1320_v50 = vmul.f32 %v3197_v38, %v1304_v28  ;;  %v2037_v28 = vpop.eup %2036  ;;  %4001 = vst [vmem:[#allocation54_spill] sm:$0xff] %v3514_v6  ;;  %v4006_v26 = vld [vmem:[#allocation31_spill] sm:$0xff] }
 0x81e   :  { %v1638_v56 = vadd.f32 1e-05, %v1622_v17  ;;  %v1311_v17 = vmul.f32 %v2019_v20, %v3998_v8  ;;  %v2039_v20 = vpop.eup %2038 }
 0x81f   :  { %v3419_v0 = vpop.xlane.xlu1 %1591  ;;  %v3520_v9 = vadd.f32 %v3246_v51, %v1320_v50  ;;  %v4010_v50 = vld [vmem:[#allocation12_spill] sm:$0xff] }
 0x820   :  { %v1624_v12 = vmul.f32 0.0625, %v3419_v0  ;;  %v1308_v0 = vmul.f32 %v3433_v14, %v3997_v59  ;;  %v1322_v14 = vmul.f32 %v3197_v38, %v1306_v57  ;;  %2054 = vrsqrt.f32 %v1638_v56 }
 0x821   :  { %4003 = vst [vmem:[#allocation34_spill] sm:$0xff] %v3520_v9  ;;  %v1325_v56 = vmul.f32 %v3197_v38, %v1309_v29  ;;  %v849_v57 = vmul.f32 %v3429_v63, %v4006_v26  ;;  %v1327_v45 = vmul.f32 %v3197_v38, %v1311_v17  ;;  %v853_v29 = vmul.f32 %v3448_v1, %v4010_v50  ;;  %v4013_v17 = vld [vmem:[#allocation56_spill] sm:$0xff]  ;;  %v4015_v26 = vld [vmem:[#allocation50_spill] sm:$0xff] }
 0x822   :  { %v1640_v48 = vadd.f32 1e-05, %v1624_v12  ;;  %v3526_v27 = vadd.f32 %v3246_v51, %v1322_v14  ;;  %v4012_v14 = vld [vmem:[#allocation46_spill] sm:$0xff] }
 0x823   :  { %v1598_v10 = vpop.xlane.xlu1 %1597  ;;  %v856_v8 = vmul.f32 %v3454_v25, %v4012_v14  ;;  %v3553_v1 = vadd.f32 %v3246_v51, %v1325_v56  ;;  %v3558_v25 = vadd.f32 %v3246_v51, %v1327_v45  ;;  %v4021_v14 = vld [vmem:[#allocation40_spill] sm:$0xff]  ;;  %v4023_v56 = vld [vmem:[#allocation55_spill] sm:$0xff] }
 0x824   :  { %v1626_v3 = vmul.f32 0.0625, %v1598_v10  ;;  %v1323_v10 = vmul.f32 %v3197_v38, %v1307_v39  ;;  %v1324_v39 = vmul.f32 %v3197_v38, %v1308_v0  ;;  %2056 = vrsqrt.f32 %v1640_v48  ;;  %4005 = vst [vmem:[#allocation35_spill] sm:$0xff] %v3526_v27  ;;  %v4008_v0 = vld [vmem:[#allocation49_spill] sm:$0xff] }
 0x825   :  { %4017 = vst [vmem:[#allocation37_spill] sm:$0xff] %v3553_v1  ;;  %4018 = vst [vmem:[#allocation38_spill] sm:$0xff] %v3558_v25 }
 0x826   :  { %v3517_v12 = vadd.f32 %v3246_v51, %v1323_v10  ;;  %v3532_v59 = vadd.f32 %v3246_v51, %v1324_v39  ;;  %v846_v10 = vmul.f32 %v3442_v18, %v4009_v22  ;;  %v858_v18 = vmul.f32 %v3470_v52, %v4015_v26 }
 0x827   :  { %v852_v52 = vmul.f32 %v3494_v19, %v4021_v14  ;;  %v1669_v26 = vmul.f32 %v2029_v21, %v4023_v56 }
 0x828   :  { %4002 = vst [vmem:[#allocation33_spill] sm:$0xff] %v3517_v12  ;;  %4007 = vst [vmem:[#allocation36_spill] sm:$0xff] %v3532_v59  ;;  %v4025_v59 = vld [vmem:[#allocation60_spill] sm:$0xff] }
 0x829   :  { %v1673_v12 = vmul.f32 %v2033_v13, %v4025_v59 }
 0x82c   :  { %v1604_v60 = vpop.xlane.xlu1 %1603 }
 0x82d   :  { %v1628_v24 = vmul.f32 0.0625, %v1604_v60  ;;  %v1642_v60 = vadd.f32 1e-05, %v1626_v3  ;;  %v847_v3 = vmul.f32 %v3421_v36, %v4004_v55  ;;  %v851_v36 = vmul.f32 %v3437_v62, %v4008_v0  ;;  %v4014_v55 = vld [vmem:[#allocation28_spill] sm:$0xff] }
 0x82e   :  { %v848_v62 = vmul.f32 %v3464_v33, %v4014_v55 }
 0x82f   :  { %2058 = vrsqrt.f32 %v1642_v60  ;;  %v4011_v60 = vld [vmem:[#allocation44_spill] sm:$0xff] }
 0x830   :  { %v1610_v49 = vpop.xlane.xlu1 %1609  ;;  %v845_v63 = vmul.f32 %v3451_v35, %v4011_v60  ;;  %v3555_v35 = vpop.permute.xlu0 %861  ;;  %v4020_v60 = vld [vmem:[#allocation61_spill] sm:$0xff] }
 0x831   :  { %v1630_v23 = vmul.f32 0.0625, %v1610_v49  ;;  %v1644_v49 = vadd.f32 1e-05, %v1628_v24  ;;  %v1665_v33 = vmul.f32 %v3490_v31, %v4020_v60  ;;  %v867_v31 = vmul.f32 %v3555_v35, %v848_v62  ;;  %v4028_v62 = vld [vmem:[#allocation62_spill] sm:$0xff] }
 0x832   :  { %v864_v25 = vmul.f32 %v3555_v35, %v845_v63  ;;  %v868_v19 = vmul.f32 %v3555_v35, %v849_v57  ;;  %v870_v21 = vmul.f32 %v3555_v35, %v851_v36  ;;  %v872_v13 = vmul.f32 %v3555_v35, %v853_v29  ;;  %v4026_v63 = vld [vmem:[#allocation72_spill] sm:$0xff] }
 0x833   :  { %v1646_v32 = vadd.f32 1e-05, %v1630_v23  ;;  %v2041_v23 = vpop.eup %2040  ;;  %2060 = vrsqrt.f32 %v1644_v49  ;;  %v855_v49 = vmul.f32 %v3459_v37, %v4013_v17  ;;  %v4019_v37 = vld [vmem:[#allocation59_spill] sm:$0xff]  ;;  %v875_v57 = vmul.f32 %v3555_v35, %v856_v8 }
 0x834   :  { %v2043_v24 = vpop.eup %2042  ;;  %v859_v50 = vmul.f32 %v3485_v41, %v4019_v37  ;;  %v865_v41 = vmul.f32 %v3555_v35, %v846_v10  ;;  %v866_v37 = vmul.f32 %v3555_v35, %v847_v3  ;;  %v3588_v29 = vmul.f32 %v1665_v33, %v3555_v35  ;;  %v4032_v8 = vld [vmem:[#allocation67_spill] sm:$0xff] }
 0x835   :  { %2062 = vrsqrt.f32 %v1646_v32  ;;  %v2045_v48 = vpop.eup %2044  ;;  %v4016_v32 = vld [vmem:[#allocation30_spill] sm:$0xff]  ;;  %v874_v59 = vmul.f32 %v3555_v35, %v855_v49 }
 0x836   :  { %v2047_v39 = vpop.eup %2046  ;;  %v850_v0 = vmul.f32 %v3476_v61, %v4016_v32  ;;  %v4022_v61 = vld [vmem:[#allocation65_spill] sm:$0xff]  ;;  %v1310_v10 = vmul.f32 %v2045_v48, %v4026_v63  ;;  %v878_v36 = vmul.f32 %v3555_v35, %v859_v50  ;;  %v3594_v48 = vmul.f32 %v1669_v26, %v3555_v35 }
 0x837   :  { %v2049_v22 = vpop.eup %2048  ;;  %v1667_v55 = vmul.f32 %v2027_v7, %v4022_v61  ;;  %v4024_v32 = vld [vmem:[#allocation57_spill] sm:$0xff]  ;;  %v3602_v50 = vmul.f32 %v1673_v12, %v3555_v35 }
 0x838   :  { %v2051_v17 = vpop.eup %2050  ;;  %v1671_v1 = vmul.f32 %v2031_v46, %v4024_v32  ;;  %v869_v7 = vmul.f32 %v3555_v35, %v850_v0  ;;  %v871_v46 = vmul.f32 %v3555_v35, %v852_v52  ;;  %v4027_v61 = vld [vmem:[#allocation73_spill] sm:$0xff]  ;;  %v1675_v32 = vmul.f32 %v2035_v44, %v4028_v62  ;;  %v4029_v52 = vld [vmem:[#allocation43_spill] sm:$0xff]  ;;  %4030 = vst [vmem:[#allocation39_spill] sm:$0xff] %v3594_v48  ;;  %v4031_v44 = vld [vmem:[#allocation64_spill] sm:$0xff] }
 0x839   :  { %v2053_v45 = vpop.eup %2052  ;;  %v1312_v3 = vmul.f32 %v2047_v39, %v4027_v61  ;;  %v877_v0 = vmul.f32 %v3555_v35, %v858_v18  ;;  %v854_v9 = vmul.f32 %v2037_v28, %v4029_v52  ;;  %v3591_v49 = vmul.f32 %v1667_v55, %v3555_v35  ;;  %4034 = vst [vmem:[#allocation42_spill] sm:$0xff] %v3602_v50  ;;  %v4035_v28 = vld [vmem:[#allocation58_spill] sm:$0xff]  ;;  %v4036_v52 = vld [vmem:[#allocation51_spill] sm:$0xff] }
 0x83a   :  { %v2055_v60 = vpop.eup %2054  ;;  %v1677_v63 = vmul.f32 %v2039_v20, %v4031_v44  ;;  %v1679_v61 = vmul.f32 %v2041_v23, %v4032_v8  ;;  %v3599_v18 = vmul.f32 %v1671_v1, %v3555_v35  ;;  %v857_v33 = vmul.f32 %v2043_v24, %v4035_v28  ;;  %v4037_v20 = vld [vmem:[#allocation52_spill] sm:$0xff]  ;;  %v4038_v23 = vld [vmem:[#allocation63_spill] sm:$0xff]  ;;  %v4039_v1 = vld [vmem:[#allocation66_spill] sm:$0xff] }
 0x83b   :  { %v2057_v14 = vpop.eup %2056  ;;  %v1326_v62 = vmul.f32 %v3197_v38, %v1310_v10  ;;  %v1328_v55 = vmul.f32 %v3197_v38, %v1312_v3  ;;  %v860_v26 = vmul.f32 %v2049_v22, %v4036_v52  ;;  %v3609_v6 = vmul.f32 %v1675_v32, %v3555_v35  ;;  %v4041_v50 = vld [vmem:[#allocation70_spill] sm:$0xff]  ;;  %v4042_v24 = vld [vmem:[#allocation71_spill] sm:$0xff] }
 0x83c   :  { %v2059_v56 = vpop.eup %2058  ;;  %4033 = vst [vmem:[#allocation41_spill] sm:$0xff] %v3599_v18  ;;  %v1666_v44 = vmul.f32 %v2051_v17, %v4037_v20  ;;  %v1668_v8 = vmul.f32 %v2053_v45, %v4038_v23  ;;  %v1670_v47 = vmul.f32 %v2055_v60, %v4039_v1  ;;  %v1672_v12 = vmul.f32 %v2057_v14, %v4040_v5  ;;  %v4043_v10 = vld [vmem:[#allocation15_spill] sm:$0xff] }
 0x83d   :  { %v2061_v27 = vpop.eup %2060  ;;  %v1674_v18 = vmul.f32 %v2059_v56, %v4041_v50  ;;  %v873_v22 = vmul.f32 %v3555_v35, %v854_v9  ;;  %v3620_v3 = vmul.f32 %v1677_v63, %v3555_v35  ;;  %v3623_v17 = vmul.f32 %v1679_v61, %v3555_v35 }
 0x83e   :  { %v1676_v28 = vmul.f32 %v2061_v27, %v4042_v24  ;;  %v876_v60 = vmul.f32 %v3555_v35, %v857_v33  ;;  %v3627_v5 = vadd.f32 %v3246_v51, %v1326_v62  ;;  %v3630_v14 = vadd.f32 %v3246_v51, %v1328_v55 }
 0x83f   :  { %v2063_v39 = vpop.eup %2062  ;;  %v879_v27 = vmul.f32 %v3555_v35, %v860_v26  ;;  %v1682_v56 = vmul.f32 %v1666_v44, %v3555_v35  ;;  %v1684_v9 = vmul.f32 %v1668_v8, %v3555_v35  ;;  %v1686_v32 = vmul.f32 %v1670_v47, %v3555_v35  ;;  %v4047_v24 = vld [vmem:[#allocation39_spill] sm:$0xff] }
 0x840   :  { %v1678_v48 = vmul.f32 %v2063_v39, %v4043_v10  ;;  %v1688_v63 = vmul.f32 %v1672_v12, %v3555_v35  ;;  %v3638_v61 = vmul.f32 %v1674_v18, %v3555_v35  ;;  %v3641_v50 = vmul.f32 %v1676_v28, %v3555_v35 }
 0x842   :  { %v3644_v51 = vmul.f32 %v1678_v48, %v3555_v35 }
 0x865   :  { %v1616_v38 = vpop.xlane.xlu1 %1615 }
 0x866   :  { %v1632_v45 = vmul.f32 0.0625, %v1616_v38  ;;  %v4048_v38 = vld [vmem:[#allocation41_spill] sm:$0xff] }
 0x868   :  { %v1648_v39 = vadd.f32 1e-05, %v1632_v45 }
 0x869   :  { %v3646_v33 = vpop.permute.xlu1 %880 }
 0x86a   :  { %2064 = vrsqrt.f32 %v1648_v39  ;;  %v883_v62 = vadd.f32 %v3646_v33, %v864_v25  ;;  %v884_v55 = vadd.f32 %v3646_v33, %v865_v41  ;;  %v885_v47 = vadd.f32 %v3646_v33, %v866_v37 }
 0x86b   :  { %v886_v52 = vadd.f32 %v3646_v33, %v867_v31  ;;  %v887_v18 = vadd.f32 %v3646_v33, %v868_v19  ;;  %v888_v26 = vadd.f32 %v3646_v33, %v869_v7  ;;  %v889_v20 = vadd.f32 %v3646_v33, %v870_v21 }
 0x86c   :  { %v890_v48 = vadd.f32 %v3646_v33, %v871_v46  ;;  %v891_v44 = vadd.f32 %v3646_v33, %v872_v13  ;;  %v892_v23 = vadd.f32 %v3646_v33, %v873_v22  ;;  %v893_v25 = vadd.f32 %v3646_v33, %v874_v59 }
 0x86d   :  { %v894_v41 = vadd.f32 %v3646_v33, %v875_v57  ;;  %v895_v37 = vadd.f32 %v3646_v33, %v876_v60  ;;  %v896_v31 = vadd.f32 %v3646_v33, %v877_v0  ;;  %v897_v19 = vadd.f32 %v3646_v33, %v878_v36  ;;  %v4049_v60 = vld [vmem:[#allocation42_spill] sm:$0xff] }
 0x86e   :  { %v898_v7 = vadd.f32 %v3646_v33, %v879_v27  ;;  %v899_v21 = vsel %vm272_vm1, %v3350_v34, %v883_v62  ;;  %v900_v46 = vsel %vm272_vm1, %v3290_v42, %v884_v55  ;;  %v901_v13 = vsel %vm272_vm1, %v3370_v15, %v885_v47  ;;  %v4051_v47 = vld [vmem:[#allocation19_spill] sm:$0xff] }
 0x86f   :  { %v902_v59 = vsel %vm272_vm1, %v3302_v11, %v886_v52  ;;  %v903_v57 = vsel %vm272_vm1, %v3384_v43, %v887_v18  ;;  %v904_v0 = vsel %vm272_vm1, %v3307_v58, %v888_v26  ;;  %v905_v36 = vsel %vm272_vm1, %v3388_v4, %v889_v20  ;;  %915 = vst.msk [vmem:[#allocation7] sm:$0xff] %vm78_vm0, %v899_v21  ;;  %v4044_v43 = vld [vmem:[#allocation17_spill] sm:$0xff]  ;;  %v4045_v4 = vld [vmem:[#allocation23_spill] sm:$0xff]  ;;  %v4052_v52 = vld [vmem:[#allocation32_spill] sm:$0xff] }
 0x870   :  { %916 = vst.msk [vmem:[#allocation7 + $0x10] sm:$0xff] %vm78_vm0, %v900_v46  ;;  %917 = vst.msk [vmem:[#allocation7 + $0x20] sm:$0xff] %vm78_vm0, %v901_v13  ;;  %v906_v42 = vsel %vm272_vm1, %v3310_v30, %v890_v48  ;;  %v907_v11 = vsel %vm272_vm1, %v3410_v16, %v891_v44  ;;  %v908_v34 = vsel %vm272_vm1, %v3316_v2, %v892_v23  ;;  %v4053_v18 = vld [vmem:[#allocation20_spill] sm:$0xff]  ;;  %v4054_v20 = vld [vmem:[#allocation53_spill] sm:$0xff] }
 0x871   :  { %v909_v58 = vsel %vm272_vm1, %v3416_v53, %v893_v25  ;;  %918 = vst.msk [vmem:[#allocation7 + $0x30] sm:$0xff] %vm78_vm0, %v902_v59  ;;  %919 = vst.msk [vmem:[#allocation7 + $0x40] sm:$0xff] %vm78_vm0, %v903_v57  ;;  %v910_v30 = vsel %vm272_vm1, %v3319_v54, %v894_v41  ;;  %v911_v15 = vsel %vm272_vm1, %v3440_v40, %v895_v37  ;;  %v4046_v53 = vld [vmem:[#allocation18_spill] sm:$0xff]  ;;  %v4055_v48 = vld [vmem:[#allocation21_spill] sm:$0xff] }
 0x872   :  { %920 = vst.msk [vmem:[#allocation7 + $0x50] sm:$0xff] %vm78_vm0, %v904_v0  ;;  %921 = vst.msk [vmem:[#allocation7 + $0x60] sm:$0xff] %vm78_vm0, %v905_v36  ;;  %v912_v2 = vsel %vm272_vm1, %v4044_v43, %v896_v31  ;;  %v913_v16 = vsel %vm272_vm1, %v4045_v4, %v897_v19  ;;  %v914_v54 = vsel %vm272_vm1, %v4046_v53, %v898_v7  ;;  %v4056_v44 = vld [vmem:[#allocation54_spill] sm:$0xff]  ;;  %v4057_v23 = vld [vmem:[#allocation24_spill] sm:$0xff] }
 0x873   :  { %922 = vst.msk [vmem:[#allocation7 + $0x70] sm:$0xff] %vm78_vm0, %v906_v42  ;;  %923 = vst.msk [vmem:[#allocation7 + $0x80] sm:$0xff] %vm78_vm0, %v907_v11  ;;  %v1697_v40 = vadd.f32 %v3588_v29, %v3646_v33  ;;  %v1698_v8 = vadd.f32 %v1682_v56, %v3646_v33  ;;  %v1699_v1 = vadd.f32 %v3591_v49, %v3646_v33  ;;  %v4058_v25 = vld [vmem:[#allocation34_spill] sm:$0xff]  ;;  %v4059_v37 = vld [vmem:[#allocation25_spill] sm:$0xff] }
 0x874   :  { %924 = vst.msk [vmem:[#allocation7 + $0x90] sm:$0xff] %vm78_vm0, %v908_v34  ;;  %925 = vst.msk [vmem:[#allocation7 + $0xa0] sm:$0xff] %vm78_vm0, %v909_v58  ;;  %v1700_v12 = vadd.f32 %v1684_v9, %v3646_v33  ;;  %v1701_v28 = vadd.f32 %v4047_v24, %v3646_v33  ;;  %v1702_v10 = vadd.f32 %v1686_v32, %v3646_v33  ;;  %v2065_v45 = vpop.eup %2064  ;;  %v4050_v9 = vld [vmem:[#allocation16_spill] sm:$0xff]  ;;  %v4060_v19 = vld [vmem:[#allocation35_spill] sm:$0xff] }
 0x875   :  { %926 = vst.msk [vmem:[#allocation7 + $0xb0] sm:$0xff] %vm78_vm0, %v910_v30  ;;  %927 = vst.msk [vmem:[#allocation7 + $0xc0] sm:$0xff] %vm78_vm0, %v911_v15  ;;  %v1703_v22 = vadd.f32 %v4048_v38, %v3646_v33  ;;  %v1704_v29 = vadd.f32 %v1688_v63, %v3646_v33  ;;  %v1705_v27 = vadd.f32 %v4049_v60, %v3646_v33  ;;  %v4061_v46 = vld [vmem:[#allocation33_spill] sm:$0xff]  ;;  %v4062_v59 = vld [vmem:[#allocation36_spill] sm:$0xff] }
 0x876   :  { %928 = vst.msk [vmem:[#allocation7 + $0xd0] sm:$0xff] %vm78_vm0, %v912_v2  ;;  %929 = vst.msk [vmem:[#allocation7 + $0xe0] sm:$0xff] %vm78_vm0, %v913_v16  ;;  %v1706_v49 = vadd.f32 %v3638_v61, %v3646_v33  ;;  %v1707_v56 = vadd.f32 %v3609_v6, %v3646_v33  ;;  %v1680_v39 = vmul.f32 %v2065_v45, %v4050_v9  ;;  %v4063_v0 = vld [vmem:[#allocation37_spill] sm:$0xff]  ;;  %v4064_v42 = vld [vmem:[#allocation38_spill] sm:$0xff] }
 0x877   :  { %930 = vst.msk [vmem:[#allocation7 + $0xf0] sm:$0xff] %vm78_vm0, %v914_v54  ;;  %v1708_v32 = vadd.f32 %v3641_v50, %v3646_v33  ;;  %v1709_v62 = vadd.f32 %v3620_v3, %v3646_v33  ;;  %v1710_v63 = vadd.f32 %v3644_v51, %v3646_v33  ;;  %v1711_v55 = vadd.f32 %v3623_v17, %v3646_v33 }
 0x878   :  { %v1713_v61 = vsel %vm272_vm1, %v4051_v47, %v1697_v40  ;;  %v1714_v6 = vsel %vm272_vm1, %v4052_v52, %v1698_v8  ;;  %v1715_v26 = vsel %vm272_vm1, %v4053_v18, %v1699_v1  ;;  %v1696_v50 = vmul.f32 %v1680_v39, %v3555_v35 }
 0x879   :  { %v1716_v3 = vsel %vm272_vm1, %v4054_v20, %v1700_v12  ;;  %v1717_v51 = vsel %vm272_vm1, %v4055_v48, %v1701_v28  ;;  %v1718_v17 = vsel %vm272_vm1, %v4056_v44, %v1702_v10  ;;  %1730 = vst.msk [vmem:[#allocation7 + $0x8] sm:$0xff] %vm78_vm0, %v1713_v61  ;;  %1731 = vst.msk [vmem:[#allocation7 + $0x18] sm:$0xff] %vm78_vm0, %v1714_v6 }
 0x87a   :  { %1732 = vst.msk [vmem:[#allocation7 + $0x28] sm:$0xff] %vm78_vm0, %v1715_v26  ;;  %v1719_v35 = vsel %vm272_vm1, %v4057_v23, %v1703_v22  ;;  %v1720_v41 = vsel %vm272_vm1, %v4058_v25, %v1704_v29  ;;  %v1721_v31 = vsel %vm272_vm1, %v4059_v37, %v1705_v27  ;;  %v1722_v7 = vsel %vm272_vm1, %v4060_v19, %v1706_v49 }
 0x87b   :  { %1733 = vst.msk [vmem:[#allocation7 + $0x38] sm:$0xff] %vm78_vm0, %v1716_v3  ;;  %1734 = vst.msk [vmem:[#allocation7 + $0x48] sm:$0xff] %vm78_vm0, %v1717_v51  ;;  %v1712_v21 = vadd.f32 %v1696_v50, %v3646_v33  ;;  %v1723_v13 = vsel %vm272_vm1, %v4061_v46, %v1707_v56  ;;  %v1724_v57 = vsel %vm272_vm1, %v4062_v59, %v1708_v32 }
 0x87c   :  { %1735 = vst.msk [vmem:[#allocation7 + $0x58] sm:$0xff] %vm78_vm0, %v1718_v17  ;;  %v1725_v36 = vsel %vm272_vm1, %v4063_v0, %v1709_v62  ;;  %1736 = vst.msk [vmem:[#allocation7 + $0x68] sm:$0xff] %vm78_vm0, %v1719_v35  ;;  %v1726_v33 = vsel %vm272_vm1, %v3627_v5, %v1710_v63  ;;  %v1727_v11 = vsel %vm272_vm1, %v4064_v42, %v1711_v55 }
 0x87d   :  { %1737 = vst.msk [vmem:[#allocation7 + $0x78] sm:$0xff] %vm78_vm0, %v1720_v41  ;;  %1738 = vst.msk [vmem:[#allocation7 + $0x88] sm:$0xff] %vm78_vm0, %v1721_v31  ;;  %v1728_v34 = vsel %vm272_vm1, %v3630_v14, %v1712_v21 }
 0x87e   :  { %1739 = vst.msk [vmem:[#allocation7 + $0x98] sm:$0xff] %vm78_vm0, %v1722_v7  ;;  %1740 = vst.msk [vmem:[#allocation7 + $0xa8] sm:$0xff] %vm78_vm0, %v1723_v13 }
 0x87f   :  { %1741 = vst.msk [vmem:[#allocation7 + $0xb8] sm:$0xff] %vm78_vm0, %v1724_v57  ;;  %1742 = vst.msk [vmem:[#allocation7 + $0xc8] sm:$0xff] %vm78_vm0, %v1725_v36 }
 0x880   :  { %1743 = vst.msk [vmem:[#allocation7 + $0xd8] sm:$0xff] %vm78_vm0, %v1726_v33  ;;  %1744 = vst.msk [vmem:[#allocation7 + $0xe8] sm:$0xff] %vm78_vm0, %v1727_v11 }
 0x881   :  { %1745 = vst.msk [vmem:[#allocation7 + $0xf8] sm:$0xff] %vm78_vm0, %v1728_v34 }
 0x882   :  { %2121 = shalt.err (!%p2118_p6)
}
 0x883   :  { %s2122_s30 = scalar_lea.hbm %s3809_s5, 4096 }
 0x884   :  { %p2123_p7 = scmp.ne.s32.totalorder %s3809_s5, %s2122_s30  ;;  %p2126_p8 = scmp.lt.u32.totalorder %s2122_s30, %s3809_s5 }
 0x886   :  { %p2128_p9 = pnand %p2126_p8, %p2123_p7 }
 0x888   :  { %2131 = shalt.err (!%p2128_p9)
}
 0x889   :  { %1757 = dma.vmem_to_hbm [thread:$0]  %s1752_s24, 4096, %s3809_s5, [#allocation4], %s2139_s28, %s2139_s28, %s2140_s29  }
 0x88a   :  { %2136 = dma.done.wait [#allocation4], 4096  }
 0x88b   :  { %2137 = vsyncadd [#allocation4], 4294963200 }
 0x88c   :  { %1761 = vsyncpa [#allocation3], 1 }
 0x88d   :  { %1762 = vsyncpa [#allocation6], 1 }
 0x88e   :  { %1763 = vsyncpa [#allocation4], 1 }

// kernel: tpu_custom_call.1
= control target key start
LH: loop header
LB: loop body
LE: loop exit
PB: predicated region body
PF: predicated region fallthrough
CT: control target
= control target key end

     0   :  { %10 = vsyncpa [#allocation3], 0  ;;  %s3804_s0 = inlined_call_operand.hbm [shape: f32[16,8,32], index: 0, kind: input, shape index: {}]   ;;  %s3805_s1 = inlined_call_operand.hbm [shape: f32[32,64], index: 1, kind: input, shape index: {}]   ;;  %s3806_s2 = inlined_call_operand.vmem [shape: f32[1,64], index: 2, kind: input, shape index: {}]   ;;  %s3807_s3 = inlined_call_operand.vmem [shape: f32[1,16], index: 3, kind: input, shape index: {}]   ;;  %s3808_s4 = inlined_call_operand.vmem [shape: f32[1,16], index: 4, kind: input, shape index: {}]   ;;  %s3809_s5 = inlined_call_operand.hbm [shape: f32[16,2,8,32], index: 5, kind: output, shape index: {}]  }
   0x1   :  { %11 = vsyncpa [#allocation6], 0 }
   0x2   :  { %12 = vsyncpa [#allocation4], 0  ;;  %s2138_s18 = smov [#allocation2]   ;;  %s2066_s22 = scalar_lea.hbm %s3804_s0, 2048 }
   0x3   :  { %s18_s19 = sshll.u32 %s2138_s18, 4  ;;  %p2067_p0 = scmp.ne.s32.totalorder %s3804_s0, %s2066_s22  ;;  %s19_s19 = int_to_ptr.vmem [resolvable:$true] %s18_s19 }
   0x4   :  { %p2070_p1 = scmp.lt.u32.totalorder %s2066_s22, %s3804_s0 }
   0x6   :  { %p2072_p2 = pnand %p2070_p1, %p2067_p0 }
   0x8   :  { %2075 = shalt.err (!%p2072_p2)
}
   0x9   :  { %s2076_s27 = scalar_lea.vmem %s19_s19, 2048  ;;  %p2081_p4 = scmp.lt.s32.totalorder %s19_s19, %s19_s19 }
   0xa   :  { %p2077_p3 = scmp.ne.s32.totalorder %s19_s19, %s2076_s27  ;;  %p2082_p5 = scmp.lt.s32.totalorder %s2076_s27, %s2076_s27 }
   0xc   :  { %p2083_p6 = por %p2082_p5, %p2081_p4 }
   0xe   :  { %p2084_p7 = pnand %p2083_p6, %p2077_p3 }
  0x10   :  { %2087 = shalt.err (!%p2084_p7)
}
  0x11   :  { %s2139_s28 = smov 128   ;;  %s2140_s29 = smov 8  }
  0x12   :  { %24 = dma.hbm_to_vmem [thread:$0]  %s3804_s0, 2048, %s19_s19, [#allocation3], %s2139_s28, %s2139_s28, %s2140_s29  }
  0x13   :  { %s2141_s7 = smov [#allocation5]   ;;  %s2088_s11 = scalar_lea.hbm %s3805_s1, 512 }
  0x14   :  { %s30_s8 = sshll.u32 %s2141_s7, 4  ;;  %p2089_p8 = scmp.ne.s32.totalorder %s3805_s1, %s2088_s11  ;;  %s31_s8 = int_to_ptr.vmem [resolvable:$true] %s30_s8 }
  0x15   :  { %p2092_p9 = scmp.lt.u32.totalorder %s2088_s11, %s3805_s1 }
  0x17   :  { %p2094_p10 = pnand %p2092_p9, %p2089_p8 }
  0x19   :  { %2097 = shalt.err (!%p2094_p10)
}
  0x1a   :  { %s2098_s16 = scalar_lea.vmem %s31_s8, 512  ;;  %p2103_p12 = scmp.lt.s32.totalorder %s31_s8, %s31_s8 }
  0x1b   :  { %p2099_p11 = scmp.ne.s32.totalorder %s31_s8, %s2098_s16  ;;  %p2104_p13 = scmp.lt.s32.totalorder %s2098_s16, %s2098_s16 }
  0x1d   :  { %p2105_p0 = por %p2104_p13, %p2103_p12 }
  0x1f   :  { %p2106_p1 = pnand %p2105_p0, %p2099_p11 }
  0x21   :  { %2109 = shalt.err (!%p2106_p1)
}
  0x22   :  { %36 = dma.hbm_to_vmem [thread:$0]  %s3805_s1, 512, %s31_s8, [#allocation6], %s2139_s28, %s2139_s28, %s2140_s29  }
  0x23   :  { %2132 = dma.done.wait [#allocation3], 2048  }
  0x24   :  { %2133 = vsyncadd [#allocation3], 4294965248 }
  0x25   :  { %2134 = dma.done.wait [#allocation6], 512  }
  0x26   :  { %2135 = vsyncadd [#allocation6], 4294966784  ;;  %vm78_vm0 = vcmask 261120   ;;  %v67_v0 = vld [vmem:[#allocation5] sm:$0xff]  ;;  %v68_v1 = vld [vmem:[#allocation5 + $0x8] sm:$0xff]  ;;  %s2142_s18 = smov 96  }
  0x27   :  { %v69_v2 = vld [vmem:[#allocation5 + $0x10] sm:$0xff]  ;;  %v1904_v3 = vpack.c.bf16 %v68_v1, %v67_v0  ;;  %v70_v4 = vld [vmem:[#allocation5 + $0x18] sm:$0xff]  ;;  %v49_v5 = vld [vmem:[#allocation2] sm:$0xff]  ;;  %v1928_v6 = vpack.i.bf16 %v68_v1, %v67_v0  ;;  %vm272_vm1 = vcmask 130048   ;;  %s2144_s22 = smov 16  }
  0x28   :  { %v1908_v7 = vpack.c.bf16 %v70_v4, %v69_v2  ;;  %1848 = vmatprep.mubr.msk.f32.mxu0 %vm78_vm0, %v49_v5  ;;  %1880 = vmatprep.mubr.msk.f32.mxu1 %vm78_vm0, %v49_v5  ;;  %v1933_v8 = vpack.i.bf16 %v70_v4, %v69_v2  ;;  %v50_v9 = vld [vmem:[#allocation2 + $0x8] sm:$0xff]  ;;  %v2211_v10 = vld [vmem:[%s3806_s2] ss:$0 sm:$0xff]  ;;  %v51_v11 = vld [vmem:[#allocation2 + $0x10] sm:$0xff]  ;;  %s2143_s2 = smov 112  }
  0x29   :  { %1905 = vmatprep.subr.bf16.mxu0 %v1904_v3  ;;  %1929 = vrot.lane.b32.xlu0 %v1928_v6, %s2142_s18  ;;  %v52_v12 = vld [vmem:[#allocation2 + $0x18] sm:$0xff]  ;;  %v53_v13 = vld [vmem:[#allocation2 + $0x20] sm:$0xff]  ;;  %v54_v14 = vld [vmem:[#allocation2 + $0x28] sm:$0xff] }
  0x2a   :  { %1907 = vmatpush3.bf16.msra.mxu0 %v1904_v3  ;;  %v55_v15 = vld [vmem:[#allocation2 + $0x30] sm:$0xff]  ;;  %v56_v16 = vld [vmem:[#allocation2 + $0x38] sm:$0xff]  ;;  %v57_v17 = vld [vmem:[#allocation2 + $0x40] sm:$0xff] }
  0x2b   :  { %1909 = vmatprep.subr.bf16.mxu0 %v1908_v7  ;;  %v58_v18 = vld [vmem:[#allocation2 + $0x48] sm:$0xff]  ;;  %v59_v19 = vld [vmem:[#allocation2 + $0x50] sm:$0xff]  ;;  %v60_v20 = vld [vmem:[#allocation2 + $0x58] sm:$0xff] }
  0x2c   :  { %v61_v21 = vld [vmem:[#allocation2 + $0x60] sm:$0xff]  ;;  %v62_v22 = vld [vmem:[#allocation2 + $0x68] sm:$0xff]  ;;  %v63_v23 = vld [vmem:[#allocation2 + $0x70] sm:$0xff] }
  0x2d   :  { %1934 = vrot.lane.b32.xlu0 %v1933_v8, %s2142_s18  ;;  %v64_v24 = vld [vmem:[#allocation2 + $0x78] sm:$0xff] }
  0x2e   :  { %1911 = vmatpush3.bf16.msra.mxu0 %v1908_v7 }
  0x31   :  { %1849 = vmatmul.mubr.msk.f32.vlgmr.msra.gmra.mrb[0].mxu0 %vm78_vm0, %v50_v9  ;;  %957 = vrot.lane.b32.xlu0 %v2211_v10, %s2142_s18 }
  0x32   :  { %1851 = vmatprep.mubr.msk.f32.mxu0 %vm78_vm0, %v51_v11 }
  0x35   :  { %1852 = vmatmul.mubr.msk.f32.gmra.mrb[2].mxu0 %vm78_vm0, %v52_v12 }
  0x36   :  { %1854 = vmatprep.mubr.msk.f32.mxu0 %vm78_vm0, %v53_v13 }
  0x39   :  { %1855 = vmatmul.mubr.msk.f32.gmra.mrb[4].mxu0 %vm78_vm0, %v54_v14 }
  0x3a   :  { %1857 = vmatprep.mubr.msk.f32.mxu0 %vm78_vm0, %v55_v15 }
  0x3d   :  { %1858 = vmatmul.mubr.msk.f32.gmra.mrb[6].mxu0 %vm78_vm0, %v56_v16 }
  0x3e   :  { %1860 = vmatprep.mubr.msk.f32.mxu0 %vm78_vm0, %v57_v17 }
  0x41   :  { %1861 = vmatmul.mubr.msk.f32.gmra.mrb[8].mxu0 %vm78_vm0, %v58_v18 }
  0x42   :  { %1863 = vmatprep.mubr.msk.f32.mxu0 %vm78_vm0, %v59_v19 }
  0x45   :  { %1864 = vmatmul.mubr.msk.f32.gmra.mrb[10].mxu0 %vm78_vm0, %v60_v20 }
  0x46   :  { %1866 = vmatprep.mubr.msk.f32.mxu0 %vm78_vm0, %v61_v21 }
  0x49   :  { %1867 = vmatmul.mubr.msk.f32.gmra.mrb[12].mxu0 %vm78_vm0, %v62_v22 }
  0x4a   :  { %1869 = vmatprep.mubr.msk.f32.mxu0 %vm78_vm0, %v63_v23 }
  0x4d   :  { %1870 = vmatmul.mubr.msk.f32.gmra.mrb[14].mxu0 %vm78_vm0, %v64_v24 }
  0x9b   :  { %v1930_v25 = vpop.permute.xlu0 %1929 }
  0x9c   :  { %v1932_v26 = vunpack.i.h.bf16 %v1930_v25  ;;  %v1931_v27 = vunpack.i.l.bf16 %v1930_v25 }
  0x9e   :  { %v1912_v28 = vpack.c.bf16 %v1932_v26, %v1931_v27 }
  0x9f   :  { %v1935_v29 = vpop.permute.xlu0 %1934 }
  0xa0   :  { %v1937_v30 = vunpack.i.h.bf16 %v1935_v29  ;;  %v1936_v31 = vunpack.i.l.bf16 %v1935_v29  ;;  %1913 = vmatprep.subr.bf16.mxu1 %v1912_v28 }
  0xa1   :  { %1915 = vmatpush3.bf16.msra.mxu1 %v1912_v28 }
  0xa2   :  { %v1916_v32 = vpack.c.bf16 %v1937_v30, %v1936_v31 }
  0xa3   :  { %v2357_v26 = vpop.permute.xlu0 %957 }
  0xa4   :  { %1917 = vmatprep.subr.bf16.mxu1 %v1916_v32 }
  0xa5   :  { %1919 = vmatpush3.bf16.msra.mxu1 %v1916_v32 }
  0xa8   :  { %1881 = vmatmul.mubr.msk.f32.vlgmr.msra.gmra.mrb[0].mxu1 %vm78_vm0, %v50_v9 }
  0xa9   :  { %1883 = vmatprep.mubr.msk.f32.mxu1 %vm78_vm0, %v51_v11 }
  0xac   :  { %1884 = vmatmul.mubr.msk.f32.gmra.mrb[2].mxu1 %vm78_vm0, %v52_v12 }
  0xad   :  { %1886 = vmatprep.mubr.msk.f32.mxu1 %vm78_vm0, %v53_v13 }
  0xb0   :  { %1887 = vmatmul.mubr.msk.f32.gmra.mrb[4].mxu1 %vm78_vm0, %v54_v14 }
  0xb1   :  { %1889 = vmatprep.mubr.msk.f32.mxu1 %vm78_vm0, %v55_v15 }
  0xb4   :  { %1890 = vmatmul.mubr.msk.f32.gmra.mrb[6].mxu1 %vm78_vm0, %v56_v16 }
  0xb5   :  { %1892 = vmatprep.mubr.msk.f32.mxu1 %vm78_vm0, %v57_v17 }
  0xb8   :  { %1893 = vmatmul.mubr.msk.f32.gmra.mrb[8].mxu1 %vm78_vm0, %v58_v18 }
  0xb9   :  { %1895 = vmatprep.mubr.msk.f32.mxu1 %vm78_vm0, %v59_v19 }
  0xbc   :  { %1896 = vmatmul.mubr.msk.f32.gmra.mrb[10].mxu1 %vm78_vm0, %v60_v20 }
  0xbd   :  { %1898 = vmatprep.mubr.msk.f32.mxu1 %vm78_vm0, %v61_v21 }
  0xc0   :  { %1899 = vmatmul.mubr.msk.f32.gmra.mrb[12].mxu1 %vm78_vm0, %v62_v22 }
  0xc1   :  { %1901 = vmatprep.mubr.msk.f32.mxu1 %vm78_vm0, %v63_v23 }
  0xc4   :  { %1902 = vmatmul.mubr.msk.f32.gmra.mrb[14].mxu1 %vm78_vm0, %v64_v24 }
 0x104   :  { %v1850_v33 = vpop.f32.mrb[0].mxu0 }
 0x105   :  { %v2245_v34 = vadd.f32 %v1850_v33, %v2211_v10  ;;  %v193_v35 = vpop.f32.mrb[1].mxu0 }
 0x106   :  { %v2254_v45 = vadd.f32 %v2211_v10, %v193_v35 }
 0x107   :  { %543 = vrot.lane.b32.xlu0 %v2245_v34, %s2143_s2  ;;  %v276_v36 = vsel %vm272_vm1, %v2245_v34, 0.0 }
 0x108   :  { %277 = vadd.xlane.f32.xlu1 %v276_v36  ;;  %v1853_v37 = vpop.f32.mrb[2].mxu0  ;;  %v273_v54 = vsel %vm272_vm1, %v2254_v45, 0.0 }
 0x109   :  { %v203_v38 = vpop.f32.mrb[3].mxu0  ;;  %v2281_v57 = vadd.f32 %v1853_v37, %v2211_v10 }
 0x10a   :  { %v2259_v50 = vadd.f32 %v2211_v10, %v203_v38 }
 0x10b   :  { %v282_v61 = vsel %vm272_vm1, %v2281_v57, 0.0 }
 0x10c   :  { %v1856_v39 = vpop.f32.mrb[4].mxu0  ;;  %v279_v51 = vsel %vm272_vm1, %v2259_v50, 0.0 }
 0x10d   :  { %v213_v40 = vpop.f32.mrb[5].mxu0  ;;  %v2298_v0 = vadd.f32 %v1856_v39, %v2211_v10 }
 0x10e   :  { %v2264_v52 = vadd.f32 %v2211_v10, %v213_v40 }
 0x10f   :  { %v288_v11 = vsel %vm272_vm1, %v2298_v0, 0.0 }
 0x110   :  { %v1859_v41 = vpop.f32.mrb[6].mxu0  ;;  %v285_v12 = vsel %vm272_vm1, %v2264_v52, 0.0 }
 0x111   :  { %v223_v42 = vpop.f32.mrb[7].mxu0  ;;  %v2345_v22 = vadd.f32 %v1859_v41, %v2211_v10 }
 0x112   :  { %v2269_v53 = vadd.f32 %v2211_v10, %v223_v42 }
 0x113   :  { %v294_v28 = vsel %vm272_vm1, %v2345_v22, 0.0 }
 0x114   :  { %v2251_v43 = vpop.f32.mrb[8].mxu0  ;;  %v291_v29 = vsel %vm272_vm1, %v2269_v53, 0.0 }
 0x115   :  { %v233_v44 = vpop.f32.mrb[9].mxu0  ;;  %v2372_v30 = vadd.f32 %v2251_v43, %v2211_v10 }
 0x116   :  { %v2276_v55 = vadd.f32 %v2211_v10, %v233_v44 }
 0x118   :  { %v1865_v46 = vpop.f32.mrb[10].mxu0  ;;  %v297_v37 = vsel %vm272_vm1, %v2276_v55, 0.0 }
 0x119   :  { %541 = vrot.lane.b32.xlu1 %v2254_v45, %s2143_s2  ;;  %v243_v47 = vpop.f32.mrb[11].mxu0  ;;  %v2286_v59 = vadd.f32 %v1865_v46, %v2211_v10 }
 0x11a   :  { %v2293_v62 = vadd.f32 %v2211_v10, %v243_v47 }
 0x11b   :  { %v306_v60 = vsel %vm272_vm1, %v2286_v59, 0.0 }
 0x11c   :  { %v1868_v48 = vpop.f32.mrb[12].mxu0  ;;  %v303_v46 = vsel %vm272_vm1, %v2293_v62, 0.0 }
 0x11d   :  { %v253_v49 = vpop.f32.mrb[13].mxu0  ;;  %v2307_v3 = vadd.f32 %v1868_v48, %v2211_v10 }
 0x11e   :  { %v2318_v9 = vadd.f32 %v2211_v10, %v253_v49 }
 0x11f   :  { %v312_v4 = vsel %vm272_vm1, %v2307_v3, 0.0 }
 0x120   :  { %v1871_v56 = vpop.f32.mrb[14].mxu0 }
 0x121   :  { %v263_v58 = vpop.f32.mrb[15].mxu0  ;;  %v2350_v23 = vadd.f32 %v1871_v56, %v2211_v10 }
 0x122   :  { %v2355_v25 = vadd.f32 %v2211_v10, %v263_v58  ;;  %v300_v10 = vsel %vm272_vm1, %v2372_v30, 0.0 }
 0x123   :  { %v318_v24 = vsel %vm272_vm1, %v2350_v23, 0.0 }
 0x126   :  { %280 = vadd.xlane.f32.xlu0 %v279_v51 }
 0x13c   :  { %549 = vrot.lane.b32.xlu0 %v2264_v52, %s2143_s2 }
 0x13d   :  { %274 = vadd.xlane.f32.xlu1 %v273_v54  ;;  %v309_v54 = vsel %vm272_vm1, %v2318_v9, 0.0 }
 0x140   :  { %553 = vrot.lane.b32.xlu0 %v2269_v53, %s2143_s2 }
 0x144   :  { %557 = vrot.lane.b32.xlu0 %v2276_v55, %s2143_s2 }
 0x14e   :  { %547 = vrot.lane.b32.xlu1 %v2281_v57, %s2143_s2 }
 0x163   :  { %307 = vadd.xlane.f32.xlu0 %v306_v60 }
 0x172   :  { %283 = vadd.xlane.f32.xlu1 %v282_v61 }
 0x179   :  { %561 = vrot.lane.b32.xlu0 %v2293_v62, %s2143_s2 }
 0x17b   :  { %v1882_v63 = vpop.f32.mrb[0].mxu1 }
 0x17c   :  { %v2304_v1 = vpop.f32.mrb[1].mxu1  ;;  %v2362_v27 = vadd.f32 %v1882_v63, %v2357_v26 }
 0x17e   :  { %v1108_v32 = vsel %vm272_vm1, %v2362_v27, 0.0 }
 0x17f   :  { %v1885_v2 = vpop.f32.mrb[2].mxu1 }
 0x180   :  { %v2311_v5 = vpop.f32.mrb[3].mxu1  ;;  %v2382_v36 = vadd.f32 %v1885_v2, %v2357_v26 }
 0x182   :  { %v1114_v42 = vsel %vm272_vm1, %v2382_v36, 0.0 }
 0x183   :  { %545 = vrot.lane.b32.xlu1 %v2259_v50, %s2143_s2  ;;  %v1888_v6 = vpop.f32.mrb[4].mxu1 }
 0x184   :  { %v2313_v7 = vpop.f32.mrb[5].mxu1  ;;  %v2403_v47 = vadd.f32 %v1888_v6, %v2357_v26  ;;  %v544_v6 = vpop.permute.xlu0 %543 }
 0x186   :  { %3883 = vst [vmem:[#allocation11_spill] sm:$0xff] %v2403_v47  ;;  %v1120_v51 = vsel %vm272_vm1, %v2403_v47, 0.0 }
 0x187   :  { %551 = vrot.lane.b32.xlu1 %v2298_v0, %s2143_s2  ;;  %v2315_v8 = vpop.f32.mrb[6].mxu1 }
 0x188   :  { %v2326_v13 = vpop.f32.mrb[7].mxu1  ;;  %v2416_v56 = vadd.f32 %v2315_v8, %v2357_v26  ;;  %v592_v8 = vsel %vm272_vm1, %v544_v6, 0.0 }
 0x189   :  { %v2506_v6 = vadd.f32 %v2326_v13, %v2357_v26 }
 0x18a   :  { %3884 = vst [vmem:[#allocation12_spill] sm:$0xff] %v2416_v56  ;;  %v1126_v2 = vsel %vm272_vm1, %v2416_v56, 0.0 }
 0x18b   :  { %v2328_v14 = vpop.f32.mrb[8].mxu1 }
 0x18c   :  { %v2330_v15 = vpop.f32.mrb[9].mxu1 }
 0x18f   :  { %v2332_v16 = vpop.f32.mrb[10].mxu1 }
 0x190   :  { %v2334_v17 = vpop.f32.mrb[11].mxu1 }
 0x193   :  { %v2336_v18 = vpop.f32.mrb[12].mxu1 }
 0x194   :  { %v2338_v19 = vpop.f32.mrb[13].mxu1 }
 0x195   :  { %v2376_v31 = vpop.xlane.xlu1 %277 }
 0x197   :  { %v2340_v20 = vpop.f32.mrb[14].mxu1 }
 0x198   :  { %313 = vadd.xlane.f32.xlu0 %v312_v4  ;;  %v2342_v21 = vpop.f32.mrb[15].mxu1  ;;  %v315_v4 = vsel %vm272_vm1, %v2355_v25, 0.0 }
 0x199   :  { %v542_v33 = vpop.permute.xlu1 %541 }
 0x19a   :  { %v589_v35 = vsel %vm272_vm1, %v542_v33, 0.0 }
 0x1ab   :  { %289 = vadd.xlane.f32.xlu1 %v288_v11  ;;  %v2434_v11 = vadd.f32 %v2328_v14, %v2357_v26 }
 0x1ad   :  { %3885 = vst [vmem:[#allocation13_spill] sm:$0xff] %v2434_v11  ;;  %v1132_v14 = vsel %vm272_vm1, %v2434_v11, 0.0 }
 0x1ae   :  { %565 = vrot.lane.b32.xlu0 %v2318_v9, %s2143_s2 }
 0x1af   :  { %286 = vadd.xlane.f32.xlu1 %v285_v12  ;;  %v2440_v12 = vadd.f32 %v2304_v1, %v2357_v26  ;;  %v2453_v1 = vadd.f32 %v2332_v16, %v2357_v26 }
 0x1b1   :  { %v1105_v33 = vsel %vm272_vm1, %v2440_v12, 0.0  ;;  %3886 = vst [vmem:[#allocation14_spill] sm:$0xff] %v2453_v1 }
 0x1b3   :  { %v2467_v16 = vpop.xlane.xlu0 %280 }
 0x1c0   :  { %555 = vrot.lane.b32.xlu1 %v2345_v22, %s2143_s2 }
 0x1ca   :  { %v2392_v38 = vpop.xlane.xlu1 %274 }
 0x1cd   :  { %319 = vadd.xlane.f32.xlu0 %v318_v24 }
 0x1ce   :  { %v548_v39 = vpop.permute.xlu1 %547 }
 0x1cf   :  { %v598_v41 = vsel %vm272_vm1, %v548_v39, 0.0  ;;  %v550_v39 = vpop.permute.xlu0 %549 }
 0x1e3   :  { %569 = vrot.lane.b32.xlu0 %v2355_v25, %s2143_s2 }
 0x1e4   :  { %295 = vadd.xlane.f32.xlu1 %v294_v28 }
 0x1e7   :  { %1363 = vrot.lane.b32.xlu0 %v2362_v27, %s2143_s2 }
 0x1e8   :  { %292 = vadd.xlane.f32.xlu1 %v291_v29 }
 0x1f9   :  { %559 = vrot.lane.b32.xlu1 %v2372_v30, %s2143_s2 }
 0x1ff   :  { %v2394_v40 = vpop.xlane.xlu1 %283 }
 0x200   :  { %v324_v13 = vmul.f32 0.0625, %v2394_v40 }
 0x203   :  { %v546_v43 = vpop.permute.xlu1 %545 }
 0x204   :  { %v595_v44 = vsel %vm272_vm1, %v546_v43, 0.0 }
 0x206   :  { %1109 = vadd.xlane.f32.xlu0 %v1108_v32 }
 0x207   :  { %v552_v48 = vpop.permute.xlu1 %551 }
 0x208   :  { %v604_v49 = vsel %vm272_vm1, %v552_v48, 0.0 }
 0x20a   :  { %590 = vadd.xlane.f32.xlu0 %v589_v35  ;;  %v2457_v35 = vadd.f32 %v2311_v5, %v2357_v26  ;;  %v2471_v5 = vadd.f32 %v2336_v18, %v2357_v26 }
 0x20c   :  { %3887 = vst [vmem:[#allocation15_spill] sm:$0xff] %v2471_v5 }
 0x21d   :  { %301 = vadd.xlane.f32.xlu1 %v300_v10  ;;  %v1138_v10 = vsel %vm272_vm1, %v2453_v1, 0.0 }
 0x220   :  { %1367 = vrot.lane.b32.xlu0 %v2382_v36, %s2143_s2 }
 0x221   :  { %298 = vadd.xlane.f32.xlu1 %v297_v37  ;;  %v1111_v37 = vsel %vm272_vm1, %v2457_v35, 0.0 }
 0x232   :  { %563 = vrot.lane.b32.xlu1 %v2286_v59, %s2143_s2 }
 0x238   :  { %v2422_v58 = vpop.xlane.xlu1 %289 }
 0x23c   :  { %v2424_v60 = vpop.xlane.xlu1 %286 }
 0x23f   :  { %599 = vadd.xlane.f32.xlu0 %v598_v41  ;;  %v2475_v41 = vadd.f32 %v2313_v7, %v2357_v26 }
 0x240   :  { %v556_v61 = vpop.permute.xlu1 %555 }
 0x241   :  { %v610_v63 = vsel %vm272_vm1, %v556_v61, 0.0 }
 0x243   :  { %1115 = vadd.xlane.f32.xlu0 %v1114_v42  ;;  %v554_v42 = vpop.permute.xlu0 %553 }
 0x247   :  { %596 = vadd.xlane.f32.xlu0 %v595_v44  ;;  %v2481_v43 = vpop.permute.xlu0 %557 }
 0x24b   :  { %v308_v44 = vpop.xlane.xlu0 %307 }
 0x256   :  { %304 = vadd.xlane.f32.xlu1 %v303_v46  ;;  %v2483_v46 = vpop.permute.xlu0 %561 }
 0x25a   :  { %v314_v48 = vpop.xlane.xlu0 %313 }
 0x25d   :  { %1371 = vrot.lane.b32.xlu0 %v2403_v47, %s2143_s2 }
 0x25e   :  { %v2485_v18 = vpop.permute.xlu0 %565 }
 0x262   :  { %v320_v7 = vpop.xlane.xlu0 %319 }
 0x266   :  { %v2492_v61 = vpop.permute.xlu0 %569 }
 0x267   :  { %567 = vrot.lane.b32.xlu1 %v2307_v3, %s2143_s2 }
 0x271   :  { %v296_v24 = vpop.xlane.xlu1 %295 }
 0x272   :  { %v328_v40 = vmul.f32 0.0625, %v296_v24 }
 0x275   :  { %v2444_v28 = vpop.xlane.xlu1 %292 }
 0x279   :  { %v560_v29 = vpop.permute.xlu1 %559 }
 0x27a   :  { %v616_v32 = vsel %vm272_vm1, %v560_v29, 0.0 }
 0x27c   :  { %605 = vadd.xlane.f32.xlu0 %v604_v49  ;;  %v1144_v49 = vsel %vm272_vm1, %v2471_v5, 0.0 }
 0x280   :  { %1121 = vadd.xlane.f32.xlu0 %v1120_v51  ;;  %v601_v51 = vsel %vm272_vm1, %v550_v39, 0.0 }
 0x28b   :  { %310 = vadd.xlane.f32.xlu1 %v309_v54  ;;  %v1117_v54 = vsel %vm272_vm1, %v2475_v41, 0.0 }
 0x296   :  { %1375 = vrot.lane.b32.xlu0 %v2416_v56, %s2143_s2 }
 0x29c   :  { %571 = vrot.lane.b32.xlu1 %v2350_v23, %s2143_s2 }
 0x2b5   :  { %611 = vadd.xlane.f32.xlu0 %v610_v63  ;;  %v2494_v63 = vpop.permute.xlu0 %1363 }
 0x2b9   :  { %1127 = vadd.xlane.f32.xlu0 %v1126_v2  ;;  %v2498_v2 = vadd.f32 %v2340_v20, %v2357_v26  ;;  %v302_v20 = vpop.xlane.xlu1 %301 }
 0x2ba   :  { %v330_v56 = vmul.f32 0.0625, %v302_v20 }
 0x2bb   :  { %3888 = vst [vmem:[#allocation16_spill] sm:$0xff] %v2498_v2 }
 0x2bc   :  { %v2557_v47 = vsub.f32 %v2372_v30, %v330_v56 }
 0x2be   :  { %3893 = vst [vmem:[#allocation21_spill] sm:$0xff] %v2557_v47 }
 0x2c0   :  { %316 = vadd.xlane.f32.xlu1 %v315_v4  ;;  %v2502_v4 = vpop.xlane.xlu0 %1109 }
 0x2c4   :  { %593 = vadd.xlane.f32.xlu1 %v592_v8  ;;  %v2510_v8 = vpop.xlane.xlu0 %590 }
 0x2c8   :  { %v2512_v29 = vpop.permute.xlu0 %1367 }
 0x2cf   :  { %1379 = vrot.lane.b32.xlu0 %v2434_v11, %s2143_s2 }
 0x2d5   :  { %1361 = vrot.lane.b32.xlu1 %v2440_v12, %s2143_s2 }
 0x2ee   :  { %617 = vadd.xlane.f32.xlu0 %v616_v32  ;;  %v2514_v32 = vpop.xlane.xlu0 %599 }
 0x2f2   :  { %1133 = vadd.xlane.f32.xlu0 %v1132_v14  ;;  %v2516_v14 = vpop.xlane.xlu0 %1115 }
 0x2f6   :  { %v2525_v39 = vpop.xlane.xlu0 %596 }
 0x2f9   :  { %1106 = vadd.xlane.f32.xlu1 %v1105_v33  ;;  %v322_v33 = vmul.f32 0.0625, %v2376_v31 }
 0x308   :  { %1383 = vrot.lane.b32.xlu0 %v2453_v1, %s2143_s2 }
 0x30a   :  { %1365 = vrot.lane.b32.xlu1 %v2457_v35, %s2143_s2 }
 0x327   :  { %1139 = vadd.xlane.f32.xlu0 %v1138_v10  ;;  %v2519_v10 = vpop.xlane.xlu1 %298 }
 0x32e   :  { %1112 = vadd.xlane.f32.xlu1 %v1111_v37  ;;  %v2522_v37 = vsub.f32 %v2245_v34, %v322_v33  ;;  %v1372_v33 = vpop.permute.xlu0 %1371 }
 0x330   :  { %3889 = vst [vmem:[#allocation17_spill] sm:$0xff] %v2522_v37  ;;  %v354_v31 = vmul.f32 %v2522_v37, %v2522_v37  ;;  %v2548_v37 = vsub.f32 %v2345_v22, %v328_v40 }
 0x332   :  { %v372_v11 = vsel %vm272_vm1, %v354_v31, 0.0  ;;  %3892 = vst [vmem:[#allocation20_spill] sm:$0xff] %v2548_v37  ;;  %v607_v31 = vsel %vm272_vm1, %v554_v42, 0.0  ;;  %v360_v20 = vmul.f32 %v2548_v37, %v2548_v37 }
 0x334   :  { %v390_v56 = vsel %vm272_vm1, %v360_v20, 0.0 }
 0x33d   :  { %1387 = vrot.lane.b32.xlu0 %v2471_v5, %s2143_s2  ;;  %v2535_v5 = vpop.permute.xlu1 %563 }
 0x33f   :  { %1369 = vrot.lane.b32.xlu1 %v2475_v41, %s2143_s2 }
 0x35c   :  { %1145 = vadd.xlane.f32.xlu0 %v1144_v49  ;;  %v2528_v49 = vsub.f32 %v2281_v57, %v324_v13 }
 0x35e   :  { %3890 = vst [vmem:[#allocation18_spill] sm:$0xff] %v2528_v49  ;;  %v356_v13 = vmul.f32 %v2528_v49, %v2528_v49  ;;  %v332_v49 = vmul.f32 0.0625, %v308_v44  ;;  %v334_v44 = vmul.f32 0.0625, %v314_v48 }
 0x360   :  { %v2569_v42 = vsub.f32 %v2286_v59, %v332_v49  ;;  %v2575_v37 = vsub.f32 %v2307_v3, %v334_v44 }
 0x362   :  { %3895 = vst [vmem:[#allocation23_spill] sm:$0xff] %v2569_v42  ;;  %3896 = vst [vmem:[#allocation24_spill] sm:$0xff] %v2575_v37  ;;  %v366_v44 = vmul.f32 %v2575_v37, %v2575_v37 }
 0x363   :  { %602 = vadd.xlane.f32.xlu1 %v601_v51  ;;  %v326_v51 = vmul.f32 0.0625, %v2422_v58  ;;  %v2543_v58 = vpop.xlane.xlu1 %304 }
 0x365   :  { %v2538_v1 = vsub.f32 %v2298_v0, %v326_v51 }
 0x367   :  { %1118 = vadd.xlane.f32.xlu1 %v1117_v54  ;;  %v1150_v54 = vsel %vm272_vm1, %v2498_v2, 0.0  ;;  %3891 = vst [vmem:[#allocation19_spill] sm:$0xff] %v2538_v1  ;;  %v358_v51 = vmul.f32 %v2538_v1, %v2538_v1  ;;  %v2553_v24 = vpop.permute.xlu1 %567 }
 0x372   :  { %1391 = vrot.lane.b32.xlu0 %v2498_v2, %s2143_s2  ;;  %v2545_v2 = vpop.xlane.xlu0 %605 }
 0x376   :  { %v2562_v40 = vpop.xlane.xlu0 %1121 }
 0x377   :  { %3894 = vst [vmem:[#allocation22_spill] sm:$0xff] %v2562_v40  ;;  %v364_v40 = vmul.f32 %v2569_v42, %v2569_v42 }
 0x378   :  { %1373 = vrot.lane.b32.xlu1 %v2506_v6, %s2143_s2 }
 0x391   :  { %1151 = vadd.xlane.f32.xlu0 %v1150_v54  ;;  %v378_v54 = vsel %vm272_vm1, %v356_v13, 0.0  ;;  %v2564_v13 = vpop.xlane.xlu1 %310 }
 0x395   :  { %373 = vadd.xlane.f32.xlu0 %v372_v11  ;;  %v384_v11 = vsel %vm272_vm1, %v358_v51, 0.0  ;;  %v362_v51 = vmul.f32 %v2557_v47, %v2557_v47  ;;  %v2580_v49 = vpop.permute.xlu1 %571 }
 0x397   :  { %v396_v1 = vsel %vm272_vm1, %v362_v51, 0.0 }
 0x399   :  { %379 = vadd.xlane.f32.xlu0 %v378_v54  ;;  %v1123_v54 = vsel %vm272_vm1, %v2506_v6, 0.0 }
 0x39c   :  { %608 = vadd.xlane.f32.xlu1 %v607_v31  ;;  %v1376_v31 = vpop.permute.xlu0 %1375 }
 0x39d   :  { %385 = vadd.xlane.f32.xlu0 %v384_v11  ;;  %v336_v11 = vmul.f32 0.0625, %v320_v7  ;;  %v408_v7 = vsel %vm272_vm1, %v366_v44, 0.0  ;;  %v1412_v44 = vsel %vm272_vm1, %v2494_v63, 0.0 }
 0x39f   :  { %v2585_v20 = vsub.f32 %v2350_v23, %v336_v11 }
 0x3a0   :  { %1124 = vadd.xlane.f32.xlu1 %v1123_v54  ;;  %v2582_v48 = vpop.xlane.xlu0 %611  ;;  %v402_v54 = vsel %vm272_vm1, %v364_v40, 0.0 }
 0x3a1   :  { %391 = vadd.xlane.f32.xlu0 %v390_v56  ;;  %3897 = vst [vmem:[#allocation25_spill] sm:$0xff] %v2585_v20  ;;  %v2590_v56 = vpop.xlane.xlu1 %316  ;;  %v368_v51 = vmul.f32 %v2585_v20, %v2585_v20 }
 0x3a3   :  { %v414_v40 = vsel %vm272_vm1, %v368_v51, 0.0  ;;  %v1424_v51 = vsel %vm272_vm1, %v1372_v33, 0.0  ;;  %v613_v33 = vsel %vm272_vm1, %v2481_v43, 0.0 }
 0x3a4   :  { %v2595_v42 = vpop.xlane.xlu0 %1127 }
 0x3a5   :  { %397 = vadd.xlane.f32.xlu0 %v396_v1  ;;  %3898 = vst [vmem:[#allocation26_spill] sm:$0xff] %v2595_v42  ;;  %v2599_v1 = vadd.f32 %v2330_v15, %v2357_v26  ;;  %v594_v11 = vpop.xlane.xlu1 %593  ;;  %v1418_v15 = vsel %vm272_vm1, %v2512_v29, 0.0  ;;  %v1430_v42 = vsel %vm272_vm1, %v1376_v31, 0.0 }
 0x3a7   :  { %v1129_v31 = vsel %vm272_vm1, %v2599_v1, 0.0 }
 0x3a9   :  { %403 = vadd.xlane.f32.xlu0 %v402_v54  ;;  %v1380_v54 = vpop.permute.xlu0 %1379  ;;  %v1362_v37 = vpop.permute.xlu1 %1361 }
 0x3ad   :  { %409 = vadd.xlane.f32.xlu0 %v408_v7  ;;  %v2606_v20 = vpop.xlane.xlu0 %617  ;;  %v1409_v7 = vsel %vm272_vm1, %v1362_v37, 0.0 }
 0x3b1   :  { %1377 = vrot.lane.b32.xlu1 %v2599_v1, %s2143_s2  ;;  %415 = vadd.xlane.f32.xlu0 %v414_v40  ;;  %v2611_v47 = vpop.xlane.xlu0 %1133 }
 0x3b5   :  { %1413 = vadd.xlane.f32.xlu0 %v1412_v44  ;;  %v1384_v40 = vpop.permute.xlu0 %1383  ;;  %v1436_v44 = vsel %vm272_vm1, %v1380_v54, 0.0 }
 0x3b6   :  { %v1442_v37 = vsel %vm272_vm1, %v1384_v40, 0.0  ;;  %v638_v40 = vmul.f32 0.0625, %v594_v11  ;;  %v628_v11 = vsel %vm272_vm1, %v2553_v24, 0.0 }
 0x3b9   :  { %1410 = vadd.xlane.f32.xlu0 %v1409_v7  ;;  %v2615_v63 = vpop.xlane.xlu0 %1139 }
 0x3bd   :  { %1419 = vadd.xlane.f32.xlu0 %v1418_v15  ;;  %v1388_v7 = vpop.permute.xlu0 %1387  ;;  %v2630_v15 = vadd.f32 %v2334_v17, %v2357_v26  ;;  %v619_v17 = vsel %vm272_vm1, %v2483_v46, 0.0  ;;  %v2655_v46 = vadd.f32 %v2338_v19, %v2357_v26 }
 0x3be   :  { %v1448_v29 = vsel %vm272_vm1, %v1388_v7, 0.0 }
 0x3bf   :  { %v1135_v7 = vsel %vm272_vm1, %v2630_v15, 0.0 }
 0x3c1   :  { %1425 = vadd.xlane.f32.xlu0 %v1424_v51 }
 0x3c5   :  { %1431 = vadd.xlane.f32.xlu0 %v1430_v42  ;;  %v622_v42 = vsel %vm272_vm1, %v2535_v5, 0.0 }
 0x3c9   :  { %1437 = vadd.xlane.f32.xlu0 %v1436_v44  ;;  %v2636_v44 = vsub.f32 %v2245_v34, %v638_v40 }
 0x3cb   :  { %3899 = vst [vmem:[#allocation27_spill] sm:$0xff] %v2636_v44  ;;  %v670_v5 = vmul.f32 %v2636_v44, %v2636_v44 }
 0x3cd   :  { %1443 = vadd.xlane.f32.xlu0 %v1442_v37  ;;  %v1107_v37 = vpop.xlane.xlu1 %1106 }
 0x3d1   :  { %1449 = vadd.xlane.f32.xlu0 %v1448_v29  ;;  %v1153_v29 = vmul.f32 0.0625, %v1107_v37 }
 0x3d3   :  { %v2648_v34 = vsub.f32 %v2440_v12, %v1153_v29 }
 0x3d5   :  { %614 = vadd.xlane.f32.xlu1 %v613_v33  ;;  %v1185_v33 = vmul.f32 %v2648_v34, %v2648_v34 }
 0x3d9   :  { %1130 = vadd.xlane.f32.xlu1 %v1129_v31  ;;  %v1201_v31 = vsel %vm272_vm1, %v1185_v33, 0.0 }
 0x3dd   :  { %623 = vadd.xlane.f32.xlu1 %v622_v42  ;;  %v640_v42 = vmul.f32 0.0625, %v2514_v32 }
 0x3df   :  { %v2661_v24 = vsub.f32 %v2281_v57, %v640_v42  ;;  %v625_v57 = vsel %vm272_vm1, %v2485_v18, 0.0  ;;  %v2689_v18 = vadd.f32 %v2342_v21, %v2357_v26 }
 0x3e1   :  { %3900 = vst [vmem:[#allocation28_spill] sm:$0xff] %v2661_v24 }
 0x3e9   :  { %v2626_v54 = vpop.xlane.xlu0 %1145 }
 0x3ed   :  { %v1392_v51 = vpop.permute.xlu0 %1391 }
 0x3ee   :  { %1381 = vrot.lane.b32.xlu1 %v2630_v15, %s2143_s2  ;;  %v1454_v43 = vsel %vm272_vm1, %v1392_v51, 0.0  ;;  %v639_v51 = vmul.f32 0.0625, %v2525_v39 }
 0x3ef   :  { %1455 = vadd.xlane.f32.xlu0 %v1454_v43  ;;  %v672_v43 = vmul.f32 %v2661_v24, %v2661_v24 }
 0x3f0   :  { %v2667_v40 = vsub.f32 %v2259_v50, %v639_v51 }
 0x3f2   :  { %3901 = vst [vmem:[#allocation29_spill] sm:$0xff] %v2667_v40  ;;  %v671_v19 = vmul.f32 %v2667_v40, %v2667_v40 }
 0x405   :  { %703 = vrot.lane.b32.xlu0 %v670_v5, %s2143_s2  ;;  %v2673_v5 = vpop.permute.xlu1 %1365 }
 0x409   :  { %v1113_v32 = vpop.xlane.xlu1 %1112 }
 0x40a   :  { %v1155_v39 = vmul.f32 0.0625, %v1113_v32 }
 0x40c   :  { %v2680_v37 = vsub.f32 %v2457_v35, %v1155_v39 }
 0x40d   :  { %v2691_v33 = vpop.permute.xlu1 %1369 }
 0x40e   :  { %v1187_v29 = vmul.f32 %v2680_v37, %v2680_v37 }
 0x411   :  { %v603_v42 = vpop.xlane.xlu1 %602 }
 0x412   :  { %620 = vadd.xlane.f32.xlu1 %v619_v17  ;;  %v1141_v17 = vsel %vm272_vm1, %v2655_v46, 0.0  ;;  %v641_v51 = vmul.f32 0.0625, %v603_v42 }
 0x415   :  { %v1119_v26 = vpop.xlane.xlu1 %1118 }
 0x416   :  { %1136 = vadd.xlane.f32.xlu1 %v1135_v7  ;;  %v634_v7 = vsel %vm272_vm1, %v2580_v49, 0.0 }
 0x419   :  { %v2709_v32 = vpop.permute.xlu1 %1373 }
 0x41a   :  { %629 = vadd.xlane.f32.xlu1 %v628_v11  ;;  %v1207_v11 = vsel %vm272_vm1, %v1187_v29, 0.0 }
 0x424   :  { %1202 = vadd.xlane.f32.xlu0 %v1201_v31  ;;  %v642_v31 = vmul.f32 0.0625, %v2545_v2  ;;  %v321_v2 = vmul.f32 0.0625, %v2392_v38  ;;  %v325_v38 = vmul.f32 0.0625, %v2424_v60 }
 0x426   :  { %v2697_v49 = vsub.f32 %v2298_v0, %v642_v31  ;;  %v1157_v0 = vmul.f32 0.0625, %v1119_v26  ;;  %v2713_v39 = vsub.f32 %v2254_v45, %v321_v2  ;;  %v329_v2 = vmul.f32 0.0625, %v2519_v10 }
 0x428   :  { %3902 = vst [vmem:[#allocation30_spill] sm:$0xff] %v2697_v49  ;;  %3904 = vst [vmem:[#allocation32_spill] sm:$0xff] %v2713_v39  ;;  %v2720_v29 = vsub.f32 %v2475_v41, %v1157_v0  ;;  %v353_v31 = vmul.f32 %v2713_v39, %v2713_v39 }
 0x42a   :  { %3905 = vst [vmem:[#allocation33_spill] sm:$0xff] %v2720_v29 }
 0x42b   :  { %1385 = vrot.lane.b32.xlu1 %v2655_v46, %s2143_s2 }
 0x43a   :  { %707 = vrot.lane.b32.xlu0 %v672_v43, %s2143_s2  ;;  %v674_v43 = vmul.f32 %v2697_v49, %v2697_v49  ;;  %v3922_v49 = vld [vmem:[#allocation11_spill] sm:$0xff] }
 0x43e   :  { %705 = vrot.lane.b32.xlu0 %v671_v19, %s2143_s2  ;;  %v2702_v19 = vsub.f32 %v2264_v52, %v641_v51  ;;  %v2733_v51 = vsub.f32 %v2264_v52, %v325_v38 }
 0x440   :  { %3903 = vst [vmem:[#allocation31_spill] sm:$0xff] %v2702_v19  ;;  %v673_v21 = vmul.f32 %v2702_v19, %v2702_v19  ;;  %3907 = vst [vmem:[#allocation35_spill] sm:$0xff] %v2733_v51  ;;  %v357_v52 = vmul.f32 %v2733_v51, %v2733_v51  ;;  %v1162_v51 = vmul.f32 0.0625, %v2611_v47 }
 0x442   :  { %v381_v38 = vsel %vm272_vm1, %v357_v52, 0.0 }
 0x44f   :  { %626 = vadd.xlane.f32.xlu1 %v625_v57  ;;  %v323_v57 = vmul.f32 0.0625, %v2467_v16  ;;  %v1147_v16 = vsel %vm272_vm1, %v2689_v18, 0.0 }
 0x453   :  { %1142 = vadd.xlane.f32.xlu1 %v1141_v17  ;;  %v631_v17 = vsel %vm272_vm1, %v2492_v61, 0.0  ;;  %v1189_v61 = vmul.f32 %v2720_v29, %v2720_v29 }
 0x457   :  { %635 = vadd.xlane.f32.xlu1 %v634_v7  ;;  %v2717_v7 = vpop.xlane.xlu1 %608 }
 0x458   :  { %v643_v19 = vmul.f32 0.0625, %v2717_v7 }
 0x45b   :  { %v1125_v42 = vpop.xlane.xlu1 %1124 }
 0x45d   :  { %1208 = vadd.xlane.f32.xlu0 %v1207_v11  ;;  %v2723_v11 = vsub.f32 %v2259_v50, %v323_v57  ;;  %v369_v50 = vsel %vm272_vm1, %v353_v31, 0.0  ;;  %v2748_v57 = vsub.f32 %v2276_v55, %v329_v2  ;;  %v335_v2 = vmul.f32 0.0625, %v2590_v56 }
 0x45f   :  { %3906 = vst [vmem:[#allocation34_spill] sm:$0xff] %v2723_v11  ;;  %v355_v60 = vmul.f32 %v2723_v11, %v2723_v11  ;;  %3909 = vst [vmem:[#allocation37_spill] sm:$0xff] %v2748_v57  ;;  %v3936_v11 = vld [vmem:[#allocation13_spill] sm:$0xff] }
 0x461   :  { %v375_v0 = vsel %vm272_vm1, %v355_v60, 0.0 }
 0x468   :  { %1389 = vrot.lane.b32.xlu1 %v2689_v18, %s2143_s2 }
 0x473   :  { %711 = vrot.lane.b32.xlu0 %v674_v43, %s2143_s2  ;;  %v327_v43 = vmul.f32 0.0625, %v2444_v28  ;;  %v1378_v28 = vpop.permute.xlu1 %1377 }
 0x475   :  { %v2741_v26 = vsub.f32 %v2269_v53, %v327_v43 }
 0x477   :  { %709 = vrot.lane.b32.xlu0 %v673_v21, %s2143_s2  ;;  %v1213_v21 = vsel %vm272_vm1, %v1189_v61, 0.0  ;;  %3908 = vst [vmem:[#allocation36_spill] sm:$0xff] %v2741_v26  ;;  %v2754_v31 = vpop.xlane.xlu1 %614  ;;  %v333_v61 = vmul.f32 0.0625, %v2564_v13 }
 0x47b   :  { %v1131_v60 = vpop.xlane.xlu1 %1130 }
 0x48c   :  { %632 = vadd.xlane.f32.xlu1 %v631_v17  ;;  %v331_v17 = vmul.f32 0.0625, %v2543_v58  ;;  %v644_v58 = vmul.f32 0.0625, %v2582_v48 }
 0x48e   :  { %v2757_v10 = vsub.f32 %v2293_v62, %v331_v17  ;;  %v2772_v13 = vsub.f32 %v2345_v22, %v644_v58  ;;  %v2775_v17 = vsub.f32 %v2355_v25, %v335_v2  ;;  %v1415_v2 = vsel %vm272_vm1, %v2673_v5, 0.0 }
 0x490   :  { %1148 = vadd.xlane.f32.xlu1 %v1147_v16  ;;  %v359_v16 = vmul.f32 %v2741_v26, %v2741_v26  ;;  %3910 = vst [vmem:[#allocation38_spill] sm:$0xff] %v2757_v10  ;;  %v363_v52 = vmul.f32 %v2757_v10, %v2757_v10  ;;  %3912 = vst [vmem:[#allocation40_spill] sm:$0xff] %v2772_v13  ;;  %v676_v56 = vmul.f32 %v2772_v13, %v2772_v13 }
 0x491   :  { %3913 = vst [vmem:[#allocation41_spill] sm:$0xff] %v2775_v17 }
 0x492   :  { %v387_v43 = vsel %vm272_vm1, %v359_v16, 0.0  ;;  %v399_v48 = vsel %vm272_vm1, %v363_v52, 0.0  ;;  %v624_v16 = vpop.xlane.xlu1 %623 }
 0x494   :  { %370 = vadd.xlane.f32.xlu1 %v369_v50  ;;  %v361_v50 = vmul.f32 %v2748_v57, %v2748_v57 }
 0x496   :  { %1214 = vadd.xlane.f32.xlu0 %v1213_v21  ;;  %v2765_v21 = vsub.f32 %v2318_v9, %v333_v61  ;;  %v1382_v22 = vpop.permute.xlu1 %1381 }
 0x497   :  { %v1439_v5 = vsel %vm272_vm1, %v1382_v22, 0.0 }
 0x498   :  { %376 = vadd.xlane.f32.xlu1 %v375_v0  ;;  %3911 = vst [vmem:[#allocation39_spill] sm:$0xff] %v2765_v21  ;;  %v393_v0 = vsel %vm272_vm1, %v361_v50, 0.0 }
 0x49c   :  { %382 = vadd.xlane.f32.xlu1 %v381_v38  ;;  %v365_v38 = vmul.f32 %v2765_v21, %v2765_v21 }
 0x49e   :  { %v405_v61 = vsel %vm272_vm1, %v365_v38, 0.0  ;;  %v1159_v38 = vmul.f32 0.0625, %v1125_v42  ;;  %v646_v42 = vmul.f32 0.0625, %v2606_v20  ;;  %v1161_v20 = vmul.f32 0.0625, %v1131_v60 }
 0x49f   :  { %v2787_v58 = vpop.xlane.xlu1 %620 }
 0x4a0   :  { %388 = vadd.xlane.f32.xlu1 %v387_v43  ;;  %v367_v43 = vmul.f32 %v2775_v17, %v2775_v17 }
 0x4a2   :  { %v411_v50 = vsel %vm272_vm1, %v367_v43, 0.0  ;;  %v2801_v43 = vsub.f32 %v2506_v6, %v1159_v38 }
 0x4a3   :  { %v2793_v52 = vpop.xlane.xlu1 %1136 }
 0x4a4   :  { %394 = vadd.xlane.f32.xlu1 %v393_v0  ;;  %v1421_v0 = vsel %vm272_vm1, %v2691_v33, 0.0  ;;  %3914 = vst [vmem:[#allocation42_spill] sm:$0xff] %v2801_v43  ;;  %v1191_v33 = vmul.f32 %v2801_v43, %v2801_v43 }
 0x4a8   :  { %400 = vadd.xlane.f32.xlu1 %v399_v48  ;;  %v1427_v48 = vsel %vm272_vm1, %v2709_v32, 0.0  ;;  %v1219_v32 = vsel %vm272_vm1, %v1191_v33, 0.0  ;;  %v2821_v33 = vpop.xlane.xlu0 %1151 }
 0x4ac   :  { %406 = vadd.xlane.f32.xlu1 %v405_v61  ;;  %715 = vrot.lane.b32.xlu0 %v676_v56, %s2143_s2  ;;  %v2797_v56 = vpop.xlane.xlu1 %629  ;;  %v1433_v61 = vsel %vm272_vm1, %v1378_v28, 0.0  ;;  %v2810_v28 = vsub.f32 %v2372_v30, %v646_v42  ;;  %v2831_v42 = vpop.xlane.xlu0 %373 }
 0x4ae   :  { %3915 = vst [vmem:[#allocation43_spill] sm:$0xff] %v2810_v28  ;;  %v678_v22 = vmul.f32 %v2810_v28, %v2810_v28 }
 0x4b0   :  { %412 = vadd.xlane.f32.xlu1 %v411_v50  ;;  %v1386_v50 = vpop.permute.xlu1 %1385  ;;  %v2837_v60 = vpop.xlane.xlu0 %379 }
 0x4b4   :  { %1416 = vadd.xlane.f32.xlu1 %v1415_v2  ;;  %v1445_v2 = vsel %vm272_vm1, %v1386_v50, 0.0  ;;  %v637_v50 = vmul.f32 0.0625, %v2510_v8 }
 0x4b6   :  { %v2824_v30 = vsub.f32 %v2254_v45, %v637_v50  ;;  %v2839_v45 = vpop.xlane.xlu0 %385 }
 0x4b8   :  { %1422 = vadd.xlane.f32.xlu1 %v1421_v0  ;;  %3916 = vst [vmem:[#allocation44_spill] sm:$0xff] %v2824_v30 }
 0x4bc   :  { %1428 = vadd.xlane.f32.xlu1 %v1427_v48 }
 0x4c0   :  { %1434 = vadd.xlane.f32.xlu1 %v1433_v61 }
 0x4c4   :  { %1440 = vadd.xlane.f32.xlu1 %v1439_v5 }
 0x4c8   :  { %1446 = vadd.xlane.f32.xlu1 %v1445_v2  ;;  %v2827_v2 = vsub.f32 %v2599_v1, %v1161_v20  ;;  %v1154_v20 = vmul.f32 0.0625, %v2502_v4 }
 0x4ca   :  { %3917 = vst [vmem:[#allocation45_spill] sm:$0xff] %v2827_v2 }
 0x4cb   :  { %1220 = vadd.xlane.f32.xlu0 %v1219_v32  ;;  %v669_v32 = vmul.f32 %v2824_v30, %v2824_v30 }
 0x4dc   :  { %v2812_v0 = vpop.xlane.xlu1 %626 }
 0x4e0   :  { %v2816_v48 = vpop.xlane.xlu1 %1142 }
 0x4e1   :  { %719 = vrot.lane.b32.xlu0 %v678_v22, %s2143_s2  ;;  %v1193_v22 = vmul.f32 %v2827_v2, %v2827_v2 }
 0x4e3   :  { %v1225_v8 = vsel %vm272_vm1, %v1193_v22, 0.0  ;;  %v2852_v22 = vsub.f32 %v2362_v27, %v1154_v20 }
 0x4e4   :  { %v636_v38 = vpop.xlane.xlu1 %635 }
 0x4e5   :  { %3919 = vst [vmem:[#allocation47_spill] sm:$0xff] %v2852_v22  ;;  %v1186_v4 = vmul.f32 %v2852_v22, %v2852_v22 }
 0x4e7   :  { %v1204_v20 = vsel %vm272_vm1, %v1186_v4, 0.0 }
 0x4e8   :  { %v1390_v61 = vpop.permute.xlu1 %1389 }
 0x4e9   :  { %v1451_v5 = vsel %vm272_vm1, %v1390_v61, 0.0  ;;  %v2841_v61 = vpop.xlane.xlu0 %391 }
 0x4ea   :  { %1452 = vadd.xlane.f32.xlu1 %v1451_v5  ;;  %v648_v5 = vmul.f32 0.0625, %v624_v16 }
 0x4ec   :  { %v2844_v50 = vsub.f32 %v2286_v59, %v648_v5  ;;  %v3921_v59 = vld [vmem:[#allocation22_spill] sm:$0xff] }
 0x4ed   :  { %v2847_v28 = vpop.xlane.xlu0 %397  ;;  %v1158_v5 = vmul.f32 0.0625, %v3921_v59 }
 0x4ee   :  { %3918 = vst [vmem:[#allocation46_spill] sm:$0xff] %v2844_v50 }
 0x4ef   :  { %v2865_v24 = vsub.f32 %v3922_v49, %v1158_v5  ;;  %v1163_v5 = vmul.f32 0.0625, %v2793_v52 }
 0x4f1   :  { %v2856_v13 = vpop.xlane.xlu0 %403  ;;  %3923 = vst [vmem:[#allocation22_spill] sm:$0xff] %v2865_v24  ;;  %v2880_v4 = vsub.f32 %v2630_v15, %v1163_v5 }
 0x4f3   :  { %3924 = vst [vmem:[#allocation11_spill] sm:$0xff] %v2880_v4 }
 0x4fb   :  { %701 = vrot.lane.b32.xlu1 %v669_v32, %s2143_s2  ;;  %v680_v32 = vmul.f32 %v2844_v50, %v2844_v50  ;;  %v2867_v50 = vpop.xlane.xlu0 %409 }
 0x4ff   :  { %v2875_v59 = vpop.xlane.xlu0 %415 }
 0x500   :  { %1226 = vadd.xlane.f32.xlu0 %v1225_v8  ;;  %v1156_v8 = vmul.f32 0.0625, %v2516_v14 }
 0x502   :  { %v2859_v16 = vsub.f32 %v2382_v36, %v1156_v8  ;;  %v1190_v8 = vmul.f32 %v2865_v24, %v2865_v24 }
 0x503   :  { %v1414_v44 = vpop.xlane.xlu0 %1413 }
 0x504   :  { %3920 = vst [vmem:[#allocation48_spill] sm:$0xff] %v2859_v16  ;;  %v1188_v14 = vmul.f32 %v2859_v16, %v2859_v16  ;;  %v1216_v30 = vsel %vm272_vm1, %v1190_v8, 0.0  ;;  %v1458_v24 = vmul.f32 0.0625, %v1414_v44 }
 0x516   :  { %723 = vrot.lane.b32.xlu0 %v680_v32, %s2143_s2  ;;  %v1210_v32 = vsel %vm272_vm1, %v1188_v14, 0.0  ;;  %v1195_v14 = vmul.f32 %v2880_v4, %v2880_v4  ;;  %v650_v4 = vmul.f32 0.0625, %v2797_v56  ;;  %v2921_v56 = vsub.f32 %v2362_v27, %v1458_v24 }
 0x518   :  { %v1231_v40 = vsel %vm272_vm1, %v1195_v14, 0.0  ;;  %3928 = vst [vmem:[#allocation52_spill] sm:$0xff] %v2921_v56 }
 0x519   :  { %v2896_v8 = vpop.xlane.xlu1 %632 }
 0x51d   :  { %v2900_v5 = vpop.xlane.xlu1 %1148 }
 0x51f   :  { %1205 = vadd.xlane.f32.xlu1 %v1204_v20  ;;  %v2883_v20 = vpop.xlane.xlu0 %1410 }
 0x521   :  { %v2908_v14 = vpop.xlane.xlu1 %370 }
 0x523   :  { %1211 = vadd.xlane.f32.xlu1 %v1210_v32  ;;  %v2888_v32 = vsub.f32 %v2269_v53, %v643_v19  ;;  %v2906_v19 = vsub.f32 %v2307_v3, %v650_v4  ;;  %v3929_v4 = vld [vmem:[#allocation26_spill] sm:$0xff] }
 0x524   :  { %v1160_v44 = vmul.f32 0.0625, %v3929_v4 }
 0x525   :  { %3925 = vst [vmem:[#allocation49_spill] sm:$0xff] %v2888_v32  ;;  %v675_v52 = vmul.f32 %v2888_v32, %v2888_v32  ;;  %3926 = vst [vmem:[#allocation50_spill] sm:$0xff] %v2906_v19  ;;  %v2917_v22 = vpop.xlane.xlu1 %376 }
 0x527   :  { %1217 = vadd.xlane.f32.xlu1 %v1216_v30  ;;  %v2893_v30 = vpop.xlane.xlu0 %1419 }
 0x52b   :  { %v2898_v7 = vpop.xlane.xlu0 %1425 }
 0x52f   :  { %v2903_v53 = vpop.xlane.xlu0 %1431 }
 0x533   :  { %v2910_v32 = vpop.xlane.xlu0 %1437 }
 0x535   :  { %1232 = vadd.xlane.f32.xlu0 %v1231_v40  ;;  %v652_v40 = vmul.f32 0.0625, %v636_v38 }
 0x537   :  { %v2915_v16 = vsub.f32 %v2350_v23, %v652_v40  ;;  %v2925_v38 = vpop.xlane.xlu0 %1443  ;;  %v1490_v23 = vmul.f32 %v2921_v56, %v2921_v56  ;;  %v2931_v40 = vpop.xlane.xlu1 %382 }
 0x538   :  { %713 = vrot.lane.b32.xlu1 %v675_v52, %s2143_s2  ;;  %v682_v52 = vmul.f32 %v2906_v19, %v2906_v19  ;;  %v3930_v19 = vld [vmem:[#allocation12_spill] sm:$0xff] }
 0x539   :  { %3927 = vst [vmem:[#allocation51_spill] sm:$0xff] %v2915_v16  ;;  %v684_v3 = vmul.f32 %v2915_v16, %v2915_v16  ;;  %v2934_v2 = vsub.f32 %v3930_v19, %v1160_v44 }
 0x53b   :  { %3931 = vst [vmem:[#allocation26_spill] sm:$0xff] %v2934_v2  ;;  %v2937_v27 = vpop.xlane.xlu0 %1449  ;;  %v2939_v24 = vpop.xlane.xlu1 %388 }
 0x53f   :  { %v2943_v4 = vpop.xlane.xlu0 %1455  ;;  %v2946_v56 = vpop.xlane.xlu1 %394 }
 0x543   :  { %v2948_v16 = vpop.permute.xlu0 %703  ;;  %v2953_v43 = vpop.xlane.xlu1 %400 }
 0x547   :  { %v2950_v44 = vpop.xlane.xlu0 %1202 }
 0x54b   :  { %727 = vrot.lane.b32.xlu0 %v682_v52, %s2143_s2  ;;  %v1192_v52 = vmul.f32 %v2934_v2, %v2934_v2  ;;  %v2958_v21 = vpop.permute.xlu0 %707  ;;  %v2960_v2 = vpop.xlane.xlu1 %406 }
 0x54c   :  { %3933 = vst [vmem:[#allocation53_spill] sm:$0xff] %v2960_v2 }
 0x54f   :  { %731 = vrot.lane.b32.xlu0 %v684_v3, %s2143_s2  ;;  %v1222_v3 = vsel %vm272_vm1, %v1192_v52, 0.0  ;;  %v2965_v10 = vpop.xlane.xlu1 %412 }
 0x550   :  { %3934 = vst [vmem:[#allocation54_spill] sm:$0xff] %v2965_v10 }
 0x553   :  { %1523 = vrot.lane.b32.xlu0 %v1490_v23, %s2143_s2  ;;  %v645_v23 = vmul.f32 0.0625, %v2754_v31  ;;  %v2968_v31 = vpop.xlane.xlu1 %1416 }
 0x555   :  { %v2956_v17 = vsub.f32 %v2276_v55, %v645_v23 }
 0x557   :  { %3932 = vst [vmem:[#allocation12_spill] sm:$0xff] %v2956_v17  ;;  %v677_v52 = vmul.f32 %v2956_v17, %v2956_v17  ;;  %v1423_v26 = vpop.xlane.xlu1 %1422 }
 0x558   :  { %v1461_v55 = vmul.f32 0.0625, %v1423_v26 }
 0x55a   :  { %v2971_v23 = vsub.f32 %v2475_v41, %v1461_v55  ;;  %v647_v41 = vmul.f32 0.0625, %v2787_v58 }
 0x55c   :  { %1223 = vadd.xlane.f32.xlu1 %v1222_v3  ;;  %v706_v3 = vpop.permute.xlu0 %705  ;;  %3935 = vst [vmem:[#allocation55_spill] sm:$0xff] %v2971_v23  ;;  %v1493_v17 = vmul.f32 %v2971_v23, %v2971_v23  ;;  %v2987_v47 = vsub.f32 %v2293_v62, %v647_v41  ;;  %v1164_v41 = vmul.f32 0.0625, %v2615_v63 }
 0x55d   :  { %v755_v57 = vsel %vm272_vm1, %v706_v3, 0.0 }
 0x55e   :  { %3938 = vst [vmem:[#allocation56_spill] sm:$0xff] %v2987_v47 }
 0x560   :  { %v2983_v26 = vpop.xlane.xlu0 %1208 }
 0x564   :  { %v2989_v55 = vpop.permute.xlu0 %711 }
 0x56d   :  { %717 = vrot.lane.b32.xlu1 %v677_v52, %s2143_s2  ;;  %v2977_v52 = vsub.f32 %v3936_v11, %v1162_v51  ;;  %v679_v51 = vmul.f32 %v2987_v47, %v2987_v47 }
 0x56f   :  { %3937 = vst [vmem:[#allocation13_spill] sm:$0xff] %v2977_v52 }
 0x572   :  { %756 = vadd.xlane.f32.xlu0 %v755_v57  ;;  %v1194_v57 = vmul.f32 %v2977_v52, %v2977_v52  ;;  %v1429_v52 = vpop.xlane.xlu1 %1428 }
 0x573   :  { %v1463_v29 = vmul.f32 0.0625, %v1429_v52 }
 0x574   :  { %v1228_v3 = vsel %vm272_vm1, %v1194_v57, 0.0 }
 0x575   :  { %v2996_v58 = vsub.f32 %v2506_v6, %v1463_v29 }
 0x576   :  { %v1435_v57 = vpop.xlane.xlu1 %1434 }
 0x577   :  { %3939 = vst [vmem:[#allocation57_spill] sm:$0xff] %v2996_v58  ;;  %v1495_v10 = vmul.f32 %v2996_v58, %v2996_v58 }
 0x588   :  { %1529 = vrot.lane.b32.xlu0 %v1493_v17, %s2143_s2  ;;  %v710_v17 = vpop.permute.xlu0 %709 }
 0x589   :  { %v761_v23 = vsel %vm272_vm1, %v710_v17, 0.0  ;;  %v649_v17 = vmul.f32 0.0625, %v2812_v0 }
 0x58b   :  { %v3016_v58 = vsub.f32 %v2318_v9, %v649_v17  ;;  %v1465_v9 = vmul.f32 0.0625, %v1435_v57 }
 0x58d   :  { %3942 = vst [vmem:[#allocation58_spill] sm:$0xff] %v3016_v58 }
 0x591   :  { %1229 = vadd.xlane.f32.xlu1 %v1228_v3  ;;  %v1441_v3 = vpop.xlane.xlu1 %1440 }
 0x595   :  { %v1447_v62 = vpop.xlane.xlu1 %1446 }
 0x599   :  { %v3001_v47 = vpop.xlane.xlu1 %1452 }
 0x59d   :  { %v702_v52 = vpop.permute.xlu1 %701 }
 0x5a2   :  { %721 = vrot.lane.b32.xlu1 %v679_v51, %s2143_s2  ;;  %v3940_v51 = vld [vmem:[#allocation14_spill] sm:$0xff] }
 0x5a3   :  { %v3004_v2 = vsub.f32 %v3940_v51, %v1164_v41  ;;  %v651_v41 = vmul.f32 0.0625, %v2896_v8  ;;  %v3032_v8 = vsub.f32 %v2599_v1, %v1465_v9 }
 0x5a5   :  { %3941 = vst [vmem:[#allocation14_spill] sm:$0xff] %v3004_v2  ;;  %3944 = vst [vmem:[#allocation60_spill] sm:$0xff] %v3032_v8  ;;  %v1497_v17 = vmul.f32 %v3032_v8, %v3032_v8 }
 0x5a7   :  { %762 = vadd.xlane.f32.xlu0 %v761_v23  ;;  %v1196_v23 = vmul.f32 %v3004_v2, %v3004_v2  ;;  %v3024_v2 = vsub.f32 %v2355_v25, %v651_v41  ;;  %v752_v25 = vsel %vm272_vm1, %v2948_v16, 0.0  ;;  %v1457_v41 = vmul.f32 0.0625, %v2883_v20 }
 0x5a9   :  { %v1234_v6 = vsel %vm272_vm1, %v1196_v23, 0.0  ;;  %3943 = vst [vmem:[#allocation59_spill] sm:$0xff] %v3024_v2 }
 0x5ac   :  { %v3010_v29 = vpop.xlane.xlu1 %1205 }
 0x5b0   :  { %v3012_v63 = vpop.xlane.xlu1 %1211 }
 0x5b4   :  { %v3019_v39 = vpop.xlane.xlu1 %1217 }
 0x5b8   :  { %v714_v23 = vpop.permute.xlu1 %713 }
 0x5b9   :  { %v767_v0 = vsel %vm272_vm1, %v714_v23, 0.0  ;;  %v3043_v23 = vsub.f32 %v2440_v12, %v1457_v41  ;;  %v3055_v12 = vpop.xlane.xlu0 %1214 }
 0x5bb   :  { %3945 = vst [vmem:[#allocation61_spill] sm:$0xff] %v3043_v23  ;;  %v1489_v1 = vmul.f32 %v3043_v23, %v3043_v23 }
 0x5bd   :  { %1533 = vrot.lane.b32.xlu0 %v1495_v10, %s2143_s2  ;;  %v681_v10 = vmul.f32 %v3016_v58, %v3016_v58  ;;  %v3057_v9 = vpop.permute.xlu0 %715 }
 0x5c6   :  { %1235 = vadd.xlane.f32.xlu1 %v1234_v6  ;;  %v683_v6 = vmul.f32 %v3024_v2, %v3024_v2 }
 0x5d7   :  { %725 = vrot.lane.b32.xlu1 %v681_v10, %s2143_s2 }
 0x5db   :  { %729 = vrot.lane.b32.xlu1 %v683_v6, %s2143_s2 }
 0x5dc   :  { %768 = vadd.xlane.f32.xlu0 %v767_v0  ;;  %v1467_v0 = vmul.f32 0.0625, %v1441_v3  ;;  %v1460_v3 = vmul.f32 0.0625, %v2893_v30  ;;  %v1469_v30 = vmul.f32 0.0625, %v1447_v62 }
 0x5de   :  { %v3050_v16 = vsub.f32 %v2630_v15, %v1467_v0  ;;  %v3078_v58 = vsub.f32 %v2655_v46, %v1469_v30 }
 0x5e0   :  { %3946 = vst [vmem:[#allocation62_spill] sm:$0xff] %v3050_v16  ;;  %v1499_v20 = vmul.f32 %v3050_v16, %v3050_v16  ;;  %3948 = vst [vmem:[#allocation64_spill] sm:$0xff] %v3078_v58 }
 0x5e9   :  { %v3040_v10 = vpop.xlane.xlu1 %1223 }
 0x5ed   :  { %v718_v57 = vpop.permute.xlu1 %717 }
 0x5ee   :  { %v773_v6 = vsel %vm272_vm1, %v718_v57, 0.0  ;;  %v3068_v57 = vsub.f32 %v2382_v36, %v1460_v3  ;;  %v1501_v36 = vmul.f32 %v3078_v58, %v3078_v58  ;;  %v758_v3 = vsel %vm272_vm1, %v2958_v21, 0.0 }
 0x5f0   :  { %3947 = vst [vmem:[#allocation63_spill] sm:$0xff] %v3068_v57  ;;  %v1492_v0 = vmul.f32 %v3068_v57, %v3068_v57 }
 0x5f2   :  { %1537 = vrot.lane.b32.xlu0 %v1497_v17, %s2143_s2  ;;  %v3059_v17 = vpop.xlane.xlu0 %1220 }
 0x5f6   :  { %v3062_v41 = vpop.permute.xlu0 %719 }
 0x5f7   :  { %v776_v8 = vsel %vm272_vm1, %v3062_v41, 0.0  ;;  %v1470_v41 = vmul.f32 0.0625, %v2937_v27 }
 0x5fa   :  { %v3065_v15 = vpop.xlane.xlu0 %1226 }
 0x5ff   :  { %753 = vadd.xlane.f32.xlu1 %v752_v25  ;;  %v749_v25 = vsel %vm272_vm1, %v702_v52, 0.0 }
 0x610   :  { %1521 = vrot.lane.b32.xlu1 %v1489_v1, %s2143_s2 }
 0x611   :  { %774 = vadd.xlane.f32.xlu0 %v773_v6  ;;  %v724_v6 = vpop.permute.xlu0 %723 }
 0x615   :  { %v3090_v62 = vpop.xlane.xlu0 %1232 }
 0x619   :  { %v728_v30 = vpop.permute.xlu0 %727 }
 0x61e   :  { %v3070_v1 = vpop.xlane.xlu1 %1229 }
 0x622   :  { %v722_v52 = vpop.permute.xlu1 %721 }
 0x627   :  { %1541 = vrot.lane.b32.xlu0 %v1499_v20, %s2143_s2  ;;  %v782_v20 = vsel %vm272_vm1, %v724_v6, 0.0  ;;  %v1459_v6 = vmul.f32 0.0625, %v2968_v31  ;;  %v788_v31 = vsel %vm272_vm1, %v728_v30, 0.0 }
 0x634   :  { %750 = vadd.xlane.f32.xlu1 %v749_v25  ;;  %v779_v25 = vsel %vm272_vm1, %v722_v52, 0.0 }
 0x645   :  { %1527 = vrot.lane.b32.xlu1 %v1492_v0, %s2143_s2  ;;  %v1462_v0 = vmul.f32 0.0625, %v2898_v7 }
 0x646   :  { %783 = vadd.xlane.f32.xlu0 %v782_v20  ;;  %v3088_v20 = vsub.f32 %v2457_v35, %v1459_v6  ;;  %v1471_v35 = vmul.f32 0.0625, %v3001_v47  ;;  %v1165_v6 = vmul.f32 0.0625, %v2816_v48 }
 0x647   :  { %v3093_v52 = vsub.f32 %v3922_v49, %v1462_v0  ;;  %v1464_v0 = vmul.f32 0.0625, %v2903_v53 }
 0x648   :  { %3949 = vst [vmem:[#allocation65_spill] sm:$0xff] %v3088_v20  ;;  %v3104_v7 = vsub.f32 %v2689_v18, %v1471_v35  ;;  %v3116_v47 = vsub.f32 %v2655_v46, %v1165_v6  ;;  %v3140_v6 = vpop.permute.xlu0 %731 }
 0x649   :  { %3950 = vst [vmem:[#allocation66_spill] sm:$0xff] %v3093_v52  ;;  %v1494_v21 = vmul.f32 %v3093_v52, %v3093_v52 }
 0x64a   :  { %780 = vadd.xlane.f32.xlu0 %v779_v25  ;;  %v1491_v25 = vmul.f32 %v3088_v20, %v3088_v20  ;;  %3951 = vst [vmem:[#allocation67_spill] sm:$0xff] %v3104_v7  ;;  %v1503_v49 = vmul.f32 %v3104_v7, %v3104_v7 }
 0x660   :  { %1545 = vrot.lane.b32.xlu0 %v1501_v36, %s2143_s2  ;;  %v764_v36 = vsel %vm272_vm1, %v2989_v55, 0.0  ;;  %v1197_v55 = vmul.f32 %v3116_v47, %v3116_v47 }
 0x662   :  { %v1237_v46 = vsel %vm272_vm1, %v1197_v55, 0.0  ;;  %v770_v55 = vsel %vm272_vm1, %v3057_v9, 0.0 }
 0x669   :  { %759 = vadd.xlane.f32.xlu1 %v758_v3  ;;  %v3111_v3 = vpop.xlane.xlu1 %1235 }
 0x66d   :  { %v3119_v30 = vpop.permute.xlu1 %725 }
 0x66e   :  { %v785_v27 = vsel %vm272_vm1, %v3119_v30, 0.0 }
 0x671   :  { %v730_v53 = vpop.permute.xlu1 %729 }
 0x672   :  { %v791_v35 = vsel %vm272_vm1, %v730_v53, 0.0 }
 0x67a   :  { %1525 = vrot.lane.b32.xlu1 %v1491_v25, %s2143_s2  ;;  %v1167_v25 = vmul.f32 0.0625, %v2900_v5 }
 0x67e   :  { %1531 = vrot.lane.b32.xlu1 %v1494_v21, %s2143_s2  ;;  %v3122_v21 = vsub.f32 %v3930_v19, %v1464_v0  ;;  %v3142_v0 = vpop.permute.xlu0 %1523 }
 0x67f   :  { %789 = vadd.xlane.f32.xlu0 %v788_v31  ;;  %v3125_v31 = vsub.f32 %v2689_v18, %v1167_v25 }
 0x680   :  { %3952 = vst [vmem:[#allocation68_spill] sm:$0xff] %v3122_v21  ;;  %v1496_v48 = vmul.f32 %v3122_v21, %v3122_v21 }
 0x681   :  { %3953 = vst [vmem:[#allocation69_spill] sm:$0xff] %v3125_v31  ;;  %v1199_v5 = vmul.f32 %v3125_v31, %v3125_v31 }
 0x682   :  { %v3144_v25 = vpop.xlane.xlu0 %756 }
 0x683   :  { %v1243_v18 = vsel %vm272_vm1, %v1199_v5, 0.0 }
 0x68c   :  { %v3135_v19 = vpop.xlane.xlu1 %753 }
 0x695   :  { %1549 = vrot.lane.b32.xlu0 %v1503_v49, %s2143_s2  ;;  %v1522_v49 = vpop.permute.xlu1 %1521 }
 0x6a2   :  { %765 = vadd.xlane.f32.xlu1 %v764_v36  ;;  %v1569_v36 = vsel %vm272_vm1, %v1522_v49, 0.0 }
 0x6b3   :  { %1535 = vrot.lane.b32.xlu1 %v1496_v48, %s2143_s2  ;;  %v1530_v48 = vpop.permute.xlu0 %1529 }
 0x6b4   :  { %1238 = vadd.xlane.f32.xlu0 %v1237_v46  ;;  %v1466_v46 = vmul.f32 0.0625, %v2910_v32 }
 0x6b6   :  { %v3152_v53 = vsub.f32 %v3936_v11, %v1466_v46 }
 0x6b7   :  { %v3149_v5 = vpop.xlane.xlu0 %762 }
 0x6b8   :  { %1244 = vadd.xlane.f32.xlu0 %v1243_v18  ;;  %3954 = vst [vmem:[#allocation70_spill] sm:$0xff] %v3152_v53 }
 0x6bb   :  { %v1534_v18 = vpop.permute.xlu0 %1533 }
 0x6bc   :  { %792 = vadd.xlane.f32.xlu0 %v791_v35  ;;  %v1498_v35 = vmul.f32 %v3152_v53, %v3152_v53  ;;  %v1581_v53 = vsel %vm272_vm1, %v1530_v48, 0.0 }
 0x6bf   :  { %v3156_v49 = vpop.xlane.xlu0 %768 }
 0x6c0   :  { %1570 = vadd.xlane.f32.xlu0 %v1569_v36 }
 0x6c1   :  { %v3159_v36 = vpop.xlane.xlu1 %750 }
 0x6c3   :  { %v1538_v9 = vpop.permute.xlu0 %1537 }
 0x6c4   :  { %v1593_v58 = vsel %vm272_vm1, %v1538_v9, 0.0 }
 0x6c5   :  { %v1528_v21 = vpop.permute.xlu1 %1527 }
 0x6d7   :  { %771 = vadd.xlane.f32.xlu1 %v770_v55  ;;  %v3161_v55 = vpop.xlane.xlu0 %774 }
 0x6db   :  { %v1542_v52 = vpop.permute.xlu0 %1541 }
 0x6df   :  { %v3166_v46 = vpop.xlane.xlu0 %783 }
 0x6e3   :  { %v3169_v7 = vpop.xlane.xlu0 %780 }
 0x6e7   :  { %v1546_v16 = vpop.permute.xlu0 %1545 }
 0x6e8   :  { %1539 = vrot.lane.b32.xlu1 %v1498_v35, %s2143_s2  ;;  %v1587_v35 = vsel %vm272_vm1, %v1534_v18, 0.0  ;;  %v1605_v48 = vsel %vm272_vm1, %v1546_v16, 0.0  ;;  %v1468_v18 = vmul.f32 0.0625, %v2925_v38  ;;  %v3197_v38 = vld [vmem:[%s3807_s3] ss:$0 sm:$0xff] }
 0x6f6   :  { %v3163_v32 = vpop.xlane.xlu1 %759 }
 0x6fa   :  { %v1526_v57 = vpop.permute.xlu1 %1525 }
 0x6fb   :  { %v1575_v11 = vsel %vm272_vm1, %v1526_v57, 0.0  ;;  %v1599_v57 = vsel %vm272_vm1, %v1542_v52, 0.0  ;;  %v3956_v52 = vld [vmem:[#allocation15_spill] sm:$0xff] }
 0x6fc   :  { %1576 = vadd.xlane.f32.xlu0 %v1575_v11  ;;  %v3188_v9 = vsub.f32 %v3956_v52, %v1470_v41 }
 0x6fe   :  { %3957 = vst [vmem:[#allocation15_spill] sm:$0xff] %v3188_v9  ;;  %v1502_v16 = vmul.f32 %v3188_v9, %v3188_v9  ;;  %v3967_v9 = vld [vmem:[#allocation23_spill] sm:$0xff] }
 0x700   :  { %1582 = vadd.xlane.f32.xlu0 %v1581_v53 }
 0x704   :  { %1588 = vadd.xlane.f32.xlu0 %v1587_v35  ;;  %v3958_v35 = vld [vmem:[#allocation16_spill] sm:$0xff] }
 0x708   :  { %1594 = vadd.xlane.f32.xlu0 %v1593_v58  ;;  %v3182_v58 = vsub.f32 %v3940_v51, %v1468_v18  ;;  %v1472_v51 = vmul.f32 0.0625, %v2943_v4 }
 0x70a   :  { %3955 = vst [vmem:[#allocation71_spill] sm:$0xff] %v3182_v58 }
 0x70c   :  { %777 = vadd.xlane.f32.xlu1 %v776_v8  ;;  %v3176_v20 = vpop.xlane.xlu0 %789  ;;  %1600 = vadd.xlane.f32.xlu0 %v1599_v57  ;;  %v1500_v8 = vmul.f32 %v3182_v58, %v3182_v58  ;;  %v3205_v57 = vsub.f32 %v3958_v35, %v1472_v51 }
 0x70e   :  { %3959 = vst [vmem:[#allocation16_spill] sm:$0xff] %v3205_v57 }
 0x710   :  { %v1550_v53 = vpop.permute.xlu0 %1549  ;;  %1606 = vadd.xlane.f32.xlu0 %v1605_v48  ;;  %v1504_v48 = vmul.f32 %v3205_v57, %v3205_v57 }
 0x711   :  { %v1611_v11 = vsel %vm272_vm1, %v1550_v53, 0.0  ;;  %v1166_v53 = vmul.f32 0.0625, %v2626_v54  ;;  %v1532_v54 = vpop.permute.xlu1 %1531 }
 0x713   :  { %v3212_v18 = vsub.f32 %v3956_v52, %v1166_v53  ;;  %v794_v52 = vsel %vm272_vm1, %v3140_v6, 0.0  ;;  %v1584_v53 = vsel %vm272_vm1, %v1532_v54, 0.0 }
 0x714   :  { %1612 = vadd.xlane.f32.xlu0 %v1611_v11  ;;  %v1168_v11 = vmul.f32 0.0625, %v2821_v33 }
 0x715   :  { %3960 = vst [vmem:[#allocation72_spill] sm:$0xff] %v3212_v18  ;;  %v1198_v4 = vmul.f32 %v3212_v18, %v3212_v18  ;;  %v3968_v18 = vld [vmem:[#allocation24_spill] sm:$0xff] }
 0x716   :  { %v3216_v30 = vsub.f32 %v3958_v35, %v1168_v11  ;;  %v1578_v35 = vsel %vm272_vm1, %v1528_v21, 0.0 }
 0x717   :  { %v1240_v41 = vsel %vm272_vm1, %v1198_v4, 0.0 }
 0x718   :  { %3961 = vst [vmem:[#allocation73_spill] sm:$0xff] %v3216_v30 }
 0x71d   :  { %1543 = vrot.lane.b32.xlu1 %v1500_v8, %s2143_s2  ;;  %v1200_v8 = vmul.f32 %v3216_v30, %v3216_v30 }
 0x721   :  { %1547 = vrot.lane.b32.xlu1 %v1502_v16, %s2143_s2  ;;  %v1246_v16 = vsel %vm272_vm1, %v1200_v8, 0.0 }
 0x72a   :  { %861 = vrot.lane.b32.xlu0 %v3197_v38, %s2144_s22 }
 0x72f   :  { %v3226_v33 = vpop.xlane.xlu1 %765 }
 0x733   :  { %v1536_v51 = vpop.permute.xlu1 %1535 }
 0x734   :  { %v1590_v11 = vsel %vm272_vm1, %v1536_v51, 0.0  ;;  %v3246_v51 = vld [vmem:[%s3808_s4] ss:$0 sm:$0xff]  ;;  %s2145_s4 = smov [#allocation7]  }
 0x735   :  { %s1751_s24 = sshll.u32 %s2145_s4, 4  ;;  %s1752_s24 = int_to_ptr.vmem [resolvable:$true] %s1751_s24 }
 0x736   :  { %s2110_s25 = scalar_lea.vmem %s1752_s24, 4096  ;;  %p2115_p3 = scmp.lt.s32.totalorder %s1752_s24, %s1752_s24 }
 0x737   :  { %p2111_p2 = scmp.ne.s32.totalorder %s1752_s24, %s2110_s25  ;;  %p2116_p4 = scmp.lt.s32.totalorder %s2110_s25, %s2110_s25 }
 0x739   :  { %p2117_p5 = por %p2116_p4, %p2115_p3 }
 0x73b   :  { %p2118_p6 = pnand %p2117_p5, %p2111_p2 }
 0x745   :  { %786 = vadd.xlane.f32.xlu1 %v785_v27  ;;  %v1572_v27 = vsel %vm272_vm1, %v3142_v0, 0.0 }
 0x756   :  { %1551 = vrot.lane.b32.xlu1 %v1504_v48, %s2143_s2 }
 0x764   :  { %v3231_v48 = vpop.xlane.xlu1 %771 }
 0x768   :  { %v1540_v4 = vpop.permute.xlu1 %1539 }
 0x769   :  { %v1596_v6 = vsel %vm272_vm1, %v1540_v4, 0.0  ;;  %v424_v4 = vmul.f32 0.0625, %v2841_v61  ;;  %v1249_v61 = vmul.f32 0.0625, %v2950_v44  ;;  %v419_v44 = vmul.f32 0.0625, %v2917_v22 }
 0x76a   :  { %v423_v22 = vmul.f32 0.0625, %v2939_v24 }
 0x76b   :  { %v440_v57 = vadd.f32 1e-05, %v424_v4 }
 0x76c   :  { %v439_v2 = vadd.f32 1e-05, %v423_v22  ;;  %v3969_v22 = vld [vmem:[#allocation25_spill] sm:$0xff] }
 0x77a   :  { %1241 = vadd.xlane.f32.xlu1 %v1240_v41 }
 0x77e   :  { %1247 = vadd.xlane.f32.xlu1 %v1246_v16 }
 0x782   :  { %795 = vadd.xlane.f32.xlu1 %v794_v52 }
 0x786   :  { %1573 = vadd.xlane.f32.xlu1 %v1572_v27 }
 0x78a   :  { %1579 = vadd.xlane.f32.xlu1 %v1578_v35  ;;  %v418_v35 = vmul.f32 0.0625, %v2831_v42 }
 0x78e   :  { %1585 = vadd.xlane.f32.xlu1 %v1584_v53  ;;  %v420_v53 = vmul.f32 0.0625, %v2837_v60  ;;  %v432_v60 = vmul.f32 0.0625, %v2875_v59 }
 0x792   :  { %1591 = vadd.xlane.f32.xlu1 %v1590_v11  ;;  %v422_v11 = vmul.f32 0.0625, %v2839_v45 }
 0x796   :  { %1597 = vadd.xlane.f32.xlu1 %v1596_v6  ;;  %v434_v6 = vadd.f32 1e-05, %v418_v35 }
 0x798   :  { %1938 = vrsqrt.f32 %v434_v6  ;;  %v1253_v6 = vmul.f32 0.0625, %v3055_v12 }
 0x799   :  { %v3236_v41 = vpop.xlane.xlu1 %777 }
 0x79d   :  { %v1544_v0 = vpop.permute.xlu1 %1543 }
 0x79e   :  { %v1602_v8 = vsel %vm272_vm1, %v1544_v0, 0.0  ;;  %v426_v0 = vmul.f32 0.0625, %v2847_v28  ;;  %v1251_v28 = vmul.f32 0.0625, %v2983_v26 }
 0x79f   :  { %1603 = vadd.xlane.f32.xlu1 %v1602_v8  ;;  %v436_v8 = vadd.f32 1e-05, %v420_v53 }
 0x7a0   :  { %v442_v42 = vadd.f32 1e-05, %v426_v0  ;;  %v1267_v4 = vadd.f32 1e-05, %v1251_v28 }
 0x7a1   :  { %v1548_v21 = vpop.permute.xlu1 %1547  ;;  %1940 = vrsqrt.f32 %v436_v8  ;;  %v1269_v8 = vadd.f32 1e-05, %v1253_v6  ;;  %v3965_v6 = vld [vmem:[#allocation20_spill] sm:$0xff] }
 0x7a2   :  { %v1608_v16 = vsel %vm272_vm1, %v1548_v21, 0.0  ;;  %v428_v21 = vmul.f32 0.0625, %v2856_v13  ;;  %v417_v13 = vmul.f32 0.0625, %v2908_v14  ;;  %v1939_v26 = vpop.eup %1938 }
 0x7a3   :  { %1609 = vadd.xlane.f32.xlu1 %v1608_v16  ;;  %v3256_v16 = vpop.xlane.xlu0 %1238 }
 0x7a4   :  { %v444_v45 = vadd.f32 1e-05, %v428_v21  ;;  %v433_v59 = vadd.f32 1e-05, %v417_v13  ;;  %v3963_v13 = vld [vmem:[#allocation18_spill] sm:$0xff] }
 0x7a7   :  { %v3263_v53 = vpop.xlane.xlu0 %1244 }
 0x7ab   :  { %v3267_v0 = vpop.xlane.xlu0 %792  ;;  %v1941_v14 = vpop.eup %1940 }
 0x7d2   :  { %v3240_v52 = vpop.xlane.xlu1 %786 }
 0x7d6   :  { %v1552_v54 = vpop.permute.xlu1 %1551 }
 0x7d7   :  { %v1614_v27 = vsel %vm272_vm1, %v1552_v54, 0.0  ;;  %v438_v54 = vadd.f32 1e-05, %v422_v11  ;;  %v1265_v11 = vadd.f32 1e-05, %v1249_v61 }
 0x7d8   :  { %1615 = vadd.xlane.f32.xlu1 %v1614_v27  ;;  %v430_v27 = vmul.f32 0.0625, %v2867_v50  ;;  %v448_v50 = vadd.f32 1e-05, %v432_v60 }
 0x7d9   :  { %1942 = vrsqrt.f32 %v438_v54  ;;  %v3962_v54 = vld [vmem:[#allocation17_spill] sm:$0xff] }
 0x7da   :  { %v446_v35 = vadd.f32 1e-05, %v430_v27  ;;  %1944 = vrsqrt.f32 %v440_v57  ;;  %v466_v27 = vmul.f32 %v1939_v26, %v3962_v54 }
 0x7db   :  { %1946 = vrsqrt.f32 %v442_v42  ;;  %v435_v42 = vadd.f32 1e-05, %v419_v44 }
 0x7dc   :  { %1948 = vrsqrt.f32 %v444_v45  ;;  %v421_v45 = vmul.f32 0.0625, %v2931_v40  ;;  %v3966_v40 = vld [vmem:[#allocation21_spill] sm:$0xff] }
 0x7dd   :  { %1950 = vrsqrt.f32 %v446_v35  ;;  %v3274_v35 = vpop.xlane.xlu0 %1570 }
 0x7de   :  { %1952 = vrsqrt.f32 %v448_v50  ;;  %v468_v50 = vmul.f32 %v1941_v14, %v3963_v13  ;;  %v437_v30 = vadd.f32 1e-05, %v421_v45 }
 0x7df   :  { %1954 = vrsqrt.f32 %v1265_v11  ;;  %v488_v11 = vmul.f32 %v3197_v38, %v466_v27 }
 0x7e0   :  { %1956 = vrsqrt.f32 %v1267_v4  ;;  %v3964_v4 = vld [vmem:[#allocation19_spill] sm:$0xff] }
 0x7e1   :  { %1958 = vrsqrt.f32 %v433_v59  ;;  %v3283_v31 = vpop.xlane.xlu0 %1576 }
 0x7e2   :  { %1960 = vrsqrt.f32 %v1269_v8  ;;  %v490_v8 = vmul.f32 %v3197_v38, %v468_v50 }
 0x7e3   :  { %v1943_v57 = vpop.eup %1942  ;;  %1962 = vrsqrt.f32 %v435_v42  ;;  %v3290_v42 = vadd.f32 %v3246_v51, %v488_v11 }
 0x7e4   :  { %v1945_v21 = vpop.eup %1944  ;;  %v470_v59 = vmul.f32 %v1943_v57, %v3964_v4  ;;  %v425_v57 = vmul.f32 0.0625, %v2946_v56  ;;  %1964 = vrsqrt.f32 %v437_v30  ;;  %v3302_v11 = vadd.f32 %v3246_v51, %v490_v8  ;;  %v3970_v4 = vld [vmem:[#allocation32_spill] sm:$0xff] }
 0x7e5   :  { %v1947_v60 = vpop.eup %1946  ;;  %v472_v44 = vmul.f32 %v1945_v21, %v3965_v6  ;;  %1966 = vrsqrt.f32 %v439_v2  ;;  %v3971_v6 = vld [vmem:[#allocation53_spill] sm:$0xff] }
 0x7e6   :  { %v1949_v12 = vpop.eup %1948  ;;  %v474_v54 = vmul.f32 %v1947_v60, %v3966_v40  ;;  %v3313_v40 = vpop.xlane.xlu0 %1582 }
 0x7e7   :  { %v1951_v28 = vpop.eup %1950  ;;  %v476_v58 = vmul.f32 %v1949_v12, %v3967_v9  ;;  %v492_v9 = vmul.f32 %v3197_v38, %v470_v59  ;;  %v494_v60 = vmul.f32 %v3197_v38, %v472_v44  ;;  %v429_v44 = vmul.f32 0.0625, %v3971_v6 }
 0x7e8   :  { %v1953_v26 = vpop.eup %1952  ;;  %v478_v23 = vmul.f32 %v1951_v28, %v3968_v18  ;;  %v427_v18 = vmul.f32 0.0625, %v2953_v43  ;;  %v496_v45 = vmul.f32 %v3197_v38, %v474_v54  ;;  %v441_v43 = vadd.f32 1e-05, %v425_v57 }
 0x7e9   :  { %880 = vrot.lane.b32.xlu1 %v3246_v51, %s2144_s22  ;;  %v1955_v24 = vpop.eup %1954  ;;  %v498_v12 = vmul.f32 %v3197_v38, %v476_v58  ;;  %v480_v28 = vmul.f32 %v1953_v26, %v3969_v22  ;;  %v3307_v58 = vadd.f32 %v3246_v51, %v492_v9  ;;  %v3310_v30 = vadd.f32 %v3246_v51, %v494_v60  ;;  %v3972_v26 = vld [vmem:[#allocation54_spill] sm:$0xff] }
 0x7ea   :  { %v1957_v14 = vpop.eup %1956  ;;  %v500_v56 = vmul.f32 %v3197_v38, %v478_v23  ;;  %v1297_v13 = vmul.f32 %v1955_v24, %v2648_v34  ;;  %v443_v23 = vadd.f32 1e-05, %v427_v18  ;;  %v431_v34 = vmul.f32 0.0625, %v3972_v26 }
 0x7eb   :  { %v1959_v21 = vpop.eup %1958  ;;  %v1299_v50 = vmul.f32 %v1957_v14, %v2680_v37  ;;  %v3316_v2 = vadd.f32 %v3246_v51, %v496_v45  ;;  %v3319_v54 = vadd.f32 %v3246_v51, %v498_v12  ;;  %v502_v24 = vmul.f32 %v3197_v38, %v480_v28  ;;  %v3974_v28 = vld [vmem:[#allocation33_spill] sm:$0xff] }
 0x7ec   :  { %v465_v59 = vmul.f32 %v1959_v21, %v3970_v4  ;;  %v1961_v37 = vpop.eup %1960  ;;  %v1255_v14 = vmul.f32 0.0625, %v3059_v17  ;;  %v3326_v21 = vadd.f32 %v3246_v51, %v500_v56  ;;  %v1313_v9 = vmul.f32 %v3197_v38, %v1297_v13  ;;  %v3976_v13 = vld [vmem:[#allocation34_spill] sm:$0xff] }
 0x7ed   :  { %v1963_v57 = vpop.eup %1962  ;;  %v1315_v60 = vmul.f32 %v3197_v38, %v1299_v50  ;;  %v1257_v18 = vmul.f32 0.0625, %v3065_v15  ;;  %1968 = vrsqrt.f32 %v441_v43  ;;  %v445_v12 = vadd.f32 1e-05, %v429_v44 }
 0x7ee   :  { %3973 = vst [vmem:[#allocation17_spill] sm:$0xff] %v3326_v21  ;;  %v487_v45 = vmul.f32 %v3197_v38, %v465_v59  ;;  %v1250_v22 = vmul.f32 0.0625, %v3010_v29  ;;  %v1301_v17 = vmul.f32 %v1961_v37, %v3974_v28  ;;  %1970 = vrsqrt.f32 %v443_v23  ;;  %v3347_v23 = vpop.xlane.xlu0 %1588  ;;  %v3979_v28 = vld [vmem:[#allocation35_spill] sm:$0xff] }
 0x7ef   :  { %v447_v4 = vadd.f32 1e-05, %v431_v34  ;;  %v1252_v6 = vmul.f32 0.0625, %v3012_v63  ;;  %v3336_v56 = vadd.f32 %v3246_v51, %v502_v24  ;;  %v467_v26 = vmul.f32 %v1963_v57, %v3976_v13  ;;  %v1965_v63 = vpop.eup %1964  ;;  %v3980_v13 = vld [vmem:[#allocation36_spill] sm:$0xff] }
 0x7f0   :  { %v1271_v50 = vadd.f32 1e-05, %v1255_v14  ;;  %v1254_v15 = vmul.f32 0.0625, %v3019_v39  ;;  %v3341_v59 = vadd.f32 %v3246_v51, %v1313_v9  ;;  %v3344_v43 = vadd.f32 %v3246_v51, %v1315_v60  ;;  %v1967_v14 = vpop.eup %1966 }
 0x7f1   :  { %3975 = vst [vmem:[#allocation18_spill] sm:$0xff] %v3336_v56  ;;  %v1273_v29 = vadd.f32 1e-05, %v1257_v18  ;;  %v1259_v44 = vmul.f32 0.0625, %v3090_v62  ;;  %v3350_v34 = vadd.f32 %v3246_v51, %v487_v45  ;;  %1972 = vrsqrt.f32 %v445_v12 }
 0x7f2   :  { %3977 = vst [vmem:[#allocation19_spill] sm:$0xff] %v3341_v59  ;;  %3978 = vst [vmem:[#allocation20_spill] sm:$0xff] %v3344_v43  ;;  %v1266_v37 = vadd.f32 1e-05, %v1250_v22  ;;  %v1256_v24 = vmul.f32 0.0625, %v3040_v10  ;;  %v1317_v57 = vmul.f32 %v3197_v38, %v1301_v17  ;;  %1974 = vrsqrt.f32 %v447_v4 }
 0x7f3   :  { %v1268_v9 = vadd.f32 1e-05, %v1252_v6  ;;  %v799_v60 = vmul.f32 0.0625, %v3144_v25  ;;  %v489_v62 = vmul.f32 %v3197_v38, %v467_v26  ;;  %1976 = vrsqrt.f32 %v1271_v50 }
 0x7f4   :  { %v1270_v18 = vadd.f32 1e-05, %v1254_v15  ;;  %v1258_v45 = vmul.f32 0.0625, %v3070_v1  ;;  %v469_v12 = vmul.f32 %v1965_v63, %v3979_v28  ;;  %1978 = vrsqrt.f32 %v1273_v29  ;;  %v3367_v1 = vpop.xlane.xlu0 %1594 }
 0x7f5   :  { %v1275_v22 = vadd.f32 1e-05, %v1259_v44  ;;  %v801_v10 = vmul.f32 0.0625, %v3149_v5  ;;  %v471_v43 = vmul.f32 %v1967_v14, %v3980_v13  ;;  %1980 = vrsqrt.f32 %v1266_v37 }
 0x7f6   :  { %v1272_v17 = vadd.f32 1e-05, %v1256_v24  ;;  %v1260_v4 = vmul.f32 0.0625, %v3111_v3  ;;  %v3364_v25 = vadd.f32 %v3246_v51, %v1317_v57  ;;  %1982 = vrsqrt.f32 %v1268_v9  ;;  %v3982_v9 = vld [vmem:[#allocation37_spill] sm:$0xff] }
 0x7f7   :  { %v815_v6 = vadd.f32 1e-05, %v799_v60  ;;  %v803_v26 = vmul.f32 0.0625, %v3156_v49  ;;  %v1969_v50 = vpop.eup %1968  ;;  %v3370_v15 = vadd.f32 %v3246_v51, %v489_v62  ;;  %1984 = vrsqrt.f32 %v1270_v18 }
 0x7f8   :  { %3981 = vst [vmem:[#allocation21_spill] sm:$0xff] %v3364_v25  ;;  %v1274_v5 = vadd.f32 1e-05, %v1258_v45  ;;  %v798_v29 = vmul.f32 0.0625, %v3135_v19  ;;  %v1971_v3 = vpop.eup %1970  ;;  %v491_v63 = vmul.f32 %v3197_v38, %v469_v12  ;;  %1986 = vrsqrt.f32 %v1275_v22  ;;  %v3983_v45 = vld [vmem:[#allocation38_spill] sm:$0xff]  ;;  %v1601_v13 = vpop.xlane.xlu0 %1600 }
 0x7f9   :  { %v817_v37 = vadd.f32 1e-05, %v801_v10  ;;  %v805_v24 = vmul.f32 0.0625, %v3161_v55  ;;  %v493_v49 = vmul.f32 %v3197_v38, %v471_v43  ;;  %1988 = vrsqrt.f32 %v1272_v17 }
 0x7fa   :  { %v1276_v14 = vadd.f32 1e-05, %v1260_v4  ;;  %v797_v57 = vmul.f32 0.0625, %v3159_v36  ;;  %v473_v60 = vmul.f32 %v1969_v50, %v3982_v9  ;;  %1990 = vrsqrt.f32 %v815_v6 }
 0x7fb   :  { %v819_v62 = vadd.f32 1e-05, %v803_v26  ;;  %v808_v19 = vmul.f32 0.0625, %v3166_v46  ;;  %v1973_v18 = vpop.eup %1972  ;;  %v475_v28 = vmul.f32 %v1971_v3, %v3983_v45  ;;  %1992 = vrsqrt.f32 %v1274_v5 }
 0x7fc   :  { %v814_v12 = vadd.f32 1e-05, %v798_v29  ;;  %v807_v22 = vmul.f32 0.0625, %v3169_v7  ;;  %v1975_v55 = vpop.eup %1974  ;;  %v3384_v43 = vadd.f32 %v3246_v51, %v491_v63  ;;  %1994 = vrsqrt.f32 %v817_v37 }
 0x7fd   :  { %v821_v10 = vadd.f32 1e-05, %v805_v24  ;;  %v800_v36 = vmul.f32 0.0625, %v3163_v32  ;;  %v1977_v17 = vpop.eup %1976  ;;  %v3388_v4 = vadd.f32 %v3246_v51, %v493_v49  ;;  %1996 = vrsqrt.f32 %v1276_v14 }
 0x7fe   :  { %v813_v46 = vadd.f32 1e-05, %v797_v57  ;;  %v810_v6 = vmul.f32 0.0625, %v3176_v20  ;;  %v1979_v7 = vpop.eup %1978  ;;  %v495_v50 = vmul.f32 %v3197_v38, %v473_v60  ;;  %1998 = vrsqrt.f32 %v819_v62  ;;  %v3984_v20 = vld [vmem:[#allocation39_spill] sm:$0xff]  ;;  %v3985_v60 = vld [vmem:[#allocation41_spill] sm:$0xff] }
 0x7ff   :  { %v824_v5 = vadd.f32 1e-05, %v808_v19  ;;  %v802_v29 = vmul.f32 0.0625, %v3226_v33  ;;  %v3395_v3 = vpop.eup %1980  ;;  %v497_v32 = vmul.f32 %v3197_v38, %v475_v28  ;;  %2000 = vrsqrt.f32 %v814_v12  ;;  %v1607_v12 = vpop.xlane.xlu0 %1606 }
 0x800   :  { %v823_v63 = vadd.f32 1e-05, %v807_v22  ;;  %v1261_v37 = vmul.f32 0.0625, %v3256_v16  ;;  %v3399_v24 = vpop.eup %1982  ;;  %v477_v49 = vmul.f32 %v1973_v18, %v3984_v20  ;;  %2002 = vrsqrt.f32 %v821_v10 }
 0x801   :  { %v816_v14 = vadd.f32 1e-05, %v800_v36  ;;  %v1263_v57 = vmul.f32 0.0625, %v3263_v53  ;;  %v3403_v9 = vpop.eup %1984  ;;  %v479_v33 = vmul.f32 %v1975_v55, %v3985_v60  ;;  %2004 = vrsqrt.f32 %v813_v46 }
 0x802   :  { %v826_v62 = vadd.f32 1e-05, %v810_v6  ;;  %v811_v19 = vmul.f32 0.0625, %v3267_v0  ;;  %v3407_v45 = vpop.eup %1986  ;;  %v3410_v16 = vadd.f32 %v3246_v51, %v495_v50  ;;  %2006 = vrsqrt.f32 %v824_v5 }
 0x803   :  { %v818_v28 = vadd.f32 1e-05, %v802_v29  ;;  %v1617_v18 = vmul.f32 0.0625, %v3274_v35  ;;  %v3413_v22 = vpop.eup %1988  ;;  %v3416_v53 = vadd.f32 %v3246_v51, %v497_v32  ;;  %2008 = vrsqrt.f32 %v823_v63 }
 0x804   :  { %v1277_v55 = vadd.f32 1e-05, %v1261_v37  ;;  %v804_v10 = vmul.f32 0.0625, %v3231_v48  ;;  %v3421_v36 = vpop.eup %1990  ;;  %v499_v46 = vmul.f32 %v3197_v38, %v477_v49  ;;  %2010 = vrsqrt.f32 %v816_v14  ;;  %v3986_v48 = vld [vmem:[#allocation42_spill] sm:$0xff] }
 0x805   :  { %v1279_v6 = vadd.f32 1e-05, %v1263_v57  ;;  %v1619_v35 = vmul.f32 0.0625, %v3283_v31  ;;  %v3425_v50 = vpop.eup %1992  ;;  %v501_v5 = vmul.f32 %v3197_v38, %v479_v33  ;;  %2012 = vrsqrt.f32 %v826_v62  ;;  %v3987_v57 = vld [vmem:[#allocation45_spill] sm:$0xff] }
 0x806   :  { %v827_v29 = vadd.f32 1e-05, %v811_v19  ;;  %v1621_v32 = vmul.f32 0.0625, %v3313_v40  ;;  %v3429_v63 = vpop.eup %1994  ;;  %v1303_v37 = vmul.f32 %v1977_v17, %v3986_v48  ;;  %2014 = vrsqrt.f32 %v818_v28  ;;  %v1613_v28 = vpop.xlane.xlu0 %1612 }
 0x807   :  { %v3271_v61 = vpop.xlane.xlu1 %1241  ;;  %v1633_v20 = vadd.f32 1e-05, %v1617_v18  ;;  %v1623_v49 = vmul.f32 0.0625, %v3347_v23  ;;  %v3433_v14 = vpop.eup %1996  ;;  %v1305_v31 = vmul.f32 %v1979_v7, %v3987_v57  ;;  %2016 = vrsqrt.f32 %v1277_v55 }
 0x808   :  { %v820_v60 = vadd.f32 1e-05, %v804_v10  ;;  %v1625_v33 = vmul.f32 0.0625, %v3367_v1  ;;  %v3437_v62 = vpop.eup %1998  ;;  %v3440_v40 = vadd.f32 %v3246_v51, %v499_v46  ;;  %2018 = vrsqrt.f32 %v1279_v6 }
 0x809   :  { %v1635_v19 = vadd.f32 1e-05, %v1619_v35  ;;  %v1627_v17 = vmul.f32 0.0625, %v1601_v13  ;;  %v3442_v18 = vpop.eup %2000  ;;  %v3445_v23 = vadd.f32 %v3246_v51, %v501_v5  ;;  %2020 = vrsqrt.f32 %v827_v29  ;;  %v3989_v29 = vld [vmem:[#allocation47_spill] sm:$0xff] }
 0x80a   :  { %v1637_v7 = vadd.f32 1e-05, %v1621_v32  ;;  %v806_v55 = vmul.f32 0.0625, %v3236_v41  ;;  %v3448_v1 = vpop.eup %2002  ;;  %v1319_v48 = vmul.f32 %v3197_v38, %v1303_v37  ;;  %2022 = vrsqrt.f32 %v1633_v20  ;;  %v3990_v20 = vld [vmem:[#allocation48_spill] sm:$0xff] }
 0x80b   :  { %v3287_v27 = vpop.xlane.xlu1 %1247  ;;  %3988 = vst [vmem:[#allocation23_spill] sm:$0xff] %v3445_v23  ;;  %v1639_v46 = vadd.f32 1e-05, %v1623_v49  ;;  %v1629_v6 = vmul.f32 0.0625, %v1607_v12  ;;  %v3451_v35 = vpop.eup %2004  ;;  %v1321_v13 = vmul.f32 %v3197_v38, %v1305_v31  ;;  %2024 = vrsqrt.f32 %v820_v60 }
 0x80c   :  { %v1641_v57 = vadd.f32 1e-05, %v1625_v33  ;;  %v1631_v5 = vmul.f32 0.0625, %v1613_v28  ;;  %v3454_v25 = vpop.eup %2006  ;;  %v1298_v41 = vmul.f32 %v3395_v3, %v3989_v29  ;;  %2026 = vrsqrt.f32 %v1635_v19 }
 0x80d   :  { %v1643_v32 = vadd.f32 1e-05, %v1627_v17  ;;  %v809_v59 = vmul.f32 0.0625, %v3240_v52  ;;  %v3459_v37 = vpop.eup %2008  ;;  %v1300_v12 = vmul.f32 %v3399_v24, %v3990_v20  ;;  %2028 = vrsqrt.f32 %v1637_v7 }
 0x80e   :  { %v822_v49 = vadd.f32 1e-05, %v806_v55  ;;  %v1262_v31 = vmul.f32 0.0625, %v3271_v61  ;;  %v3464_v33 = vpop.eup %2010  ;;  %v3467_v28 = vadd.f32 %v3246_v51, %v1319_v48  ;;  %2030 = vrsqrt.f32 %v1639_v46 }
 0x80f   :  { %v3323_v8 = vpop.xlane.xlu1 %795  ;;  %v1645_v3 = vadd.f32 1e-05, %v1629_v6  ;;  %v1264_v19 = vmul.f32 0.0625, %v3287_v27  ;;  %v3470_v52 = vpop.eup %2012  ;;  %v3473_v17 = vadd.f32 %v3246_v51, %v1321_v13  ;;  %2032 = vrsqrt.f32 %v1641_v57  ;;  %v3993_v57 = vld [vmem:[#allocation22_spill] sm:$0xff] }
 0x810   :  { %3991 = vst [vmem:[#allocation24_spill] sm:$0xff] %v3467_v28  ;;  %v1647_v24 = vadd.f32 1e-05, %v1631_v5  ;;  %v812_v7 = vmul.f32 0.0625, %v3323_v8  ;;  %v3476_v61 = vpop.eup %2014  ;;  %v1314_v55 = vmul.f32 %v3197_v38, %v1298_v41  ;;  %2034 = vrsqrt.f32 %v1643_v32 }
 0x811   :  { %3992 = vst [vmem:[#allocation25_spill] sm:$0xff] %v3473_v17  ;;  %v825_v48 = vadd.f32 1e-05, %v809_v59  ;;  %v2017_v6 = vpop.eup %2016  ;;  %v1316_v27 = vmul.f32 %v3197_v38, %v1300_v12  ;;  %2036 = vrsqrt.f32 %v822_v49  ;;  %v1278_v29 = vadd.f32 1e-05, %v1262_v31  ;;  %v3994_v59 = vld [vmem:[#allocation11_spill] sm:$0xff] }
 0x812   :  { %v2019_v20 = vpop.eup %2018  ;;  %v1302_v5 = vmul.f32 %v3403_v9, %v3993_v57  ;;  %2038 = vrsqrt.f32 %v1645_v3  ;;  %v1280_v8 = vadd.f32 1e-05, %v1264_v19  ;;  %v828_v32 = vadd.f32 1e-05, %v812_v7 }
 0x813   :  { %v3353_v39 = vpop.xlane.xlu1 %1573  ;;  %v3485_v41 = vpop.eup %2020  ;;  %2040 = vrsqrt.f32 %v1647_v24 }
 0x814   :  { %v1618_v46 = vmul.f32 0.0625, %v3353_v39  ;;  %v1307_v39 = vmul.f32 %v3407_v45, %v3994_v59  ;;  %v3490_v31 = vpop.eup %2022  ;;  %2042 = vrsqrt.f32 %v825_v48  ;;  %v3997_v59 = vld [vmem:[#allocation14_spill] sm:$0xff] }
 0x815   :  { %v3494_v19 = vpop.eup %2024  ;;  %2044 = vrsqrt.f32 %v1278_v29  ;;  %v1309_v29 = vmul.f32 %v2017_v6, %v3116_v47  ;;  %v3511_v47 = vadd.f32 %v3246_v51, %v1316_v27 }
 0x816   :  { %v1634_v9 = vadd.f32 1e-05, %v1618_v46  ;;  %v2027_v7 = vpop.eup %2026  ;;  %2046 = vrsqrt.f32 %v1280_v8  ;;  %v3998_v8 = vld [vmem:[#allocation69_spill] sm:$0xff] }
 0x817   :  { %v3373_v44 = vpop.xlane.xlu1 %1579  ;;  %v2029_v21 = vpop.eup %2028  ;;  %2048 = vrsqrt.f32 %v828_v32  ;;  %4000 = vst [vmem:[#allocation53_spill] sm:$0xff] %v3511_v47 }
 0x818   :  { %v1620_v13 = vmul.f32 0.0625, %v3373_v44  ;;  %v3995_v44 = vld [vmem:[#allocation26_spill] sm:$0xff]  ;;  %v2031_v46 = vpop.eup %2030  ;;  %2050 = vrsqrt.f32 %v1634_v9 }
 0x819   :  { %v1304_v28 = vmul.f32 %v3413_v22, %v3995_v44  ;;  %v1318_v22 = vmul.f32 %v3197_v38, %v1302_v5  ;;  %v3507_v5 = vadd.f32 %v3246_v51, %v1314_v55  ;;  %v4004_v55 = vld [vmem:[#allocation29_spill] sm:$0xff] }
 0x81a   :  { %v1636_v45 = vadd.f32 1e-05, %v1620_v13  ;;  %v2033_v13 = vpop.eup %2032 }
 0x81b   :  { %v3391_v26 = vpop.xlane.xlu1 %1585  ;;  %v2035_v44 = vpop.eup %2034  ;;  %3999 = vst [vmem:[#allocation32_spill] sm:$0xff] %v3507_v5  ;;  %v3514_v6 = vadd.f32 %v3246_v51, %v1318_v22  ;;  %v4009_v22 = vld [vmem:[#allocation27_spill] sm:$0xff]  ;;  %v4040_v5 = vld [vmem:[#allocation68_spill] sm:$0xff] }
 0x81c   :  { %v1622_v17 = vmul.f32 0.0625, %v3391_v26  ;;  %v3996_v26 = vld [vmem:[#allocation13_spill] sm:$0xff]  ;;  %2052 = vrsqrt.f32 %v1636_v45 }
 0x81d   :  { %v1306_v57 = vmul.f32 %v3425_v50, %v3996_v26  ;;  %v1320_v50 = vmul.f32 %v3197_v38, %v1304_v28  ;;  %v2037_v28 = vpop.eup %2036  ;;  %4001 = vst [vmem:[#allocation54_spill] sm:$0xff] %v3514_v6  ;;  %v4006_v26 = vld [vmem:[#allocation31_spill] sm:$0xff] }
 0x81e   :  { %v1638_v56 = vadd.f32 1e-05, %v1622_v17  ;;  %v1311_v17 = vmul.f32 %v2019_v20, %v3998_v8  ;;  %v2039_v20 = vpop.eup %2038 }
 0x81f   :  { %v3419_v0 = vpop.xlane.xlu1 %1591  ;;  %v3520_v9 = vadd.f32 %v3246_v51, %v1320_v50  ;;  %v4010_v50 = vld [vmem:[#allocation12_spill] sm:$0xff] }
 0x820   :  { %v1624_v12 = vmul.f32 0.0625, %v3419_v0  ;;  %v1308_v0 = vmul.f32 %v3433_v14, %v3997_v59  ;;  %v1322_v14 = vmul.f32 %v3197_v38, %v1306_v57  ;;  %2054 = vrsqrt.f32 %v1638_v56 }
 0x821   :  { %4003 = vst [vmem:[#allocation34_spill] sm:$0xff] %v3520_v9  ;;  %v1325_v56 = vmul.f32 %v3197_v38, %v1309_v29  ;;  %v849_v57 = vmul.f32 %v3429_v63, %v4006_v26  ;;  %v1327_v45 = vmul.f32 %v3197_v38, %v1311_v17  ;;  %v853_v29 = vmul.f32 %v3448_v1, %v4010_v50  ;;  %v4013_v17 = vld [vmem:[#allocation56_spill] sm:$0xff]  ;;  %v4015_v26 = vld [vmem:[#allocation50_spill] sm:$0xff] }
 0x822   :  { %v1640_v48 = vadd.f32 1e-05, %v1624_v12  ;;  %v3526_v27 = vadd.f32 %v3246_v51, %v1322_v14  ;;  %v4012_v14 = vld [vmem:[#allocation46_spill] sm:$0xff] }
 0x823   :  { %v1598_v10 = vpop.xlane.xlu1 %1597  ;;  %v856_v8 = vmul.f32 %v3454_v25, %v4012_v14  ;;  %v3553_v1 = vadd.f32 %v3246_v51, %v1325_v56  ;;  %v3558_v25 = vadd.f32 %v3246_v51, %v1327_v45  ;;  %v4021_v14 = vld [vmem:[#allocation40_spill] sm:$0xff]  ;;  %v4023_v56 = vld [vmem:[#allocation55_spill] sm:$0xff] }
 0x824   :  { %v1626_v3 = vmul.f32 0.0625, %v1598_v10  ;;  %v1323_v10 = vmul.f32 %v3197_v38, %v1307_v39  ;;  %v1324_v39 = vmul.f32 %v3197_v38, %v1308_v0  ;;  %2056 = vrsqrt.f32 %v1640_v48  ;;  %4005 = vst [vmem:[#allocation35_spill] sm:$0xff] %v3526_v27  ;;  %v4008_v0 = vld [vmem:[#allocation49_spill] sm:$0xff] }
 0x825   :  { %4017 = vst [vmem:[#allocation37_spill] sm:$0xff] %v3553_v1  ;;  %4018 = vst [vmem:[#allocation38_spill] sm:$0xff] %v3558_v25 }
 0x826   :  { %v3517_v12 = vadd.f32 %v3246_v51, %v1323_v10  ;;  %v3532_v59 = vadd.f32 %v3246_v51, %v1324_v39  ;;  %v846_v10 = vmul.f32 %v3442_v18, %v4009_v22  ;;  %v858_v18 = vmul.f32 %v3470_v52, %v4015_v26 }
 0x827   :  { %v852_v52 = vmul.f32 %v3494_v19, %v4021_v14  ;;  %v1669_v26 = vmul.f32 %v2029_v21, %v4023_v56 }
 0x828   :  { %4002 = vst [vmem:[#allocation33_spill] sm:$0xff] %v3517_v12  ;;  %4007 = vst [vmem:[#allocation36_spill] sm:$0xff] %v3532_v59  ;;  %v4025_v59 = vld [vmem:[#allocation60_spill] sm:$0xff] }
 0x829   :  { %v1673_v12 = vmul.f32 %v2033_v13, %v4025_v59 }
 0x82c   :  { %v1604_v60 = vpop.xlane.xlu1 %1603 }
 0x82d   :  { %v1628_v24 = vmul.f32 0.0625, %v1604_v60  ;;  %v1642_v60 = vadd.f32 1e-05, %v1626_v3  ;;  %v847_v3 = vmul.f32 %v3421_v36, %v4004_v55  ;;  %v851_v36 = vmul.f32 %v3437_v62, %v4008_v0  ;;  %v4014_v55 = vld [vmem:[#allocation28_spill] sm:$0xff] }
 0x82e   :  { %v848_v62 = vmul.f32 %v3464_v33, %v4014_v55 }
 0x82f   :  { %2058 = vrsqrt.f32 %v1642_v60  ;;  %v4011_v60 = vld [vmem:[#allocation44_spill] sm:$0xff] }
 0x830   :  { %v1610_v49 = vpop.xlane.xlu1 %1609  ;;  %v845_v63 = vmul.f32 %v3451_v35, %v4011_v60  ;;  %v3555_v35 = vpop.permute.xlu0 %861  ;;  %v4020_v60 = vld [vmem:[#allocation61_spill] sm:$0xff] }
 0x831   :  { %v1630_v23 = vmul.f32 0.0625, %v1610_v49  ;;  %v1644_v49 = vadd.f32 1e-05, %v1628_v24  ;;  %v1665_v33 = vmul.f32 %v3490_v31, %v4020_v60  ;;  %v867_v31 = vmul.f32 %v3555_v35, %v848_v62  ;;  %v4028_v62 = vld [vmem:[#allocation62_spill] sm:$0xff] }
 0x832   :  { %v864_v25 = vmul.f32 %v3555_v35, %v845_v63  ;;  %v868_v19 = vmul.f32 %v3555_v35, %v849_v57  ;;  %v870_v21 = vmul.f32 %v3555_v35, %v851_v36  ;;  %v872_v13 = vmul.f32 %v3555_v35, %v853_v29  ;;  %v4026_v63 = vld [vmem:[#allocation72_spill] sm:$0xff] }
 0x833   :  { %v1646_v32 = vadd.f32 1e-05, %v1630_v23  ;;  %v2041_v23 = vpop.eup %2040  ;;  %2060 = vrsqrt.f32 %v1644_v49  ;;  %v855_v49 = vmul.f32 %v3459_v37, %v4013_v17  ;;  %v4019_v37 = vld [vmem:[#allocation59_spill] sm:$0xff]  ;;  %v875_v57 = vmul.f32 %v3555_v35, %v856_v8 }
 0x834   :  { %v2043_v24 = vpop.eup %2042  ;;  %v859_v50 = vmul.f32 %v3485_v41, %v4019_v37  ;;  %v865_v41 = vmul.f32 %v3555_v35, %v846_v10  ;;  %v866_v37 = vmul.f32 %v3555_v35, %v847_v3  ;;  %v3588_v29 = vmul.f32 %v1665_v33, %v3555_v35  ;;  %v4032_v8 = vld [vmem:[#allocation67_spill] sm:$0xff] }
 0x835   :  { %2062 = vrsqrt.f32 %v1646_v32  ;;  %v2045_v48 = vpop.eup %2044  ;;  %v4016_v32 = vld [vmem:[#allocation30_spill] sm:$0xff]  ;;  %v874_v59 = vmul.f32 %v3555_v35, %v855_v49 }
 0x836   :  { %v2047_v39 = vpop.eup %2046  ;;  %v850_v0 = vmul.f32 %v3476_v61, %v4016_v32  ;;  %v4022_v61 = vld [vmem:[#allocation65_spill] sm:$0xff]  ;;  %v1310_v10 = vmul.f32 %v2045_v48, %v4026_v63  ;;  %v878_v36 = vmul.f32 %v3555_v35, %v859_v50  ;;  %v3594_v48 = vmul.f32 %v1669_v26, %v3555_v35 }
 0x837   :  { %v2049_v22 = vpop.eup %2048  ;;  %v1667_v55 = vmul.f32 %v2027_v7, %v4022_v61  ;;  %v4024_v32 = vld [vmem:[#allocation57_spill] sm:$0xff]  ;;  %v3602_v50 = vmul.f32 %v1673_v12, %v3555_v35 }
 0x838   :  { %v2051_v17 = vpop.eup %2050  ;;  %v1671_v1 = vmul.f32 %v2031_v46, %v4024_v32  ;;  %v869_v7 = vmul.f32 %v3555_v35, %v850_v0  ;;  %v871_v46 = vmul.f32 %v3555_v35, %v852_v52  ;;  %v4027_v61 = vld [vmem:[#allocation73_spill] sm:$0xff]  ;;  %v1675_v32 = vmul.f32 %v2035_v44, %v4028_v62  ;;  %v4029_v52 = vld [vmem:[#allocation43_spill] sm:$0xff]  ;;  %4030 = vst [vmem:[#allocation39_spill] sm:$0xff] %v3594_v48  ;;  %v4031_v44 = vld [vmem:[#allocation64_spill] sm:$0xff] }
 0x839   :  { %v2053_v45 = vpop.eup %2052  ;;  %v1312_v3 = vmul.f32 %v2047_v39, %v4027_v61  ;;  %v877_v0 = vmul.f32 %v3555_v35, %v858_v18  ;;  %v854_v9 = vmul.f32 %v2037_v28, %v4029_v52  ;;  %v3591_v49 = vmul.f32 %v1667_v55, %v3555_v35  ;;  %4034 = vst [vmem:[#allocation42_spill] sm:$0xff] %v3602_v50  ;;  %v4035_v28 = vld [vmem:[#allocation58_spill] sm:$0xff]  ;;  %v4036_v52 = vld [vmem:[#allocation51_spill] sm:$0xff] }
 0x83a   :  { %v2055_v60 = vpop.eup %2054  ;;  %v1677_v63 = vmul.f32 %v2039_v20, %v4031_v44  ;;  %v1679_v61 = vmul.f32 %v2041_v23, %v4032_v8  ;;  %v3599_v18 = vmul.f32 %v1671_v1, %v3555_v35  ;;  %v857_v33 = vmul.f32 %v2043_v24, %v4035_v28  ;;  %v4037_v20 = vld [vmem:[#allocation52_spill] sm:$0xff]  ;;  %v4038_v23 = vld [vmem:[#allocation63_spill] sm:$0xff]  ;;  %v4039_v1 = vld [vmem:[#allocation66_spill] sm:$0xff] }
 0x83b   :  { %v2057_v14 = vpop.eup %2056  ;;  %v1326_v62 = vmul.f32 %v3197_v38, %v1310_v10  ;;  %v1328_v55 = vmul.f32 %v3197_v38, %v1312_v3  ;;  %v860_v26 = vmul.f32 %v2049_v22, %v4036_v52  ;;  %v3609_v6 = vmul.f32 %v1675_v32, %v3555_v35  ;;  %v4041_v50 = vld [vmem:[#allocation70_spill] sm:$0xff]  ;;  %v4042_v24 = vld [vmem:[#allocation71_spill] sm:$0xff] }
 0x83c   :  { %v2059_v56 = vpop.eup %2058  ;;  %4033 = vst [vmem:[#allocation41_spill] sm:$0xff] %v3599_v18  ;;  %v1666_v44 = vmul.f32 %v2051_v17, %v4037_v20  ;;  %v1668_v8 = vmul.f32 %v2053_v45, %v4038_v23  ;;  %v1670_v47 = vmul.f32 %v2055_v60, %v4039_v1  ;;  %v1672_v12 = vmul.f32 %v2057_v14, %v4040_v5  ;;  %v4043_v10 = vld [vmem:[#allocation15_spill] sm:$0xff] }
 0x83d   :  { %v2061_v27 = vpop.eup %2060  ;;  %v1674_v18 = vmul.f32 %v2059_v56, %v4041_v50  ;;  %v873_v22 = vmul.f32 %v3555_v35, %v854_v9  ;;  %v3620_v3 = vmul.f32 %v1677_v63, %v3555_v35  ;;  %v3623_v17 = vmul.f32 %v1679_v61, %v3555_v35 }
 0x83e   :  { %v1676_v28 = vmul.f32 %v2061_v27, %v4042_v24  ;;  %v876_v60 = vmul.f32 %v3555_v35, %v857_v33  ;;  %v3627_v5 = vadd.f32 %v3246_v51, %v1326_v62  ;;  %v3630_v14 = vadd.f32 %v3246_v51, %v1328_v55 }
 0x83f   :  { %v2063_v39 = vpop.eup %2062  ;;  %v879_v27 = vmul.f32 %v3555_v35, %v860_v26  ;;  %v1682_v56 = vmul.f32 %v1666_v44, %v3555_v35  ;;  %v1684_v9 = vmul.f32 %v1668_v8, %v3555_v35  ;;  %v1686_v32 = vmul.f32 %v1670_v47, %v3555_v35  ;;  %v4047_v24 = vld [vmem:[#allocation39_spill] sm:$0xff] }
 0x840   :  { %v1678_v48 = vmul.f32 %v2063_v39, %v4043_v10  ;;  %v1688_v63 = vmul.f32 %v1672_v12, %v3555_v35  ;;  %v3638_v61 = vmul.f32 %v1674_v18, %v3555_v35  ;;  %v3641_v50 = vmul.f32 %v1676_v28, %v3555_v35 }
 0x842   :  { %v3644_v51 = vmul.f32 %v1678_v48, %v3555_v35 }
 0x865   :  { %v1616_v38 = vpop.xlane.xlu1 %1615 }
 0x866   :  { %v1632_v45 = vmul.f32 0.0625, %v1616_v38  ;;  %v4048_v38 = vld [vmem:[#allocation41_spill] sm:$0xff] }
 0x868   :  { %v1648_v39 = vadd.f32 1e-05, %v1632_v45 }
 0x869   :  { %v3646_v33 = vpop.permute.xlu1 %880 }
 0x86a   :  { %2064 = vrsqrt.f32 %v1648_v39  ;;  %v883_v62 = vadd.f32 %v3646_v33, %v864_v25  ;;  %v884_v55 = vadd.f32 %v3646_v33, %v865_v41  ;;  %v885_v47 = vadd.f32 %v3646_v33, %v866_v37 }
 0x86b   :  { %v886_v52 = vadd.f32 %v3646_v33, %v867_v31  ;;  %v887_v18 = vadd.f32 %v3646_v33, %v868_v19  ;;  %v888_v26 = vadd.f32 %v3646_v33, %v869_v7  ;;  %v889_v20 = vadd.f32 %v3646_v33, %v870_v21 }
 0x86c   :  { %v890_v48 = vadd.f32 %v3646_v33, %v871_v46  ;;  %v891_v44 = vadd.f32 %v3646_v33, %v872_v13  ;;  %v892_v23 = vadd.f32 %v3646_v33, %v873_v22  ;;  %v893_v25 = vadd.f32 %v3646_v33, %v874_v59 }
 0x86d   :  { %v894_v41 = vadd.f32 %v3646_v33, %v875_v57  ;;  %v895_v37 = vadd.f32 %v3646_v33, %v876_v60  ;;  %v896_v31 = vadd.f32 %v3646_v33, %v877_v0  ;;  %v897_v19 = vadd.f32 %v3646_v33, %v878_v36  ;;  %v4049_v60 = vld [vmem:[#allocation42_spill] sm:$0xff] }
 0x86e   :  { %v898_v7 = vadd.f32 %v3646_v33, %v879_v27  ;;  %v899_v21 = vsel %vm272_vm1, %v3350_v34, %v883_v62  ;;  %v900_v46 = vsel %vm272_vm1, %v3290_v42, %v884_v55  ;;  %v901_v13 = vsel %vm272_vm1, %v3370_v15, %v885_v47  ;;  %v4051_v47 = vld [vmem:[#allocation19_spill] sm:$0xff] }
 0x86f   :  { %v902_v59 = vsel %vm272_vm1, %v3302_v11, %v886_v52  ;;  %v903_v57 = vsel %vm272_vm1, %v3384_v43, %v887_v18  ;;  %v904_v0 = vsel %vm272_vm1, %v3307_v58, %v888_v26  ;;  %v905_v36 = vsel %vm272_vm1, %v3388_v4, %v889_v20  ;;  %915 = vst.msk [vmem:[#allocation7] sm:$0xff] %vm78_vm0, %v899_v21  ;;  %v4044_v43 = vld [vmem:[#allocation17_spill] sm:$0xff]  ;;  %v4045_v4 = vld [vmem:[#allocation23_spill] sm:$0xff]  ;;  %v4052_v52 = vld [vmem:[#allocation32_spill] sm:$0xff] }
 0x870   :  { %916 = vst.msk [vmem:[#allocation7 + $0x10] sm:$0xff] %vm78_vm0, %v900_v46  ;;  %917 = vst.msk [vmem:[#allocation7 + $0x20] sm:$0xff] %vm78_vm0, %v901_v13  ;;  %v906_v42 = vsel %vm272_vm1, %v3310_v30, %v890_v48  ;;  %v907_v11 = vsel %vm272_vm1, %v3410_v16, %v891_v44  ;;  %v908_v34 = vsel %vm272_vm1, %v3316_v2, %v892_v23  ;;  %v4053_v18 = vld [vmem:[#allocation20_spill] sm:$0xff]  ;;  %v4054_v20 = vld [vmem:[#allocation53_spill] sm:$0xff] }
 0x871   :  { %v909_v58 = vsel %vm272_vm1, %v3416_v53, %v893_v25  ;;  %918 = vst.msk [vmem:[#allocation7 + $0x30] sm:$0xff] %vm78_vm0, %v902_v59  ;;  %919 = vst.msk [vmem:[#allocation7 + $0x40] sm:$0xff] %vm78_vm0, %v903_v57  ;;  %v910_v30 = vsel %vm272_vm1, %v3319_v54, %v894_v41  ;;  %v911_v15 = vsel %vm272_vm1, %v3440_v40, %v895_v37  ;;  %v4046_v53 = vld [vmem:[#allocation18_spill] sm:$0xff]  ;;  %v4055_v48 = vld [vmem:[#allocation21_spill] sm:$0xff] }
 0x872   :  { %920 = vst.msk [vmem:[#allocation7 + $0x50] sm:$0xff] %vm78_vm0, %v904_v0  ;;  %921 = vst.msk [vmem:[#allocation7 + $0x60] sm:$0xff] %vm78_vm0, %v905_v36  ;;  %v912_v2 = vsel %vm272_vm1, %v4044_v43, %v896_v31  ;;  %v913_v16 = vsel %vm272_vm1, %v4045_v4, %v897_v19  ;;  %v914_v54 = vsel %vm272_vm1, %v4046_v53, %v898_v7  ;;  %v4056_v44 = vld [vmem:[#allocation54_spill] sm:$0xff]  ;;  %v4057_v23 = vld [vmem:[#allocation24_spill] sm:$0xff] }
 0x873   :  { %922 = vst.msk [vmem:[#allocation7 + $0x70] sm:$0xff] %vm78_vm0, %v906_v42  ;;  %923 = vst.msk [vmem:[#allocation7 + $0x80] sm:$0xff] %vm78_vm0, %v907_v11  ;;  %v1697_v40 = vadd.f32 %v3588_v29, %v3646_v33  ;;  %v1698_v8 = vadd.f32 %v1682_v56, %v3646_v33  ;;  %v1699_v1 = vadd.f32 %v3591_v49, %v3646_v33  ;;  %v4058_v25 = vld [vmem:[#allocation34_spill] sm:$0xff]  ;;  %v4059_v37 = vld [vmem:[#allocation25_spill] sm:$0xff] }
 0x874   :  { %924 = vst.msk [vmem:[#allocation7 + $0x90] sm:$0xff] %vm78_vm0, %v908_v34  ;;  %925 = vst.msk [vmem:[#allocation7 + $0xa0] sm:$0xff] %vm78_vm0, %v909_v58  ;;  %v1700_v12 = vadd.f32 %v1684_v9, %v3646_v33  ;;  %v1701_v28 = vadd.f32 %v4047_v24, %v3646_v33  ;;  %v1702_v10 = vadd.f32 %v1686_v32, %v3646_v33  ;;  %v2065_v45 = vpop.eup %2064  ;;  %v4050_v9 = vld [vmem:[#allocation16_spill] sm:$0xff]  ;;  %v4060_v19 = vld [vmem:[#allocation35_spill] sm:$0xff] }
 0x875   :  { %926 = vst.msk [vmem:[#allocation7 + $0xb0] sm:$0xff] %vm78_vm0, %v910_v30  ;;  %927 = vst.msk [vmem:[#allocation7 + $0xc0] sm:$0xff] %vm78_vm0, %v911_v15  ;;  %v1703_v22 = vadd.f32 %v4048_v38, %v3646_v33  ;;  %v1704_v29 = vadd.f32 %v1688_v63, %v3646_v33  ;;  %v1705_v27 = vadd.f32 %v4049_v60, %v3646_v33  ;;  %v4061_v46 = vld [vmem:[#allocation33_spill] sm:$0xff]  ;;  %v4062_v59 = vld [vmem:[#allocation36_spill] sm:$0xff] }
 0x876   :  { %928 = vst.msk [vmem:[#allocation7 + $0xd0] sm:$0xff] %vm78_vm0, %v912_v2  ;;  %929 = vst.msk [vmem:[#allocation7 + $0xe0] sm:$0xff] %vm78_vm0, %v913_v16  ;;  %v1706_v49 = vadd.f32 %v3638_v61, %v3646_v33  ;;  %v1707_v56 = vadd.f32 %v3609_v6, %v3646_v33  ;;  %v1680_v39 = vmul.f32 %v2065_v45, %v4050_v9  ;;  %v4063_v0 = vld [vmem:[#allocation37_spill] sm:$0xff]  ;;  %v4064_v42 = vld [vmem:[#allocation38_spill] sm:$0xff] }
 0x877   :  { %930 = vst.msk [vmem:[#allocation7 + $0xf0] sm:$0xff] %vm78_vm0, %v914_v54  ;;  %v1708_v32 = vadd.f32 %v3641_v50, %v3646_v33  ;;  %v1709_v62 = vadd.f32 %v3620_v3, %v3646_v33  ;;  %v1710_v63 = vadd.f32 %v3644_v51, %v3646_v33  ;;  %v1711_v55 = vadd.f32 %v3623_v17, %v3646_v33 }
 0x878   :  { %v1713_v61 = vsel %vm272_vm1, %v4051_v47, %v1697_v40  ;;  %v1714_v6 = vsel %vm272_vm1, %v4052_v52, %v1698_v8  ;;  %v1715_v26 = vsel %vm272_vm1, %v4053_v18, %v1699_v1  ;;  %v1696_v50 = vmul.f32 %v1680_v39, %v3555_v35 }
 0x879   :  { %v1716_v3 = vsel %vm272_vm1, %v4054_v20, %v1700_v12  ;;  %v1717_v51 = vsel %vm272_vm1, %v4055_v48, %v1701_v28  ;;  %v1718_v17 = vsel %vm272_vm1, %v4056_v44, %v1702_v10  ;;  %1730 = vst.msk [vmem:[#allocation7 + $0x8] sm:$0xff] %vm78_vm0, %v1713_v61  ;;  %1731 = vst.msk [vmem:[#allocation7 + $0x18] sm:$0xff] %vm78_vm0, %v1714_v6 }
 0x87a   :  { %1732 = vst.msk [vmem:[#allocation7 + $0x28] sm:$0xff] %vm78_vm0, %v1715_v26  ;;  %v1719_v35 = vsel %vm272_vm1, %v4057_v23, %v1703_v22  ;;  %v1720_v41 = vsel %vm272_vm1, %v4058_v25, %v1704_v29  ;;  %v1721_v31 = vsel %vm272_vm1, %v4059_v37, %v1705_v27  ;;  %v1722_v7 = vsel %vm272_vm1, %v4060_v19, %v1706_v49 }
 0x87b   :  { %1733 = vst.msk [vmem:[#allocation7 + $0x38] sm:$0xff] %vm78_vm0, %v1716_v3  ;;  %1734 = vst.msk [vmem:[#allocation7 + $0x48] sm:$0xff] %vm78_vm0, %v1717_v51  ;;  %v1712_v21 = vadd.f32 %v1696_v50, %v3646_v33  ;;  %v1723_v13 = vsel %vm272_vm1, %v4061_v46, %v1707_v56  ;;  %v1724_v57 = vsel %vm272_vm1, %v4062_v59, %v1708_v32 }
 0x87c   :  { %1735 = vst.msk [vmem:[#allocation7 + $0x58] sm:$0xff] %vm78_vm0, %v1718_v17  ;;  %v1725_v36 = vsel %vm272_vm1, %v4063_v0, %v1709_v62  ;;  %1736 = vst.msk [vmem:[#allocation7 + $0x68] sm:$0xff] %vm78_vm0, %v1719_v35  ;;  %v1726_v33 = vsel %vm272_vm1, %v3627_v5, %v1710_v63  ;;  %v1727_v11 = vsel %vm272_vm1, %v4064_v42, %v1711_v55 }
 0x87d   :  { %1737 = vst.msk [vmem:[#allocation7 + $0x78] sm:$0xff] %vm78_vm0, %v1720_v41  ;;  %1738 = vst.msk [vmem:[#allocation7 + $0x88] sm:$0xff] %vm78_vm0, %v1721_v31  ;;  %v1728_v34 = vsel %vm272_vm1, %v3630_v14, %v1712_v21 }
 0x87e   :  { %1739 = vst.msk [vmem:[#allocation7 + $0x98] sm:$0xff] %vm78_vm0, %v1722_v7  ;;  %1740 = vst.msk [vmem:[#allocation7 + $0xa8] sm:$0xff] %vm78_vm0, %v1723_v13 }
 0x87f   :  { %1741 = vst.msk [vmem:[#allocation7 + $0xb8] sm:$0xff] %vm78_vm0, %v1724_v57  ;;  %1742 = vst.msk [vmem:[#allocation7 + $0xc8] sm:$0xff] %vm78_vm0, %v1725_v36 }
 0x880   :  { %1743 = vst.msk [vmem:[#allocation7 + $0xd8] sm:$0xff] %vm78_vm0, %v1726_v33  ;;  %1744 = vst.msk [vmem:[#allocation7 + $0xe8] sm:$0xff] %vm78_vm0, %v1727_v11 }
 0x881   :  { %1745 = vst.msk [vmem:[#allocation7 + $0xf8] sm:$0xff] %vm78_vm0, %v1728_v34 }
 0x882   :  { %2121 = shalt.err (!%p2118_p6)
}
 0x883   :  { %s2122_s30 = scalar_lea.hbm %s3809_s5, 4096 }
 0x884   :  { %p2123_p7 = scmp.ne.s32.totalorder %s3809_s5, %s2122_s30  ;;  %p2126_p8 = scmp.lt.u32.totalorder %s2122_s30, %s3809_s5 }
 0x886   :  { %p2128_p9 = pnand %p2126_p8, %p2123_p7 }
 0x888   :  { %2131 = shalt.err (!%p2128_p9)
}
 0x889   :  { %1757 = dma.vmem_to_hbm [thread:$0]  %s1752_s24, 4096, %s3809_s5, [#allocation4], %s2139_s28, %s2139_s28, %s2140_s29  }
 0x88a   :  { %2136 = dma.done.wait [#allocation4], 4096  }
 0x88b   :  { %2137 = vsyncadd [#allocation4], 4294963200 }
 0x88c   :  { %1761 = vsyncpa [#allocation3], 1 }
 0x88d   :  { %1762 = vsyncpa [#allocation6], 1 }
 0x88e   :  { %1763 = vsyncpa [#allocation4], 1 }

</bundles_post_ra>
